<compile_context>
chip_gen: v6e
topology: v6e:2x2x1
jax: 0.10.0
libtpu: 0.0.40
codegen_flags: <defaults>
</compile_context>

<pallas_src>
import functools

import jax
import jax.numpy as jnp
from jax import lax
from jax.experimental import pallas as pl
from jax.experimental.pallas import tpu as pltpu


def _round_up(a: int, b: int) -> int:
    return ((a + b - 1) // b) * b


def _cdiv(a: int, b: int) -> int:
    return (a + b - 1) // b


def _mm_private_output_kernel(x_ref, wT_ref, b_ref, g_ref, beta_ref, o_ref, *,
                              eps, precision):
    # x_ref   : (1, 1, F, tu)  channels-first input tile of mode m (native dtype)
    # wT_ref  : (1, F, F)      per-mode conv weight, pre-transposed to (F_in, F_out)
    # b_ref   : (1, 1, F)      per-mode conv bias (fp32)
    # g_ref   : (1, F)         LayerNorm weight (gamma, fp32)
    # beta_ref: (1, F)         LayerNorm bias (beta, fp32)
    # o_ref   : (1, 1, tu, F)  output tile, already in the final (B, M, U, F) layout
    #
    # Contract the LHS sublane axis directly: Mosaic folds the transpose into the MXU
    # feed instead of paying a separate XLU pass + transposed VMEM intermediate.
    y = lax.dot_general(
        x_ref[0, 0], wT_ref[0],
        dimension_numbers=(((0,), (0,)), ((), ())),
        preferred_element_type=jnp.float32,
        precision=precision) + b_ref[0]                     # (tu, F), fp32 accumulator

    # nn.LayerNorm semantics: biased variance, eps inside rsqrt, elementwise affine.
    mu = jnp.mean(y, axis=-1, keepdims=True)
    yc = y - mu
    var = jnp.mean(yc * yc, axis=-1, keepdims=True)
    y_n = yc * lax.rsqrt(var + eps)
    o_ref[0, 0] = (y_n * g_ref[...] + beta_ref[...]).astype(o_ref.dtype)
    # TODO(synk): nn.Dropout treated as eval-mode identity (deterministic forward).


def mm_private_output(x, shortcut, conv_w, conv_b, ln_gamma, ln_beta, *,
                      num_modes, feat_dim, eps=1e-12, tu=4096,
                      precision=lax.Precision.HIGHEST):
    """Pallas forward of MMPrivateOutput. Returns x_normed with shape (B, M, U, F).

    Note: in the given module, `x_comb = x + shortcut` is computed but the normalized
    output is built from the group_linear output alone, so `shortcut` does not affect
    the result; it is accepted for interface parity but never DMA'd into the kernel.
    `precision` defaults to HIGHEST for parity with the fp32 reference; on v5e pass
    lax.Precision.DEFAULT (or bf16 inputs) if bit-level fp32 parity is not required.
    """
    del shortcut  # TODO(synk): dead per the literal spec (x_comb is never consumed).

    B, C, U = x.shape
    M, F = int(num_modes), int(feat_dim)
    assert C == M * F, "channel dim must equal num_modes * feat_dim"
    assert F % 8 == 0, "feat_dim must be a multiple of 8 for TPU sublane tiling"

    # Metadata-only reshape (splits the channel dim); NO astype -> input DMA'd in its
    # native dtype (bf16 inputs feed the MXU natively with fp32 accumulation).
    x4 = x.reshape(B, M, F, U)
    out_dtype = x.dtype

    # Sequence tiling: lane-aligned tiles; ragged tails handled by partial boundary blocks.
    tu_req = max(128, _round_up(int(tu), 128))
    # Keep double-buffered (in + out) fp32-equivalent tiles comfortably under v5e's
    # 16 MiB default scoped VMEM.
    max_tu_vmem = max(128, ((12 << 20) // (F * 16)) // 128 * 128)
    tu_req = min(tu_req, max_tu_vmem)
    if U <= tu_req:
        tu_eff = U                     # single whole-sequence block (full-dim block is legal)
    else:
        tu_eff = tu_req                # multiple of 128, <= U; last block may be partial
    u_tiles = _cdiv(U, tu_eff)
    # v7x: if the grid would collapse to a single step, split the sequence so both
    # TensorCores get work.
    if B * M * u_tiles < 2 and U > 256:
        half = _round_up(_cdiv(U, 2), 128)
        if half < U:
            tu_eff = half
            u_tiles = _cdiv(U, tu_eff)

    # Conv1d(groups=M) params: weight (M*F, F, 1) -> per-mode (F_in, F_out); bias (M*F,).
    w_dtype = x.dtype if x.dtype == jnp.bfloat16 else jnp.float32
    wT = jnp.transpose(jnp.asarray(conv_w, jnp.float32).reshape(M, F, F),
                       (0, 2, 1)).astype(w_dtype)
    b3 = jnp.asarray(conv_b, jnp.float32).reshape(M, 1, F)
    g2 = jnp.asarray(ln_gamma, jnp.float32).reshape(1, F)
    be2 = jnp.asarray(ln_beta, jnp.float32).reshape(1, F)

    kernel = functools.partial(_mm_private_output_kernel, eps=float(eps),
                               precision=precision)

    out = pl.pallas_call(
        kernel,
        out_shape=jax.ShapeDtypeStruct((B, M, U, F), out_dtype),
        grid_spec=pltpu.PrefetchScalarGridSpec(
            num_scalar_prefetch=0,
            # Mode outermost: W_m^T / bias_m keep the same block index across the whole
            # batch and sequence, so Pallas skips their re-DMA.
            grid=(M, B, u_tiles),
            in_specs=[
                pl.BlockSpec((1, 1, F, tu_eff), lambda m, b, i: (b, m, 0, i)),  # x tile
                pl.BlockSpec((1, F, F), lambda m, b, i: (m, 0, 0)),             # W_m^T
                pl.BlockSpec((1, 1, F), lambda m, b, i: (m, 0, 0)),             # bias_m
                pl.BlockSpec((1, F), lambda m, b, i: (0, 0)),                   # gamma
                pl.BlockSpec((1, F), lambda m, b, i: (0, 0)),                   # beta
            ],
            out_specs=pl.BlockSpec((1, 1, tu_eff, F), lambda m, b, i: (b, m, i, 0)),
        ),
        compiler_params=pltpu.CompilerParams(
            dimension_semantics=("parallel", "parallel", "parallel")),
    )(x4, wT, b3, g2, be2)
    return out


def _reference(x, shortcut, conv_w, conv_b, ln_gamma, ln_beta, *,
               num_modes, feat_dim, eps=1e-12):
    """Pure-JAX reference that mirrors the given PyTorch forward literally."""
    B, C, U = x.shape
    M, F = num_modes, feat_dim
    w = jnp.asarray(conv_w, jnp.float32).reshape(M, F, F)        # (M, F_out, F_in)
    x4 = x.reshape(B, M, F, U)
    y = jnp.einsum("moi,bmiu->bmou", w, x4,
                   precision=lax.Precision.HIGHEST) + conv_b.reshape(1, M, F, 1)
    _x_comb = y + shortcut.reshape(B, M, F, U)   # computed, never used (matches the spec)
    y_uf = jnp.transpose(y, (0, 1, 3, 2))        # (B, M, U, F)
    mu = jnp.mean(y_uf, axis=-1, keepdims=True)
    var = jnp.mean((y_uf - mu) ** 2, axis=-1, keepdims=True)
    return (y_uf - mu) * lax.rsqrt(var + eps) * ln_gamma + ln_beta


if __name__ == "__main__":
    # config: num_modes=2, feat_dim=128, batch=2, seq len U=320 (not a multiple of 128:
    # exercises the ragged-tail block path; no wrapper-side padding anywhere).
    B, M, F, U = 2, 2, 128, 320

    key = jax.random.PRNGKey(0)
    k_x, k_s, k_w, k_b, k_g, k_be = jax.random.split(key, 6)

    x = jax.random.normal(k_x, (B, M * F, U), dtype=jnp.float32)
    shortcut = jax.random.normal(k_s, (B, M * F, U), dtype=jnp.float32)

    # nn.Conv1d(M*F, M*F, 1, groups=M): weight (M*F, F, 1), bias (M*F,).
    bound = 1.0 / (F ** 0.5)
    conv_w = jax.random.uniform(k_w, (M * F, F, 1), minval=-bound, maxval=bound,
                                dtype=jnp.float32)
    conv_b = jax.random.uniform(k_b, (M * F,), minval=-bound, maxval=bound,
                                dtype=jnp.float32)
    # nn.LayerNorm(F): default init weight=1, bias=0; perturb so the affine path is real.
    ln_gamma = 1.0 + 0.05 * jax.random.normal(k_g, (F,), dtype=jnp.float32)
    ln_beta = 0.05 * jax.random.normal(k_be, (F,), dtype=jnp.float32)

    ref = _reference(x, shortcut, conv_w, conv_b, ln_gamma, ln_beta,
                     num_modes=M, feat_dim=F)

    # Default (large) tile: whole sequence in one block per (m, b).
    out = mm_private_output(x, shortcut, conv_w, conv_b, ln_gamma, ln_beta,
                            num_modes=M, feat_dim=F)
    out = jax.block_until_ready(out)
    assert out.shape == (B, M, U, F)
    assert out.dtype == jnp.float32
    assert jnp.allclose(out, ref, atol=2e-4, rtol=2e-4), "mismatch vs JAX reference"

    # Small tile: forces multiple sequence tiles with a partial (masked) boundary block.
    out_ragged = mm_private_output(x, shortcut, conv_w, conv_b, ln_gamma, ln_beta,
                                   num_modes=M, feat_dim=F, tu=256)
    out_ragged = jax.block_until_ready(out_ragged)
    assert jnp.allclose(out_ragged, ref, atol=2e-4, rtol=2e-4), \
        "ragged-tile mismatch vs JAX reference"

    print("KERNEL_OK")
</pallas_src>

<mosaic_0001>
module attributes {stable_mosaic.version = 11 : i64} {
  func.func @_mm_private_output_kernel(%arg0: i32, %arg1: i32, %arg2: i32, %arg3: memref<1x1x128x320xf32, #tpu.memory_space<vmem>>, %arg4: memref<1x128x128xf32, #tpu.memory_space<vmem>>, %arg5: memref<1x1x128xf32, #tpu.memory_space<vmem>>, %arg6: memref<1x128xf32, #tpu.memory_space<vmem>>, %arg7: memref<1x128xf32, #tpu.memory_space<vmem>>, %arg8: memref<1x1x320x128xf32, #tpu.memory_space<vmem>>) attributes {dimension_semantics = [#tpu.dimension_semantics<parallel>, #tpu.dimension_semantics<parallel>, #tpu.dimension_semantics<parallel>], iteration_bounds = array<i64: 2, 2, 1>, scalar_prefetch = 0 : i64, scratch_operands = 0 : i64, tpu.core_type = #tpu.core_type<tc>, window_params = [{transform_indices = @transform_0, window_bounds = array<i64: 1, 1, 128, 320>}, {transform_indices = @transform_1, window_bounds = array<i64: 1, 128, 128>}, {transform_indices = @transform_2, window_bounds = array<i64: 1, 1, 128>}, {pipeline_mode = #tpu.pipeline_mode<synchronous>, transform_indices = @transform_3, window_bounds = array<i64: 1, 128>}, {pipeline_mode = #tpu.pipeline_mode<synchronous>, transform_indices = @transform_4, window_bounds = array<i64: 1, 128>}, {transform_indices = @transform_5, window_bounds = array<i64: 1, 1, 320, 128>}]} {
    %c0 = arith.constant 0 : index
    %c0_0 = arith.constant 0 : index
    %c0_1 = arith.constant 0 : index
    %c0_2 = arith.constant 0 : index
    %0 = vector.load %arg3[%c0, %c0_0, %c0_1, %c0_2] : memref<1x1x128x320xf32, #tpu.memory_space<vmem>>, vector<1x1x128x320xf32>
    %1 = vector.shape_cast %0 : vector<1x1x128x320xf32> to vector<128x320xf32>
    %c0_3 = arith.constant 0 : index
    %c0_4 = arith.constant 0 : index
    %c0_5 = arith.constant 0 : index
    %2 = vector.load %arg4[%c0_3, %c0_4, %c0_5] : memref<1x128x128xf32, #tpu.memory_space<vmem>>, vector<1x128x128xf32>
    %3 = vector.shape_cast %2 : vector<1x128x128xf32> to vector<128x128xf32>
    %cst = arith.constant dense<0.000000e+00> : vector<320x128xf32>
    %4 = tpu.matmul %1, %3, %cst {dimension_numbers = #tpu.dot_dimension_numbers<[0], [0], [1], [1], [0, 1, 1, 1], [], []>, precision = #tpu.contract_precision<fp32>} : vector<128x320xf32>, vector<128x128xf32>, vector<320x128xf32> -> vector<320x128xf32>
    %c0_6 = arith.constant 0 : index
    %c0_7 = arith.constant 0 : index
    %c0_8 = arith.constant 0 : index
    %5 = vector.load %arg5[%c0_6, %c0_7, %c0_8] : memref<1x1x128xf32, #tpu.memory_space<vmem>>, vector<1x1x128xf32>
    %6 = vector.shape_cast %5 : vector<1x1x128xf32> to vector<1x128xf32>
    %7 = vector.broadcast %6 : vector<1x128xf32> to vector<320x128xf32>
    %8 = arith.addf %4, %7 : vector<320x128xf32>
    %cst_9 = arith.constant dense<0.000000e+00> : vector<320xf32>
    %9 = vector.multi_reduction <add>, %8, %cst_9 [1] : vector<320x128xf32> to vector<320xf32>
    %10 = vector.shape_cast %9 : vector<320xf32> to vector<320x1xf32>
    %cst_10 = arith.constant 1.280000e+02 : f32
    %11 = vector.broadcast %cst_10 : f32 to vector<320x1xf32>
    %12 = arith.divf %10, %11 : vector<320x1xf32>
    %13 = vector.broadcast %12 : vector<320x1xf32> to vector<320x128xf32>
    %14 = arith.subf %8, %13 : vector<320x128xf32>
    %15 = arith.mulf %14, %14 : vector<320x128xf32>
    %cst_11 = arith.constant dense<0.000000e+00> : vector<320xf32>
    %16 = vector.multi_reduction <add>, %15, %cst_11 [1] : vector<320x128xf32> to vector<320xf32>
    %17 = vector.shape_cast %16 : vector<320xf32> to vector<320x1xf32>
    %cst_12 = arith.constant 1.280000e+02 : f32
    %18 = vector.broadcast %cst_12 : f32 to vector<320x1xf32>
    %19 = arith.divf %17, %18 : vector<320x1xf32>
    %cst_13 = arith.constant 9.99999996E-13 : f32
    %20 = vector.broadcast %cst_13 : f32 to vector<320x1xf32>
    %21 = arith.addf %19, %20 : vector<320x1xf32>
    %22 = math.rsqrt %21 : vector<320x1xf32>
    %23 = vector.broadcast %22 : vector<320x1xf32> to vector<320x128xf32>
    %24 = arith.mulf %14, %23 : vector<320x128xf32>
    %c0_14 = arith.constant 0 : index
    %c0_15 = arith.constant 0 : index
    %25 = vector.load %arg6[%c0_14, %c0_15] : memref<1x128xf32, #tpu.memory_space<vmem>>, vector<1x128xf32>
    %26 = vector.broadcast %25 : vector<1x128xf32> to vector<320x128xf32>
    %27 = arith.mulf %24, %26 : vector<320x128xf32>
    %c0_16 = arith.constant 0 : index
    %c0_17 = arith.constant 0 : index
    %28 = vector.load %arg7[%c0_16, %c0_17] : memref<1x128xf32, #tpu.memory_space<vmem>>, vector<1x128xf32>
    %29 = vector.broadcast %28 : vector<1x128xf32> to vector<320x128xf32>
    %30 = arith.addf %27, %29 : vector<320x128xf32>
    %c0_18 = arith.constant 0 : index
    %c0_19 = arith.constant 0 : index
    %c0_20 = arith.constant 0 : index
    %c0_21 = arith.constant 0 : index
    %31 = vector.load %arg8[%c0_18, %c0_19, %c0_20, %c0_21] : memref<1x1x320x128xf32, #tpu.memory_space<vmem>>, vector<1x1x320x128xf32>
    %32 = vector.shape_cast %31 : vector<1x1x320x128xf32> to vector<320x128xf32>
    %33 = vector.shape_cast %30 : vector<320x128xf32> to vector<1x1x320x128xf32>
    tpu.vector_store %arg8[%c0_18, %c0_19, %c0_20, %c0_21], %33 {strides = array<i32>} : memref<1x1x320x128xf32, #tpu.memory_space<vmem>>, vector<1x1x320x128xf32>,
    return
  }
  func.func @transform_0(%arg0: i32, %arg1: i32, %arg2: i32) -> (i32, i32, i32, i32) {
    %c0_i32 = arith.constant 0 : i32
    %c0_i32_0 = arith.constant 0 : i32
    return %arg1, %arg0, %c0_i32, %arg2 : i32, i32, i32, i32
  }
  func.func @transform_1(%arg0: i32, %arg1: i32, %arg2: i32) -> (i32, i32, i32) {
    %c0_i32 = arith.constant 0 : i32
    %c0_i32_0 = arith.constant 0 : i32
    %c0_i32_1 = arith.constant 0 : i32
    return %arg0, %c0_i32, %c0_i32_0 : i32, i32, i32
  }
  func.func @transform_2(%arg0: i32, %arg1: i32, %arg2: i32) -> (i32, i32, i32) {
    %c0_i32 = arith.constant 0 : i32
    %c0_i32_0 = arith.constant 0 : i32
    %c0_i32_1 = arith.constant 0 : i32
    return %arg0, %c0_i32, %c0_i32_0 : i32, i32, i32
  }
  func.func @transform_3(%arg0: i32, %arg1: i32, %arg2: i32) -> (i32, i32) {
    %c0_i32 = arith.constant 0 : i32
    %c0_i32_0 = arith.constant 0 : i32
    %c0_i32_1 = arith.constant 0 : i32
    return %c0_i32, %c0_i32_0 : i32, i32
  }
  func.func @transform_4(%arg0: i32, %arg1: i32, %arg2: i32) -> (i32, i32) {
    %c0_i32 = arith.constant 0 : i32
    %c0_i32_0 = arith.constant 0 : i32
    %c0_i32_1 = arith.constant 0 : i32
    return %c0_i32, %c0_i32_0 : i32, i32
  }
  func.func @transform_5(%arg0: i32, %arg1: i32, %arg2: i32) -> (i32, i32, i32, i32) {
    %c0_i32 = arith.constant 0 : i32
    %c0_i32_0 = arith.constant 0 : i32
    return %arg1, %arg0, %arg2, %c0_i32 : i32, i32, i32, i32
  }
}

</mosaic_0001>

<bundles_post_ra>
// kernel: tpu_custom_call.1
= control target key start
LH: loop header
LB: loop body
LE: loop exit
PB: predicated region body
PF: predicated region fallthrough
CT: control target
= control target key end

     0   :  { %10 = vsyncpa [#allocation3], 0  ;;  %s6749_s0 = inlined_call_operand.vmem [shape: f32[2,2,128,320], index: 0, kind: input, shape index: {}]   ;;  %s6750_s1 = inlined_call_operand.vmem [shape: f32[2,128,128], index: 1, kind: input, shape index: {}]   ;;  %s6751_s2 = inlined_call_operand.vmem [shape: f32[2,1,128], index: 2, kind: input, shape index: {}]   ;;  %s6752_s3 = inlined_call_operand.vmem [shape: f32[1,128], index: 3, kind: input, shape index: {}]   ;;  %s6753_s4 = inlined_call_operand.vmem [shape: f32[1,128], index: 4, kind: input, shape index: {}]   ;;  %s6754_s5 = inlined_call_operand.hbm [shape: f32[2,2,320,128], index: 5, kind: output, shape index: {}]  }
   0x1   :  { %12 = vsyncpa [#allocation3 + $0x1], 0  ;;  %s4691_s18 = smov 0   ;;  %s4693_s19 = smov 0  }
   0x2   :  { %s4695_s20 = smov 0   ;;  %s4697_s21 = smov 0  }
   0x3   :  { %s4699_s22 = smov 0   ;;  %s4701_s23 = smov 0  }
   0x4   :  { %s4703_s24 = smov 0   ;;  %s4705_s25 = smov 0  }
   0x5 LB: > { %s3503_s26 = sadd.s32 4294967295, %s4656_s25   ;;  %s3504_s27 = sadd.s32 4294967294, %s4656_s25   ;;  %s4656_s25 = sphi %s4705_s25, %s18_s25   ;;  %s4652_s24 = sphi %s4703_s24, %s7112_s24   ;;  %s4648_s23 = sphi %s4701_s23, %s7111_s23   ;;  %s4644_s22 = sphi %s4699_s22, %s7110_s22   ;;  %s4640_s21 = sphi %s4697_s21, %s7109_s21   ;;  %s4636_s20 = sphi %s4695_s20, %s7108_s20   ;;  %s4632_s19 = sphi %s4693_s19, %s7107_s19   ;;  %s4628_s18 = sphi %s4691_s18, %s7106_s18  }
   0x6   : > { %s33_s28 = sadd.s32 1, %s4648_s23  ;;  %s37_s29 = sadd.s32 1, %s4652_s24 }
   0x7   : > { %p35_p0 = scmp.ge.s32.totalorder %s33_s28, 2  ;;  %p182_p1 = scmp.ne.s32.totalorder %s4636_s20, %s4632_s19 }
   0x8   : > { %p183_p2 = scmp.eq.s32.totalorder %s3503_s26, 3  ;;  %p188_p5 = scmp.ne.s32.totalorder %s4632_s19, %s4628_s18 }
   0x9   : > { %s7114_s28 = smov (%p35_p0, %s33_s28), 0  ;;  %s7116_s29 = smov (!%p35_p0, %s37_s29), %s4652_s24 }
   0xa   : > { %s165_s30 = ssub.s32 %s4648_s23, %s7114_s28  ;;  %p4742_p3 = por %p183_p2, %p182_p1 }
   0xb   : > { %p39_p4 = scmp.ge.s32.totalorder %s7116_s29, 2  ;;  %p189_p6 = scmp.eq.s32.totalorder %s3504_s27, 3 }
   0xc   : > { %p3507_p7 = scmp.ge.s32.totalorder %s4656_s25, 1  ;;  %p244_p9 = scmp.lt.s32.totalorder %s4656_s25, 5 }
   0xd   : > { %s7118_s29 = smov (%p39_p4, %s7116_s29), 0  ;;  %p4751_p8 = por %p189_p6, %p188_p5 }
   0xe   : > { %s166_s8 = ssub.s32 %s4652_s24, %s7118_s29  ;;  %s172_s9 = sadd.s32 1, %s4636_s20 }
   0xf   : > { %s167_s10 = sor.u32 %s166_s8, %s165_s30  ;;  %p245_p10 = pnand %p3507_p7, %p244_p9 }
  0x10   : > { %p170_p11 = scmp.eq.s32.totalorder %s167_s10, 0 }
  0x11   : > { %248 = sbr.rel (%p245_p10) target bundleno = 990 (0x3de), region = 40 }
  0x12   : > { %s4760_s11 = scalar_select %p170_p11, %s4636_s20, %s172_s9  }
  0x16   : > { %p289_p12 = scmp.lt.s32.totalorder %s4640_s21, 1  ;;  %p291_p13 = scmp.lt.s32.totalorder %s4644_s22, 1 }
  0x17   : > { %s4409_s10 = smul.u32 40, %s4644_s22 }
  0x18   : > { %s290_s12 = scalar_select %p289_p12, %s4640_s21, 1 }
  0x19   : > { %s4766_s13 = scalar_select %p291_p13, %s4644_s22, 1 }
  0x1a   : > { %s4408_s14 = smul.u32 96, %s290_s12 }
  0x1b   : > { %s4407_s15 = smul.u32 48, %s4766_s13  ;;  %s3517_s16 = sshll.u32 %s4766_s13, 7 }
  0x1c   : > { %s4773_s27 = scalar_lea.vmem %s6750_s1, %s3517_s16  ;;  %s309_s16 = scalar_lea.vmem %s6751_s2, %s4766_s13 }
  0x1d   : > { %s298_s30 = sadd.s32 %s4408_s14, %s4407_s15  ;;  %v374_v0 = vld [vmem:[%s4773_s27 + $0x78] sm:$0xff]  ;;  %v373_v1 = vld [vmem:[%s4773_s27 + $0x70] sm:$0xff]  ;;  %v372_v2 = vld [vmem:[%s4773_s27 + $0x68] sm:$0xff]  ;;  %s285_s13 = sand.u32 1, %s4632_s19  }
  0x1e   : > { %s3508_s8 = sshll.u32 %s298_s30, 3  ;;  %v4778_v3 = vand.u32 4294901760, %v374_v0  ;;  %v4780_v4 = vand.u32 4294901760, %v373_v1  ;;  %v4782_v5 = vand.u32 4294901760, %v372_v2  ;;  %v371_v6 = vld [vmem:[%s4773_s27 + $0x60] sm:$0xff]  ;;  %v370_v7 = vld [vmem:[%s4773_s27 + $0x58] sm:$0xff] }
  0x1f   : > { %s4789_s12 = scalar_lea.vmem %s6749_s0, %s3508_s8  ;;  %v4791_v8 = vand.u32 4294901760, %v371_v6  ;;  %v4793_v9 = vand.u32 4294901760, %v370_v7  ;;  %v369_v10 = vld [vmem:[%s4773_s27 + $0x50] sm:$0xff]  ;;  %v368_v11 = vld [vmem:[%s4773_s27 + $0x48] sm:$0xff]  ;;  %v367_v12 = vld [vmem:[%s4773_s27 + $0x40] sm:$0xff]  ;;  %s6698_s26 = scalar_lea.sflag [#allocation3], %s285_s13 }
  0x20   : > { %v311_v13 = vld [vmem:[%s4789_s12] sm:$0xff]  ;;  %v4800_v14 = vsub.f32 %v374_v0, %v4778_v3  ;;  %v4803_v15 = vsub.f32 %v373_v1, %v4780_v4  ;;  %v4806_v16 = vsub.f32 %v372_v2, %v4782_v5  ;;  %3854 = vmatprep.subr.mxu0 %v4778_v3  ;;  %v4809_v17 = vand.u32 4294901760, %v369_v10  ;;  %v314_v22 = vld [vmem:[%s4789_s12 + $0x18] sm:$0xff]  ;;  %v312_v23 = vld [vmem:[%s4789_s12 + $0x8] sm:$0xff]  ;;  %s4658_s30 = smov [#allocation2]  }
  0x21   : > { %382 = vxpose.xlu0.b32.start [1/16] %v311_v13, 128  ;;  %v4812_v18 = vsub.f32 %v371_v6, %v4791_v8  ;;  %v4815_v19 = vsub.f32 %v370_v7, %v4793_v9  ;;  %3855 = vmatpush3.msra.mxu0 %v4778_v3  ;;  %v4818_v20 = vand.u32 4294901760, %v368_v11  ;;  %v4820_v21 = vand.u32 4294901760, %v367_v12  ;;  %v315_v31 = vld [vmem:[%s4789_s12 + $0x20] sm:$0xff]  ;;  %v317_v36 = vld [vmem:[%s4789_s12 + $0x30] sm:$0xff]  ;;  %v318_v41 = vld [vmem:[%s4789_s12 + $0x38] sm:$0xff]  ;;  %s4568_s8 = sshll.u32 %s4658_s30, 4  ;;  %s4569_s8 = int_to_ptr.vmem [resolvable:$false] %s4568_s8 }
  0x22   : > { %v4825_v24 = vand.u32 4294901760, %v4800_v14  ;;  %v4828_v25 = vand.u32 4294901760, %v4803_v15  ;;  %v4831_v26 = vand.u32 4294901760, %v4806_v16  ;;  %3856 = vmatprep.subr.mxu0 %v4780_v4  ;;  %v4835_v27 = vsub.f32 %v369_v10, %v4809_v17  ;;  %414 = vxpose.xlu1.b32.start [1/16] %v312_v23, 128  ;;  %v320_v46 = vld [vmem:[%s4789_s12 + $0x48] sm:$0xff]  ;;  %v321_v49 = vld [vmem:[%s4789_s12 + $0x50] sm:$0xff]  ;;  %v323_v53 = vld [vmem:[%s4789_s12 + $0x60] sm:$0xff] }
  0x23   : > { %v4838_v28 = vand.u32 4294901760, %v4812_v18  ;;  %v4841_v29 = vand.u32 4294901760, %v4815_v19  ;;  %3857 = vmatpush3.msra.mxu0 %v4780_v4  ;;  %v4845_v30 = vsub.f32 %v368_v11, %v4818_v20  ;;  %v4856_v35 = vsub.f32 %v367_v12, %v4820_v21  ;;  %v366_v55 = vld [vmem:[%s4773_s27 + $0x38] sm:$0xff]  ;;  %v365_v56 = vld [vmem:[%s4773_s27 + $0x30] sm:$0xff]  ;;  %v324_v57 = vld [vmem:[%s4789_s12 + $0x68] sm:$0xff] }
  0x24   : > { %v963_v32 = vsub.f32 %v4800_v14, %v4825_v24  ;;  %v970_v33 = vsub.f32 %v4803_v15, %v4828_v25  ;;  %v977_v34 = vsub.f32 %v4806_v16, %v4831_v26  ;;  %3858 = vmatprep.subr.mxu0 %v4782_v5  ;;  %v4863_v40 = vand.u32 4294901760, %v4835_v27  ;;  %v364_v60 = vld [vmem:[%s4773_s27 + $0x28] sm:$0xff]  ;;  %v363_v61 = vld [vmem:[%s4773_s27 + $0x20] sm:$0xff]  ;;  %v362_v2 = vld [vmem:[%s4773_s27 + $0x18] sm:$0xff] }
  0x25   : > { %383 = vxpose.xlu0.b32.cont [2/16] %v314_v22, 128  ;;  %3859 = vmatpush3.msra.mxu0 %v4782_v5  ;;  %v984_v39 = vsub.f32 %v4812_v18, %v4838_v28  ;;  %v991_v43 = vsub.f32 %v4815_v19, %v4841_v29  ;;  %v4871_v44 = vand.u32 4294901760, %v4845_v30  ;;  %v4874_v45 = vand.u32 4294901760, %v4856_v35  ;;  %v361_v6 = vld [vmem:[%s4773_s27 + $0x10] sm:$0xff]  ;;  %v360_v13 = vld [vmem:[%s4773_s27 + $0x8] sm:$0xff]  ;;  %v359_v22 = vld [vmem:[%s4773_s27] sm:$0xff]  ;;  %s4406_s27 = smul.u32 320, %s285_s13 }
  0x26   : > { %v964_v37 = vand.u32 4294901760, %v963_v32  ;;  %v971_v38 = vand.u32 4294901760, %v970_v33  ;;  %3860 = vmatprep.subr.mxu0 %v4791_v8  ;;  %415 = vxpose.xlu1.b32.cont [2/16] %v315_v31, 128  ;;  %v978_v42 = vand.u32 4294901760, %v977_v34  ;;  %v998_v48 = vsub.f32 %v4835_v27, %v4863_v40  ;;  %v326_v23 = vld [vmem:[%s4789_s12 + $0x78] sm:$0xff] }
  0x27   : > { %3861 = vmatpush3.msra.mxu0 %v4791_v8  ;;  %6908 = vst [vmem:[#allocation5_spill] sm:$0xff] %v4874_v45  ;;  %v985_v47 = vand.u32 4294901760, %v984_v39  ;;  %v992_v50 = vand.u32 4294901760, %v991_v43  ;;  %v1005_v51 = vsub.f32 %v4845_v30, %v4871_v44  ;;  %v1012_v52 = vsub.f32 %v4856_v35, %v4874_v45  ;;  %s6528_s9 = scalar_lea.vmem [#allocation2], %s4406_s27 }
  0x28   : > { %3946 = vmatprep.subr.mxu1 %v964_v37  ;;  %3862 = vmatprep.subr.mxu0 %v4793_v9  ;;  %v999_v54 = vand.u32 4294901760, %v998_v48  ;;  %v4892_v58 = vand.u32 4294901760, %v366_v55  ;;  %v4894_v59 = vand.u32 4294901760, %v365_v56  ;;  %v4899_v0 = vand.u32 4294901760, %v364_v60  ;;  %s3389_s14 = sshll.u32 %s6528_s9, 4  ;;  %s6691_s14 = int_to_ptr.vmem [resolvable:$true] %s3389_s14 }
  0x29   : > { %384 = vxpose.xlu0.b32.cont [3/16] %v317_v36, 128  ;;  %3947 = vmatpush3.msra.mxu1 %v964_v37  ;;  %v1006_v62 = vand.u32 4294901760, %v1005_v51  ;;  %v1013_v63 = vand.u32 4294901760, %v1012_v52  ;;  %v4901_v1 = vand.u32 4294901760, %v363_v61  ;;  %v4911_v11 = vand.u32 4294901760, %v362_v2  ;;  %s4564_s27 = scalar_lea.vmem %s6691_s14, 5120  ;;  %p4571_p4 = scmp.lt.s32.totalorder %s6691_s14, %s4569_s8 }
  0x2a   : > { %3948 = vmatprep.subr.mxu1 %v971_v38  ;;  %3863 = vmatpush3.msra.mxu0 %v4793_v9  ;;  %6909 = vst [vmem:[#allocation6_spill] sm:$0xff] %v4892_v58  ;;  %6910 = vst [vmem:[#allocation7_spill] sm:$0xff] %v4894_v59  ;;  %v4906_v7 = vsub.f32 %v366_v55, %v4892_v58  ;;  %v4909_v10 = vsub.f32 %v365_v56, %v4894_v59  ;;  %v4913_v12 = vand.u32 4294901760, %v361_v6  ;;  %p4565_p0 = scmp.ne.s32.totalorder %s6691_s14, %s4564_s27 }
  0x2b   : > { %416 = vxpose.xlu1.b32.cont [3/16] %v318_v41, 128  ;;  %3949 = vmatpush3.msra.mxu1 %v971_v38  ;;  %6911 = vst [vmem:[#allocation8_spill] sm:$0xff] %v4899_v0  ;;  %6912 = vst [vmem:[#allocation9_spill] sm:$0xff] %v4901_v1  ;;  %v4919_v31 = vsub.f32 %v364_v60, %v4899_v0  ;;  %v4923_v32 = vsub.f32 %v363_v61, %v4901_v1  ;;  %v4925_v33 = vand.u32 4294901760, %v360_v13  ;;  %v327_v41 = vld [vmem:[%s4789_s12 + $0x80] sm:$0xff] }
  0x2c   : > { %3950 = vmatprep.subr.mxu1 %v978_v42  ;;  %3864 = vmatprep.subr.mxu0 %v4809_v17  ;;  %6913 = vst [vmem:[#allocation10_spill] sm:$0xff] %v4911_v11  ;;  %6914 = vst [vmem:[#allocation11_spill] sm:$0xff] %v4913_v12  ;;  %v4927_v34 = vand.u32 4294901760, %v359_v22  ;;  %v4930_v36 = vand.u32 4294901760, %v4906_v7  ;;  %v4933_v37 = vand.u32 4294901760, %v4909_v10  ;;  %v4936_v38 = vsub.f32 %v362_v2, %v4911_v11  ;;  %p4566_p1 = pnand %p4565_p0, %p4742_p3 }
  0x2d   : > { %385 = vxpose.xlu0.b32.cont [4/16] %v320_v46, 128  ;;  %3951 = vmatpush3.msra.mxu1 %v978_v42  ;;  %6915 = vst [vmem:[#allocation12_spill] sm:$0xff] %v4925_v33  ;;  %v4939_v39 = vsub.f32 %v361_v6, %v4913_v12  ;;  %v4943_v42 = vand.u32 4294901760, %v4919_v31  ;;  %v4947_v43 = vand.u32 4294901760, %v4923_v32 }
  0x2e   : > { %3952 = vmatprep.subr.mxu1 %v985_v47  ;;  %3865 = vmatpush3.msra.mxu0 %v4809_v17  ;;  %6916 = vst [vmem:[#allocation13_spill] sm:$0xff] %v4927_v34  ;;  %6917 = vst [vmem:[#allocation14_spill] sm:$0xff] %v4930_v36  ;;  %v1019_v46 = vsub.f32 %v4906_v7, %v4930_v36  ;;  %v4954_v48 = vand.u32 4294901760, %v4936_v38  ;;  %v4964_v52 = vsub.f32 %v359_v22, %v4927_v34  ;;  %v333_v22 = vld [vmem:[%s4789_s12 + $0xb0] sm:$0xff]  ;;  %p4567_p2 = pneg %p4566_p1 }
  0x2f   : > { %417 = vxpose.xlu1.b32.cont [4/16] %v321_v49, 128  ;;  %3953 = vmatpush3.msra.mxu1 %v985_v47  ;;  %6918 = vst [vmem:[#allocation15_spill] sm:$0xff] %v4933_v37  ;;  %6919 = vst [vmem:[#allocation16_spill] sm:$0xff] %v4943_v42  ;;  %v1026_v47 = vsub.f32 %v4909_v10, %v4933_v37  ;;  %v4957_v49 = vsub.f32 %v360_v13, %v4925_v33  ;;  %v4969_v56 = vand.u32 4294901760, %v4939_v39 }
  0x30   : > { %3954 = vmatprep.subr.mxu1 %v992_v50  ;;  %3866 = vmatprep.subr.mxu0 %v4818_v20  ;;  %6920 = vst [vmem:[#allocation17_spill] sm:$0xff] %v4947_v43  ;;  %6921 = vst [vmem:[#allocation18_spill] sm:$0xff] %v4954_v48  ;;  %v1033_v51 = vsub.f32 %v4919_v31, %v4943_v42  ;;  %v1040_v55 = vsub.f32 %v4923_v32, %v4947_v43  ;;  %v4983_v13 = vand.u32 4294901760, %v4964_v52 }
  0x31   : > { %386 = vxpose.xlu0.b32.cont [5/16] %v323_v53, 128  ;;  %3955 = vmatpush3.msra.mxu1 %v992_v50  ;;  %v329_v50 = vld [vmem:[%s4789_s12 + $0x90] sm:$0xff]  ;;  %v1020_v53 = vand.u32 4294901760, %v1019_v46  ;;  %6922 = vst [vmem:[#allocation19_spill] sm:$0xff] %v4969_v56  ;;  %v1047_v61 = vsub.f32 %v4936_v38, %v4954_v48  ;;  %v1054_v6 = vsub.f32 %v4939_v39, %v4969_v56  ;;  %v335_v46 = vld [vmem:[%s4789_s12 + $0xc0] sm:$0xff] }
  0x32   : > { %3956 = vmatprep.subr.mxu1 %v999_v54  ;;  %3867 = vmatpush3.msra.mxu0 %v4818_v20  ;;  %v1034_v60 = vand.u32 4294901760, %v1033_v51  ;;  %v1041_v2 = vand.u32 4294901760, %v1040_v55  ;;  %6924 = vst [vmem:[#allocation21_spill] sm:$0xff] %v4983_v13  ;;  %v336_v51 = vld [vmem:[%s4789_s12 + $0xc8] sm:$0xff] }
  0x33   : > { %418 = vxpose.xlu1.b32.cont [5/16] %v324_v57, 128  ;;  %3957 = vmatpush3.msra.mxu1 %v999_v54  ;;  %v1027_v54 = vand.u32 4294901760, %v1026_v47  ;;  %v330_v57 = vld [vmem:[%s4789_s12 + $0x98] sm:$0xff]  ;;  %v1055_v47 = vand.u32 4294901760, %v1054_v6  ;;  %v347_v6 = vld [vmem:[%s4789_s12 + $0x120] sm:$0xff] }
  0x34   : > { %3958 = vmatprep.subr.mxu1 %v1006_v62  ;;  %3868 = vmatprep.subr.mxu0 %v4820_v21 }
  0x35   : > { %387 = vxpose.xlu0.b32.cont [6/16] %v326_v23, 128  ;;  %3959 = vmatpush3.msra.mxu1 %v1006_v62  ;;  %v4976_v62 = vand.u32 4294901760, %v4957_v49  ;;  %v1048_v23 = vand.u32 4294901760, %v1047_v61  ;;  %v342_v61 = vld [vmem:[%s4789_s12 + $0xf8] sm:$0xff] }
  0x36   : > { %3960 = vmatprep.subr.mxu1 %v1013_v63  ;;  %3869 = vmatpush3.msra.mxu0 %v4820_v21 }
  0x37   : > { %419 = vxpose.xlu1.b32.cont [6/16] %v327_v41, 128  ;;  %3961 = vmatpush3.msra.mxu1 %v1013_v63  ;;  %6923 = vst [vmem:[#allocation20_spill] sm:$0xff] %v4976_v62  ;;  %v332_v63 = vld [vmem:[%s4789_s12 + $0xa8] sm:$0xff]  ;;  %v1061_v41 = vsub.f32 %v4957_v49, %v4976_v62 }
  0x38   : > { %3870 = vmatprep.subr.mxu0 %v4892_v58  ;;  %3962 = vmatprep.subr.mxu1 %v1020_v53 }
  0x39   : > { %388 = vxpose.xlu0.b32.cont [7/16] %v329_v50, 128  ;;  %3963 = vmatpush3.msra.mxu1 %v1020_v53  ;;  %v1068_v50 = vsub.f32 %v4964_v52, %v4983_v13  ;;  %v1062_v53 = vand.u32 4294901760, %v1061_v41  ;;  %v351_v41 = vld [vmem:[%s4789_s12 + $0x140] sm:$0xff] }
  0x3a   : > { %3871 = vmatpush3.msra.mxu0 %v4892_v58  ;;  %3964 = vmatprep.subr.mxu1 %v1027_v54 }
  0x3b   : > { %420 = vxpose.xlu1.b32.cont [7/16] %v330_v57, 128  ;;  %3965 = vmatpush3.msra.mxu1 %v1027_v54  ;;  %v338_v54 = vld [vmem:[%s4789_s12 + $0xd8] sm:$0xff]  ;;  %v1069_v55 = vand.u32 4294901760, %v1068_v50  ;;  %v339_v57 = vld [vmem:[%s4789_s12 + $0xe0] sm:$0xff]  ;;  %v356_v50 = vld [vmem:[%s4789_s12 + $0x168] sm:$0xff] }
  0x3c   : > { %3872 = vmatprep.subr.mxu0 %v4894_v59  ;;  %3966 = vmatprep.subr.mxu1 %v1034_v60 }
  0x3d   : > { %389 = vxpose.xlu0.b32.cont [8/16] %v332_v63, 128  ;;  %3967 = vmatpush3.msra.mxu1 %v1034_v60  ;;  %v341_v60 = vld [vmem:[%s4789_s12 + $0xf0] sm:$0xff]  ;;  %v344_v63 = vld [vmem:[%s4789_s12 + $0x108] sm:$0xff] }
  0x3e   : > { %3873 = vmatpush3.msra.mxu0 %v4894_v59  ;;  %3968 = vmatprep.subr.mxu1 %v1041_v2 }
  0x3f   : > { %421 = vxpose.xlu1.b32.cont [8/16] %v333_v22, 128  ;;  %3969 = vmatpush3.msra.mxu1 %v1041_v2  ;;  %v345_v2 = vld [vmem:[%s4789_s12 + $0x110] sm:$0xff]  ;;  %v348_v22 = vld [vmem:[%s4789_s12 + $0x128] sm:$0xff] }
  0x40   : > { %3874 = vmatprep.subr.mxu0 %v4899_v0  ;;  %3970 = vmatprep.subr.mxu1 %v1048_v23 }
  0x41   : > { %390 = vxpose.xlu0.b32.cont [9/16] %v335_v46, 128  ;;  %3971 = vmatpush3.msra.mxu1 %v1048_v23  ;;  %v350_v23 = vld [vmem:[%s4789_s12 + $0x138] sm:$0xff]  ;;  %v353_v46 = vld [vmem:[%s4789_s12 + $0x150] sm:$0xff] }
  0x42   : > { %3875 = vmatpush3.msra.mxu0 %v4899_v0  ;;  %3972 = vmatprep.subr.mxu1 %v1055_v47 }
  0x43   : > { %422 = vxpose.xlu1.b32.cont [9/16] %v336_v51, 128  ;;  %3973 = vmatpush3.msra.mxu1 %v1055_v47  ;;  %v354_v47 = vld [vmem:[%s4789_s12 + $0x158] sm:$0xff]  ;;  %v357_v51 = vld [vmem:[%s4789_s12 + $0x170] sm:$0xff] }
  0x44   : > { %3876 = vmatprep.subr.mxu0 %v4901_v1  ;;  %3974 = vmatprep.subr.mxu1 %v1062_v53 }
  0x45   : > { %391 = vxpose.xlu0.b32.cont [10/16] %v338_v54, 128  ;;  %3975 = vmatpush3.msra.mxu1 %v1062_v53  ;;  %v313_v53 = vld [vmem:[%s4789_s12 + $0x10] sm:$0xff]  ;;  %v316_v54 = vld [vmem:[%s4789_s12 + $0x28] sm:$0xff] }
  0x46   : > { %3877 = vmatpush3.msra.mxu0 %v4901_v1  ;;  %3976 = vmatprep.subr.mxu1 %v1069_v55 }
  0x47   : > { %423 = vxpose.xlu1.b32.cont [10/16] %v339_v57, 128  ;;  %3977 = vmatpush3.msra.mxu1 %v1069_v55  ;;  %v319_v55 = vld [vmem:[%s4789_s12 + $0x40] sm:$0xff]  ;;  %v322_v57 = vld [vmem:[%s4789_s12 + $0x58] sm:$0xff] }
  0x48   : > { %3878 = vmatprep.subr.mxu0 %v4911_v11  ;;  %4130 = vmatprep.subr.mxu1 %v4778_v3 }
  0x49   : > { %392 = vxpose.xlu0.b32.cont [11/16] %v341_v60, 128  ;;  %3879 = vmatpush3.msra.mxu0 %v4911_v11  ;;  %v325_v60 = vld [vmem:[%s4789_s12 + $0x70] sm:$0xff] }
  0x4a   : > { %3880 = vmatprep.subr.mxu0 %v4913_v12 }
  0x4b   : > { %424 = vxpose.xlu1.b32.cont [11/16] %v342_v61, 128  ;;  %3881 = vmatpush3.msra.mxu0 %v4913_v12  ;;  %v328_v61 = vld [vmem:[%s4789_s12 + $0x88] sm:$0xff] }
  0x4c   : > { %3882 = vmatprep.subr.mxu0 %v4925_v33 }
  0x4d   : > { %393 = vxpose.xlu0.b32.cont [12/16] %v344_v63, 128  ;;  %3883 = vmatpush3.msra.mxu0 %v4925_v33  ;;  %v331_v63 = vld [vmem:[%s4789_s12 + $0xa0] sm:$0xff] }
  0x4e   : > { %3884 = vmatprep.subr.mxu0 %v4927_v34 }
  0x4f   : > { %425 = vxpose.xlu1.b32.cont [12/16] %v345_v2, 128  ;;  %3885 = vmatpush3.msra.mxu0 %v4927_v34  ;;  %v334_v2 = vld [vmem:[%s4789_s12 + $0xb8] sm:$0xff] }
  0x50   : > { %4038 = vmatprep.subr.mxu0 %v4800_v14 }
  0x51   : > { %394 = vxpose.xlu0.b32.cont [13/16] %v347_v6, 128  ;;  %v337_v6 = vld [vmem:[%s4789_s12 + $0xd0] sm:$0xff] }
  0x53   : > { %426 = vxpose.xlu1.b32.cont [13/16] %v348_v22, 128  ;;  %v340_v22 = vld [vmem:[%s4789_s12 + $0xe8] sm:$0xff] }
  0x55   : > { %395 = vxpose.xlu0.b32.cont [14/16] %v350_v23, 128  ;;  %v343_v23 = vld [vmem:[%s4789_s12 + $0x100] sm:$0xff] }
  0x57   : > { %427 = vxpose.xlu1.b32.cont [14/16] %v351_v41, 128  ;;  %v346_v41 = vld [vmem:[%s4789_s12 + $0x118] sm:$0xff] }
  0x59   : > { %396 = vxpose.xlu0.b32.cont [15/16] %v353_v46, 128  ;;  %v349_v46 = vld [vmem:[%s4789_s12 + $0x130] sm:$0xff] }
  0x5b   : > { %428 = vxpose.xlu1.b32.cont [15/16] %v354_v47, 128  ;;  %v352_v47 = vld [vmem:[%s4789_s12 + $0x148] sm:$0xff] }
  0x5d   : > { %397 = vxpose.xlu0.b32.end [16/16] %v356_v50, 128  ;;  %v355_v50 = vld [vmem:[%s4789_s12 + $0x160] sm:$0xff] }
  0x5f   : > { %429 = vxpose.xlu1.b32.end [16/16] %v357_v51, 128  ;;  %v358_v51 = vld [vmem:[%s4789_s12 + $0x178] sm:$0xff]  ;;  %s4410_s12 = smul.u32 80, %s4640_s21 }
  0x61   : > { %446 = vxpose.xlu0.b32.start [1/16] (narrow) %v313_v53, 64  ;;  %s3386_s21 = sadd.s32 %s4410_s12, %s4409_s10  ;;  %s4570_s10 = scalar_lea.vmem %s4569_s8, 10240 }
  0x62   : > { %s3514_s22 = sshll.u32 %s3386_s21, 7  ;;  %p4572_p5 = scmp.lt.s32.totalorder %s4570_s10, %s4564_s27 }
  0x63   : > { %s6689_s17 = scalar_lea.hbm %s6754_s5, %s3514_s22 }
  0x64   : > { %p4573_p6 = por %p4572_p5, %p4571_p4 }
  0x65   : > { %447 = vxpose.xlu0.b32.cont [2/16] (narrow) %v316_v54, 64 }
  0x66   : > { %p4574_p7 = pnand %p4573_p6, %p4567_p2 }
  0x69   : > { %448 = vxpose.xlu0.b32.cont [3/16] (narrow) %v319_v55, 64 }
  0x6d   : > { %449 = vxpose.xlu0.b32.cont [4/16] (narrow) %v322_v57, 64 }
  0x71   : > { %450 = vxpose.xlu0.b32.cont [5/16] (narrow) %v325_v60, 64 }
  0x75   : > { %451 = vxpose.xlu0.b32.cont [6/16] (narrow) %v328_v61, 64 }
  0x79   : > { %452 = vxpose.xlu0.b32.cont [7/16] (narrow) %v331_v63, 64 }
  0x7d   : > { %453 = vxpose.xlu0.b32.cont [8/16] (narrow) %v334_v2, 64 }
  0x81   : > { %454 = vxpose.xlu0.b32.cont [9/16] (narrow) %v337_v6, 64 }
  0x85   : > { %455 = vxpose.xlu0.b32.cont [10/16] (narrow) %v340_v22, 64 }
  0x89   : > { %456 = vxpose.xlu0.b32.cont [11/16] (narrow) %v343_v23, 64 }
  0x8d   : > { %457 = vxpose.xlu0.b32.cont [12/16] (narrow) %v346_v41, 64 }
  0x91   : > { %458 = vxpose.xlu0.b32.cont [13/16] (narrow) %v349_v46, 64 }
  0x95   : > { %459 = vxpose.xlu0.b32.cont [14/16] (narrow) %v352_v47, 64 }
  0x99   : > { %460 = vxpose.xlu0.b32.cont [15/16] (narrow) %v355_v50, 64 }
  0x9d   : > { %v398_v53 = vpop.trf.xlu0  ;;  %461 = vxpose.xlu0.b32.end [16/16] (narrow) %v358_v51, 64 }
  0x9e   : > { %v5038_v54 = vand.u32 4294901760, %v398_v53 }
  0x9f   : > { %v5040_v55 = vpop.trf.xlu1 }
  0xa0   : > { %6925 = vst [vmem:[#allocation22_spill] sm:$0xff] %v5038_v54  ;;  %v5043_v57 = vsub.f32 %v398_v53, %v5038_v54  ;;  %3978 = vmatprep.mubr.f32.mxu1 %v5038_v54 }
  0xa1   : > { %v399_v60 = vpop.trf.xlu0 }
  0xa2   : > { %v5046_v61 = vand.u32 4294901760, %v399_v60  ;;  %v6755_v63 = vand.u32 4294901760, %v5043_v57 }
  0xa3   : > { %v5049_v2 = vpop.trf.xlu1 }
  0xa4   : > { %6926 = vst [vmem:[#allocation23_spill] sm:$0xff] %v5046_v61  ;;  %v5052_v6 = vsub.f32 %v399_v60, %v5046_v61  ;;  %3979 = vmatmul.mubr.f32.vlgmr.msra.gmra.mxu1 %v5046_v61  ;;  %v562_v22 = vsub.f32 %v5043_v57, %v6755_v63 }
  0xa5   : > { %v400_v23 = vpop.trf.xlu0  ;;  %4131 = vmatpush3.msra.mxu1 %v4778_v3 }
  0xa6   : > { %v5059_v41 = vand.u32 4294901760, %v400_v23  ;;  %v563_v46 = vand.u32 4294901760, %v562_v22  ;;  %v6760_v47 = vand.u32 4294901760, %v5052_v6  ;;  %4132 = vmatprep.subr.mxu1 %v4780_v4 }
  0xa7   : > { %v5063_v50 = vpop.trf.xlu1  ;;  %4133 = vmatpush3.msra.mxu1 %v4780_v4 }
  0xa8   : > { %6927 = vst [vmem:[#allocation24_spill] sm:$0xff] %v5059_v41  ;;  %v5067_v51 = vsub.f32 %v400_v23, %v5059_v41  ;;  %3886 = vmatprep.mubr.f32.mxu0 %v563_v46  ;;  %3981 = vmatprep.mubr.f32.mxu1 %v5059_v41  ;;  %v572_v53 = vsub.f32 %v5052_v6, %v6760_v47 }
  0xa9   : > { %v401_v60 = vpop.trf.xlu0  ;;  %4134 = vmatprep.subr.mxu1 %v4782_v5 }
  0xaa   : > { %v5074_v22 = vand.u32 4294901760, %v401_v60  ;;  %v573_v63 = vand.u32 4294901760, %v572_v53  ;;  %v6765_v61 = vand.u32 4294901760, %v5067_v51  ;;  %4135 = vmatpush3.msra.mxu1 %v4782_v5 }
  0xab   : > { %v5078_v54 = vpop.trf.xlu1  ;;  %4136 = vmatprep.subr.mxu1 %v4791_v8 }
  0xac   : > { %6928 = vst [vmem:[#allocation25_spill] sm:$0xff] %v5074_v22  ;;  %v5082_v23 = vsub.f32 %v401_v60, %v5074_v22  ;;  %3887 = vmatmul.mubr.f32.vlgmr.msra.gmra.mxu0 %v573_v63  ;;  %3982 = vmatmul.mubr.f32.gmra.mxu1 %v5074_v22  ;;  %v582_v46 = vsub.f32 %v5067_v51, %v6765_v61 }
  0xad   : > { %v402_v47 = vpop.trf.xlu0  ;;  %4039 = vmatpush3.msra.mxu0 %v4800_v14  ;;  %4137 = vmatpush3.msra.mxu1 %v4791_v8 }
  0xae   : > { %v5090_v53 = vand.u32 4294901760, %v402_v47  ;;  %v583_v41 = vand.u32 4294901760, %v582_v46  ;;  %v6768_v13 = vand.u32 4294901760, %v5082_v23  ;;  %4040 = vmatprep.subr.mxu0 %v4803_v15  ;;  %4138 = vmatprep.subr.mxu1 %v4793_v9 }
  0xaf   : > { %v5095_v63 = vpop.trf.xlu1  ;;  %4041 = vmatpush3.msra.mxu0 %v4803_v15  ;;  %4139 = vmatpush3.msra.mxu1 %v4793_v9 }
  0xb0   : > { %6929 = vst [vmem:[#allocation26_spill] sm:$0xff] %v5090_v53  ;;  %v5100_v60 = vsub.f32 %v402_v47, %v5090_v53  ;;  %3889 = vmatprep.mubr.f32.mxu0 %v583_v41  ;;  %3984 = vmatprep.mubr.f32.mxu1 %v5090_v53  ;;  %v592_v14 = vsub.f32 %v5082_v23, %v6768_v13  ;;  %v5293_v48 = vand.u32 4294901760, %v5095_v63 }
  0xb1   : > { %v403_v46 = vpop.trf.xlu0  ;;  %4042 = vmatprep.subr.mxu0 %v4806_v16  ;;  %4140 = vmatprep.subr.mxu1 %v4809_v17 }
  0xb2   : > { %v5108_v61 = vand.u32 4294901760, %v403_v46  ;;  %v593_v15 = vand.u32 4294901760, %v592_v14  ;;  %v6773_v22 = vand.u32 4294901760, %v5100_v60  ;;  %4043 = vmatpush3.msra.mxu0 %v4806_v16  ;;  %4141 = vmatpush3.msra.mxu1 %v4809_v17  ;;  %6944 = vst [vmem:[#allocation41_spill] sm:$0xff] %v5293_v48 }
  0xb3   : > { %v5113_v41 = vpop.trf.xlu1  ;;  %4044 = vmatprep.subr.mxu0 %v4812_v18  ;;  %4142 = vmatprep.subr.mxu1 %v4818_v20 }
  0xb4   : > { %6930 = vst [vmem:[#allocation27_spill] sm:$0xff] %v5108_v61  ;;  %v5118_v47 = vsub.f32 %v403_v46, %v5108_v61  ;;  %3890 = vmatmul.mubr.f32.gmra.mxu0 %v593_v15  ;;  %3985 = vmatmul.mubr.f32.gmra.mxu1 %v5108_v61  ;;  %v602_v14 = vsub.f32 %v5100_v60, %v6773_v22 }
  0xb5   : > { %v404_v13 = vpop.trf.xlu0  ;;  %4045 = vmatpush3.msra.mxu0 %v4812_v18  ;;  %4143 = vmatpush3.msra.mxu1 %v4818_v20 }
  0xb6   : > { %v5126_v16 = vand.u32 4294901760, %v404_v13  ;;  %v603_v53 = vand.u32 4294901760, %v602_v14  ;;  %v6774_v62 = vand.u32 4294901760, %v5118_v47  ;;  %4046 = vmatprep.subr.mxu0 %v4815_v19  ;;  %4144 = vmatprep.subr.mxu1 %v4820_v21 }
  0xb7   : > { %4047 = vmatpush3.msra.mxu0 %v4815_v19  ;;  %4145 = vmatpush3.msra.mxu1 %v4820_v21  ;;  %v5140_v15 = vpop.trf.xlu1 }
  0xb8   : > { %6931 = vst [vmem:[#allocation28_spill] sm:$0xff] %v5126_v16  ;;  %v5134_v46 = vsub.f32 %v404_v13, %v5126_v16  ;;  %3892 = vmatprep.mubr.f32.mxu0 %v603_v53  ;;  %3987 = vmatprep.mubr.f32.mxu1 %v5126_v16  ;;  %v612_v18 = vsub.f32 %v5118_v47, %v6774_v62  ;;  %v5329_v42 = vand.u32 4294901760, %v5140_v15 }
  0xb9   : > { %v405_v14 = vpop.trf.xlu0  ;;  %4048 = vmatprep.subr.mxu0 %v4835_v27  ;;  %4146 = vmatprep.subr.mxu1 %v4892_v58 }
  0xba   : > { %v6781_v19 = vand.u32 4294901760, %v5134_v46  ;;  %v5145_v22 = vand.u32 4294901760, %v405_v14  ;;  %v613_v13 = vand.u32 4294901760, %v612_v18  ;;  %4049 = vmatpush3.msra.mxu0 %v4835_v27  ;;  %4147 = vmatpush3.msra.mxu1 %v4892_v58  ;;  %6950 = vst [vmem:[#allocation47_spill] sm:$0xff] %v5329_v42 }
  0xbb   : > { %4050 = vmatprep.subr.mxu0 %v4845_v30  ;;  %4148 = vmatprep.subr.mxu1 %v4894_v59  ;;  %v5163_v56 = vpop.trf.xlu1 }
  0xbc   : > { %6932 = vst [vmem:[#allocation29_spill] sm:$0xff] %v5145_v22  ;;  %v5152_v53 = vsub.f32 %v405_v14, %v5145_v22  ;;  %3893 = vmatmul.mubr.f32.gmra.mxu0 %v613_v13  ;;  %3988 = vmatmul.mubr.f32.gmra.mxu1 %v5145_v22  ;;  %v622_v62 = vsub.f32 %v5134_v46, %v6781_v19 }
  0xbd   : > { %v406_v16 = vpop.trf.xlu0  ;;  %4051 = vmatpush3.msra.mxu0 %v4845_v30  ;;  %4149 = vmatpush3.msra.mxu1 %v4894_v59 }
  0xbe   : > { %v6782_v27 = vand.u32 4294901760, %v5152_v53  ;;  %v5161_v18 = vand.u32 4294901760, %v406_v16  ;;  %v623_v61 = vand.u32 4294901760, %v622_v62  ;;  %4052 = vmatprep.subr.mxu0 %v4856_v35  ;;  %4150 = vmatprep.subr.mxu1 %v4899_v0 }
  0xbf   : > { %4053 = vmatpush3.msra.mxu0 %v4856_v35  ;;  %4151 = vmatpush3.msra.mxu1 %v4899_v0 }
  0xc0   : > { %6933 = vst [vmem:[#allocation30_spill] sm:$0xff] %v5161_v18  ;;  %v5170_v14 = vsub.f32 %v406_v16, %v5161_v18  ;;  %3895 = vmatprep.mubr.f32.mxu0 %v623_v61  ;;  %3990 = vmatprep.mubr.f32.mxu1 %v5161_v18  ;;  %v632_v30 = vsub.f32 %v5152_v53, %v6782_v27  ;;  %v5192_v27 = vpop.trf.xlu1 }
  0xc1   : > { %v407_v62 = vpop.trf.xlu0  ;;  %4054 = vmatprep.subr.mxu0 %v4906_v7  ;;  %4152 = vmatprep.subr.mxu1 %v4901_v1 }
  0xc2   : > { %v6785_v13 = vand.u32 4294901760, %v5170_v14  ;;  %v5179_v35 = vand.u32 4294901760, %v407_v62  ;;  %v633_v19 = vand.u32 4294901760, %v632_v30  ;;  %4055 = vmatpush3.msra.mxu0 %v4906_v7  ;;  %4153 = vmatpush3.msra.mxu1 %v4901_v1 }
  0xc3   : > { %4056 = vmatprep.subr.mxu0 %v4909_v10  ;;  %4154 = vmatprep.subr.mxu1 %v4911_v11 }
  0xc4   : > { %6934 = vst [vmem:[#allocation31_spill] sm:$0xff] %v5179_v35  ;;  %v5186_v61 = vsub.f32 %v407_v62, %v5179_v35  ;;  %3896 = vmatmul.mubr.f32.gmra.mxu0 %v633_v19  ;;  %3991 = vmatmul.mubr.f32.gmra.mxu1 %v5179_v35  ;;  %v642_v16 = vsub.f32 %v5170_v14, %v6785_v13  ;;  %v5215_v22 = vpop.trf.xlu1 }
  0xc5   : > { %v408_v30 = vpop.trf.xlu0  ;;  %4057 = vmatpush3.msra.mxu0 %v4909_v10  ;;  %4155 = vmatpush3.msra.mxu1 %v4911_v11 }
  0xc6   : > { %v6790_v7 = vand.u32 4294901760, %v5186_v61  ;;  %v5197_v18 = vand.u32 4294901760, %v408_v30  ;;  %v643_v62 = vand.u32 4294901760, %v642_v16  ;;  %4058 = vmatprep.subr.mxu0 %v4919_v31  ;;  %4156 = vmatprep.subr.mxu1 %v4913_v12 }
  0xc7   : > { %4059 = vmatpush3.msra.mxu0 %v4919_v31  ;;  %4157 = vmatpush3.msra.mxu1 %v4913_v12 }
  0xc8   : > { %6935 = vst [vmem:[#allocation32_spill] sm:$0xff] %v5197_v18  ;;  %v5204_v19 = vsub.f32 %v408_v30, %v5197_v18  ;;  %3898 = vmatprep.mubr.f32.mxu0 %v643_v62  ;;  %3993 = vmatprep.mubr.f32.mxu1 %v5197_v18  ;;  %v652_v10 = vsub.f32 %v5186_v61, %v6790_v7 }
  0xc9   : > { %v409_v13 = vpop.trf.xlu0  ;;  %4060 = vmatprep.subr.mxu0 %v4923_v32  ;;  %4158 = vmatprep.subr.mxu1 %v4925_v33 }
  0xca   : > { %v6793_v16 = vand.u32 4294901760, %v5204_v19  ;;  %v5213_v31 = vand.u32 4294901760, %v409_v13  ;;  %v653_v35 = vand.u32 4294901760, %v652_v10  ;;  %4061 = vmatpush3.msra.mxu0 %v4923_v32  ;;  %4159 = vmatpush3.msra.mxu1 %v4925_v33 }
  0xcb   : > { %4062 = vmatprep.subr.mxu0 %v4936_v38  ;;  %4160 = vmatprep.subr.mxu1 %v4927_v34 }
  0xcc   : > { %6936 = vst [vmem:[#allocation33_spill] sm:$0xff] %v5213_v31  ;;  %v5222_v30 = vsub.f32 %v409_v13, %v5213_v31  ;;  %3899 = vmatmul.mubr.f32.gmra.mxu0 %v653_v35  ;;  %3994 = vmatmul.mubr.f32.gmra.mxu1 %v5213_v31  ;;  %v662_v62 = vsub.f32 %v5204_v19, %v6793_v16  ;;  %v5243_v35 = vpop.trf.xlu1 }
  0xcd   : > { %v410_v10 = vpop.trf.xlu0  ;;  %4063 = vmatpush3.msra.mxu0 %v4936_v38  ;;  %4161 = vmatpush3.msra.mxu1 %v4927_v34 }
  0xce   : > { %v6796_v32 = vand.u32 4294901760, %v5222_v30  ;;  %v5231_v7 = vand.u32 4294901760, %v410_v10  ;;  %v663_v18 = vand.u32 4294901760, %v662_v62  ;;  %4064 = vmatprep.subr.mxu0 %v4939_v39  ;;  %4314 = vmatprep.subr.mxu1 %v4778_v3 }
  0xcf   : > { %4065 = vmatpush3.msra.mxu0 %v4939_v39 }
  0xd0   : > { %6937 = vst [vmem:[#allocation34_spill] sm:$0xff] %v5231_v7  ;;  %v5237_v13 = vsub.f32 %v410_v10, %v5231_v7  ;;  %3901 = vmatprep.mubr.f32.mxu0 %v663_v18  ;;  %3996 = vmatprep.mubr.f32.mxu1 %v5231_v7  ;;  %v672_v38 = vsub.f32 %v5222_v30, %v6796_v32  ;;  %v5251_v18 = vand.u32 4294901760, %v5040_v55  ;;  %v5262_v7 = vand.u32 4294901760, %v5049_v2 }
  0xd1   : > { %v411_v16 = vpop.trf.xlu0  ;;  %4066 = vmatprep.subr.mxu0 %v4957_v49 }
  0xd2   : > { %v6803_v62 = vand.u32 4294901760, %v5237_v13  ;;  %v5247_v31 = vand.u32 4294901760, %v411_v16  ;;  %v673_v39 = vand.u32 4294901760, %v672_v38  ;;  %4067 = vmatpush3.msra.mxu0 %v4957_v49  ;;  %6939 = vst [vmem:[#allocation36_spill] sm:$0xff] %v5251_v18  ;;  %6940 = vst [vmem:[#allocation37_spill] sm:$0xff] %v5262_v7 }
  0xd3   : > { %4068 = vmatprep.subr.mxu0 %v4964_v52 }
  0xd4   : > { %6938 = vst [vmem:[#allocation35_spill] sm:$0xff] %v5247_v31  ;;  %v5255_v10 = vsub.f32 %v411_v16, %v5247_v31  ;;  %3902 = vmatmul.mubr.f32.gmra.mxu0 %v673_v39  ;;  %3997 = vmatmul.mubr.f32.gmra.mxu1 %v5247_v31  ;;  %v682_v32 = vsub.f32 %v5237_v13, %v6803_v62  ;;  %v5268_v16 = vpop.trf.xlu1  ;;  %v5276_v62 = vand.u32 4294901760, %v5063_v50 }
  0xd5   : > { %v412_v38 = vpop.trf.xlu0  ;;  %4069 = vmatpush3.msra.mxu0 %v4964_v52  ;;  %v5273_v39 = vsub.f32 %v5040_v55, %v5251_v18  ;;  %v5290_v55 = vand.u32 4294901760, %v5078_v54 }
  0xd6   : > { %v6814_v49 = vand.u32 4294901760, %v5255_v10  ;;  %v5266_v34 = vand.u32 4294901760, %v412_v38  ;;  %v683_v33 = vand.u32 4294901760, %v682_v32  ;;  %4222 = vmatprep.subr.mxu0 %v4825_v24  ;;  %6942 = vst [vmem:[#allocation39_spill] sm:$0xff] %v5276_v62  ;;  %v5287_v32 = vsub.f32 %v5049_v2, %v5262_v7 }
  0xd7   : > { %6943 = vst [vmem:[#allocation40_spill] sm:$0xff] %v5290_v55  ;;  %v5300_v11 = vsub.f32 %v5063_v50, %v5276_v62  ;;  %v5317_v50 = vand.u32 4294901760, %v5113_v41 }
  0xd8   : > { %6941 = vst [vmem:[#allocation38_spill] sm:$0xff] %v5266_v34  ;;  %v5279_v31 = vsub.f32 %v412_v38, %v5266_v34  ;;  %3904 = vmatprep.mubr.f32.mxu0 %v683_v33  ;;  %3999 = vmatprep.mubr.f32.mxu1 %v5266_v34  ;;  %v692_v52 = vsub.f32 %v5255_v10, %v6814_v49  ;;  %v5310_v1 = vpop.trf.xlu1 }
  0xd9   : > { %v413_v12 = vpop.trf.xlu0  ;;  %6946 = vst [vmem:[#allocation43_spill] sm:$0xff] %v5300_v11  ;;  %6948 = vst [vmem:[#allocation45_spill] sm:$0xff] %v5317_v50  ;;  %v6957_v36 = vand.u32 4294901760, %v5300_v11 }
  0xda   : > { %v6819_v38 = vand.u32 4294901760, %v5279_v31  ;;  %v5296_v33 = vand.u32 4294901760, %v413_v12  ;;  %v693_v34 = vand.u32 4294901760, %v692_v52  ;;  %v5314_v52 = vsub.f32 %v5078_v54, %v5290_v55 }
  0xdb   : > { %v6951_v54 = vand.u32 4294901760, %v5273_v39  ;;  %v742_v58 = vsub.f32 %v5300_v11, %v6957_v36  ;;  %v5377_v36 = vand.u32 4294901760, %v5215_v22 }
  0xdc   : > { %6945 = vst [vmem:[#allocation42_spill] sm:$0xff] %v5296_v33  ;;  %v5304_v2 = vsub.f32 %v413_v12, %v5296_v33  ;;  %3905 = vmatmul.mubr.f32.gmra.mxu0 %v693_v34  ;;  %4000 = vmatmul.mubr.f32.gmra.mxu1 %v5296_v33  ;;  %v702_v43 = vsub.f32 %v5279_v31, %v6819_v38  ;;  %6947 = vst [vmem:[#allocation44_spill] sm:$0xff] %v5314_v52  ;;  %v443_v59 = vpop.trf.xlu1 }
  0xdd   : > { %4002 = vmatprep.mubr.f32.mxu1 %v5251_v18  ;;  %v5320_v12 = vpop.trf.xlu0  ;;  %v5324_v34 = vsub.f32 %v5095_v63, %v5293_v48  ;;  %v722_v0 = vsub.f32 %v5273_v39, %v6951_v54  ;;  %v5348_v54 = vand.u32 4294901760, %v5163_v56  ;;  %v6954_v18 = vand.u32 4294901760, %v5287_v32  ;;  %6959 = vst [vmem:[#allocation52_spill] sm:$0xff] %v5377_v36 }
  0xde   : > { %v6834_v49 = vand.u32 4294901760, %v5304_v2  ;;  %v703_v38 = vand.u32 4294901760, %v702_v43  ;;  %v5341_v43 = vsub.f32 %v5113_v41, %v5317_v50  ;;  %v5356_v41 = vsub.f32 %v5140_v15, %v5329_v42 }
  0xdf   : > { %6949 = vst [vmem:[#allocation46_spill] sm:$0xff] %v5324_v34  ;;  %6953 = vst [vmem:[#allocation49_spill] sm:$0xff] %v5348_v54  ;;  %v723_v33 = vand.u32 4294901760, %v722_v0  ;;  %v5374_v0 = vsub.f32 %v5163_v56, %v5348_v54  ;;  %v743_v15 = vand.u32 4294901760, %v742_v58  ;;  %v5399_v45 = vsub.f32 %v5215_v22, %v5377_v36 }
  0xe0   : > { %3907 = vmatprep.mubr.f32.mxu0 %v703_v38  ;;  %4003 = vmatmul.mubr.f32.gmra.mxu1 %v5262_v7  ;;  %v712_v63 = vsub.f32 %v5304_v2, %v6834_v49  ;;  %6952 = vst [vmem:[#allocation48_spill] sm:$0xff] %v5341_v43  ;;  %v732_v7 = vsub.f32 %v5287_v32, %v6954_v18  ;;  %6955 = vst [vmem:[#allocation50_spill] sm:$0xff] %v5356_v41  ;;  %v6958_v18 = vand.u32 4294901760, %v5314_v52  ;;  %v444_v56 = vpop.trf.xlu1 }
  0xe1   : > { %4005 = vmatprep.mubr.f32.mxu1 %v5276_v62  ;;  %v5345_v37 = vpop.trf.xlu0  ;;  %v5359_v62 = vand.u32 4294901760, %v5192_v27  ;;  %v5402_v58 = vand.u32 4294901760, %v5268_v16 }
  0xe2   : > { %v713_v38 = vand.u32 4294901760, %v712_v63  ;;  %v752_v63 = vsub.f32 %v5314_v52, %v6958_v18  ;;  %v5387_v18 = vand.u32 4294901760, %v5243_v35 }
  0xe3   : > { %6956 = vst [vmem:[#allocation51_spill] sm:$0xff] %v5359_v62  ;;  %6964 = vst [vmem:[#allocation55_spill] sm:$0xff] %v5402_v58  ;;  %v5424_v52 = vsub.f32 %v5268_v16, %v5402_v58  ;;  %v5455_v16 = vand.u32 4294901760, %v5320_v12 }
  0xe4   : > { %3908 = vmatmul.mubr.f32.gmra.mxu0 %v713_v38  ;;  %4006 = vmatmul.mubr.f32.gmra.mxu1 %v5290_v55  ;;  %v733_v38 = vand.u32 4294901760, %v732_v7  ;;  %v5384_v55 = vsub.f32 %v5192_v27, %v5359_v62  ;;  %6962 = vst [vmem:[#allocation54_spill] sm:$0xff] %v5387_v18  ;;  %v753_v7 = vand.u32 4294901760, %v752_v63  ;;  %v5410_v63 = vand.u32 4294901760, %v5310_v1  ;;  %v445_v22 = vpop.trf.xlu1 }
  0xe5   : > { %3910 = vmatprep.mubr.f32.mxu0 %v723_v33  ;;  %4008 = vmatprep.mubr.f32.mxu1 %v5293_v48  ;;  %v5370_v49 = vpop.trf.xlu0  ;;  %v6960_v33 = vand.u32 4294901760, %v5324_v34  ;;  %6973 = vst [vmem:[#allocation61_spill] sm:$0xff] %v5455_v16 }
  0xe6   : > { %6961 = vst [vmem:[#allocation53_spill] sm:$0xff] %v5384_v55  ;;  %6965 = vst [vmem:[#allocation56_spill] sm:$0xff] %v5410_v63 }
  0xe7   : > { %v762_v48 = vsub.f32 %v5324_v34, %v6960_v33  ;;  %v6963_v33 = vand.u32 4294901760, %v5341_v43 }
  0xe8   : > { %3911 = vmatmul.mubr.f32.gmra.mxu0 %v733_v38  ;;  %4009 = vmatmul.mubr.f32.gmra.mxu1 %v5317_v50  ;;  %v5417_v50 = vand.u32 4294901760, %v443_v59 }
  0xe9   : > { %3913 = vmatprep.mubr.f32.mxu0 %v743_v15  ;;  %4011 = vmatprep.mubr.f32.mxu1 %v5329_v42  ;;  %v772_v34 = vsub.f32 %v5341_v43, %v6963_v33  ;;  %v5395_v27 = vpop.trf.xlu0  ;;  %v763_v38 = vand.u32 4294901760, %v762_v48  ;;  %v5407_v15 = vsub.f32 %v5243_v35, %v5387_v18  ;;  %v6966_v33 = vand.u32 4294901760, %v5356_v41 }
  0xea   : > { %6967 = vst [vmem:[#allocation57_spill] sm:$0xff] %v5417_v50  ;;  %v5426_v43 = vand.u32 4294901760, %v444_v56  ;;  %v5442_v11 = vsub.f32 %v443_v59, %v5417_v50 }
  0xeb   : > { %v782_v42 = vsub.f32 %v5356_v41, %v6966_v33  ;;  %v773_v48 = vand.u32 4294901760, %v772_v34  ;;  %v6969_v33 = vand.u32 4294901760, %v5374_v0 }
  0xec   : > { %3914 = vmatmul.mubr.f32.gmra.mxu0 %v753_v7  ;;  %4012 = vmatmul.mubr.f32.gmra.mxu1 %v5348_v54  ;;  %6968 = vst [vmem:[#allocation58_spill] sm:$0xff] %v5426_v43  ;;  %v6871_v54 = vand.u32 4294901760, %v5399_v45 }
  0xed   : > { %3916 = vmatprep.mubr.f32.mxu0 %v763_v38  ;;  %4014 = vmatprep.mubr.f32.mxu1 %v5359_v62  ;;  %v5420_v35 = vpop.trf.xlu0  ;;  %v792_v7 = vsub.f32 %v5374_v0, %v6969_v33  ;;  %v5434_v38 = vsub.f32 %v5310_v1, %v5410_v63  ;;  %v783_v34 = vand.u32 4294901760, %v782_v42  ;;  %v6970_v62 = vand.u32 4294901760, %v5384_v55 }
  0xee   : > { %v5445_v33 = vand.u32 4294901760, %v445_v22  ;;  %v5448_v1 = vsub.f32 %v444_v56, %v5426_v43 }
  0xef   : > { %v802_v41 = vsub.f32 %v5384_v55, %v6970_v62  ;;  %v793_v42 = vand.u32 4294901760, %v792_v7  ;;  %v812_v62 = vsub.f32 %v5399_v45, %v6871_v54  ;;  %v6978_v7 = vand.u32 4294901760, %v5434_v38 }
  0xf0   : > { %3917 = vmatmul.mubr.f32.gmra.mxu0 %v773_v48  ;;  %4015 = vmatmul.mubr.f32.gmra.mxu1 %v5377_v36  ;;  %6971 = vst [vmem:[#allocation59_spill] sm:$0xff] %v5445_v33  ;;  %6972 = vst [vmem:[#allocation60_spill] sm:$0xff] %v5448_v1  ;;  %v6874_v48 = vand.u32 4294901760, %v5424_v52  ;;  %v5463_v56 = vsub.f32 %v445_v22, %v5445_v33  ;;  %v5476_v36 = vsub.f32 %v5320_v12, %v5455_v16 }
  0xf1   : > { %3919 = vmatprep.mubr.f32.mxu0 %v783_v34  ;;  %4017 = vmatprep.mubr.f32.mxu1 %v5387_v18  ;;  %v803_v59 = vand.u32 4294901760, %v802_v41  ;;  %v6974_v34 = vand.u32 4294901760, %v5407_v15  ;;  %v467_v55 = vpop.trf.xlu0  ;;  %v5468_v41 = vand.u32 4294901760, %v5345_v37  ;;  %v813_v54 = vand.u32 4294901760, %v812_v62 }
  0xf2   : > { %6975 = vst [vmem:[#allocation62_spill] sm:$0xff] %v5463_v56  ;;  %v5479_v22 = vand.u32 4294901760, %v5370_v49  ;;  %v6979_v62 = vand.u32 4294901760, %v5442_v11 }
  0xf3   : > { %v822_v18 = vsub.f32 %v5407_v15, %v6974_v34  ;;  %6976 = vst [vmem:[#allocation63_spill] sm:$0xff] %v5468_v41  ;;  %v832_v34 = vsub.f32 %v5424_v52, %v6874_v48 }
  0xf4   : > { %3920 = vmatmul.mubr.f32.gmra.mxu0 %v793_v42  ;;  %4018 = vmatmul.mubr.f32.gmra.mxu1 %v5402_v58  ;;  %6977 = vst [vmem:[#allocation64_spill] sm:$0xff] %v5479_v22  ;;  %v852_v48 = vsub.f32 %v5442_v11, %v6979_v62  ;;  %v5495_v58 = vand.u32 4294901760, %v5395_v27  ;;  %v5503_v62 = vsub.f32 %v5370_v49, %v5479_v22  ;;  %v5506_v42 = vand.u32 4294901760, %v5420_v35 }
  0xf5   : > { %3922 = vmatprep.mubr.f32.mxu0 %v803_v59  ;;  %4020 = vmatprep.mubr.f32.mxu1 %v5410_v63  ;;  %v823_v59 = vand.u32 4294901760, %v822_v18  ;;  %v842_v63 = vsub.f32 %v5434_v38, %v6978_v7  ;;  %v468_v12 = vpop.trf.xlu0  ;;  %v5492_v18 = vsub.f32 %v5345_v37, %v5468_v41  ;;  %v6980_v7 = vand.u32 4294901760, %v5448_v1 }
  0xf6   : > { %v853_v37 = vand.u32 4294901760, %v852_v48  ;;  %v5516_v49 = vsub.f32 %v5395_v27, %v5495_v58  ;;  %v5525_v48 = vand.u32 4294901760, %v468_v12 }
  0xf8   : > { %3923 = vmatmul.mubr.f32.gmra.mxu0 %v813_v54  ;;  %4021 = vmatmul.mubr.f32.gmra.mxu1 %v5417_v50  ;;  %v833_v54 = vand.u32 4294901760, %v832_v34  ;;  %v843_v50 = vand.u32 4294901760, %v842_v63  ;;  %v6981_v34 = vand.u32 4294901760, %v5463_v56 }
  0xf9   : > { %3925 = vmatprep.mubr.f32.mxu0 %v823_v59  ;;  %4023 = vmatprep.mubr.f32.mxu1 %v5426_v43  ;;  %v862_v59 = vsub.f32 %v5448_v1, %v6980_v7  ;;  %v5518_v1 = vand.u32 4294901760, %v467_v55  ;;  %v469_v43 = vpop.trf.xlu0 }
  0xfa   : > { %v872_v7 = vsub.f32 %v5463_v56, %v6981_v34 }
  0xfb   : > { %v863_v63 = vand.u32 4294901760, %v862_v59  ;;  %v6893_v59 = vand.u32 4294901760, %v5516_v49 }
  0xfc   : > { %3926 = vmatmul.mubr.f32.gmra.mxu0 %v833_v54  ;;  %4024 = vmatmul.mubr.f32.gmra.mxu1 %v5445_v33  ;;  %v873_v27 = vand.u32 4294901760, %v872_v7  ;;  %v5534_v54 = vsub.f32 %v467_v55, %v5518_v1  ;;  %v6983_v33 = vand.u32 4294901760, %v5492_v18 }
  0xfd   : > { %3928 = vmatprep.mubr.f32.mxu0 %v843_v50  ;;  %4026 = vmatprep.mubr.f32.mxu1 %v5455_v16  ;;  %v5523_v50 = vsub.f32 %v5420_v35, %v5506_v42  ;;  %v6982_v16 = vand.u32 4294901760, %v5476_v36  ;;  %v5536_v35 = vand.u32 4294901760, %v469_v43 }
  0xfe   : > { %v892_v56 = vsub.f32 %v5492_v18, %v6983_v33  ;;  %v931_v55 = vand.u32 4294901760, %v5534_v54 }
  0xff   : > { %v882_v34 = vsub.f32 %v5476_v36, %v6982_v16  ;;  %v5552_v33 = vsub.f32 %v469_v43, %v5536_v35 }
 0x100   : > { %3929 = vmatmul.mubr.f32.gmra.mxu0 %v853_v37  ;;  %4027 = vmatmul.mubr.f32.gmra.mxu1 %v5468_v41  ;;  %v5543_v37 = vsub.f32 %v468_v12, %v5525_v48  ;;  %v893_v16 = vand.u32 4294901760, %v892_v56  ;;  %v912_v12 = vsub.f32 %v5516_v49, %v6893_v59 }
 0x101   : > { %3931 = vmatprep.mubr.f32.mxu0 %v863_v63  ;;  %4029 = vmatprep.mubr.f32.mxu1 %v5479_v22  ;;  %v883_v63 = vand.u32 4294901760, %v882_v34  ;;  %v6984_v22 = vand.u32 4294901760, %v5503_v62  ;;  %v951_v43 = vand.u32 4294901760, %v5552_v33 }
 0x102   : > { %v6894_v34 = vand.u32 4294901760, %v5543_v37  ;;  %v913_v56 = vand.u32 4294901760, %v912_v12 }
 0x103   : > { %v902_v7 = vsub.f32 %v5503_v62, %v6984_v22  ;;  %v6985_v22 = vand.u32 4294901760, %v5523_v50  ;;  %v952_v12 = vsub.f32 %v5552_v33, %v951_v43 }
 0x104   : > { %3932 = vmatmul.mubr.f32.gmra.mxu0 %v873_v27  ;;  %4030 = vmatmul.mubr.f32.gmra.mxu1 %v5495_v58 }
 0x105   : > { %3934 = vmatprep.mubr.f32.mxu0 %v883_v63  ;;  %4032 = vmatprep.mubr.f32.mxu1 %v5506_v42  ;;  %v903_v41 = vand.u32 4294901760, %v902_v7  ;;  %v922_v27 = vsub.f32 %v5523_v50, %v6985_v22  ;;  %v932_v63 = vsub.f32 %v5534_v54, %v931_v55  ;;  %v942_v7 = vsub.f32 %v5543_v37, %v6894_v34 }
 0x106   : > { %v6988_v34 = vand.u32 4294901760, %v5067_v51 }
 0x107   : > { %v923_v59 = vand.u32 4294901760, %v922_v27  ;;  %v943_v22 = vand.u32 4294901760, %v942_v7  ;;  %v6987_v27 = vand.u32 4294901760, %v5052_v6  ;;  %v7025_v7 = vand.u32 4294901760, %v5399_v45 }
 0x108   : > { %3935 = vmatmul.mubr.f32.gmra.mxu0 %v893_v16  ;;  %4033 = vmatmul.mubr.f32.gmra.mxu1 %v5518_v1  ;;  %v933_v16 = vand.u32 4294901760, %v932_v63  ;;  %v6990_v63 = vand.u32 4294901760, %v5100_v60 }
 0x109   : > { %3937 = vmatprep.mubr.f32.mxu0 %v903_v41  ;;  %4035 = vmatprep.mubr.f32.mxu1 %v5525_v48  ;;  %v6986_v41 = vand.u32 4294901760, %v5043_v57 }
 0x10c   : > { %3938 = vmatmul.mubr.f32.gmra.mxu0 %v913_v56  ;;  %4036 = vmatmul.mubr.f32.gmra.mxu1 %v5536_v35  ;;  %v953_v56 = vand.u32 4294901760, %v952_v12  ;;  %v7028_v12 = vld [vmem:[#allocation10_spill] sm:$0xff] }
 0x10d   : > { %3940 = vmatprep.mubr.f32.mxu0 %v923_v59  ;;  %4162 = vmatprep.mubr.f32.mxu1 %v6986_v41  ;;  %v6989_v59 = vand.u32 4294901760, %v5082_v23  ;;  %v7026_v41 = vand.u32 4294901760, %v5407_v15 }
 0x110   : > { %3941 = vmatmul.mubr.f32.gmra.mxu0 %v933_v16  ;;  %4163 = vmatmul.mubr.f32.vlgmr.msra.gmra.mxu1 %v6987_v27  ;;  %v7027_v16 = vld [vmem:[#allocation17_spill] sm:$0xff]  ;;  %v7030_v27 = vand.u32 4294901760, %v5434_v38 }
 0x111   : > { %3943 = vmatprep.mubr.f32.mxu0 %v943_v22  ;;  %4165 = vmatprep.mubr.f32.mxu1 %v6988_v34  ;;  %v6991_v34 = vand.u32 4294901760, %v5118_v47  ;;  %v7029_v22 = vand.u32 4294901760, %v5424_v52 }
 0x112   : > { %4315 = vmatpush3.msra.mxu1 %v4778_v3  ;;  %v6992_v3 = vand.u32 4294901760, %v5134_v46 }
 0x113   : > { %4316 = vmatprep.subr.mxu1 %v4780_v4 }
 0x114   : > { %3944 = vmatmul.mubr.f32.gmra.mxu0 %v953_v56  ;;  %4166 = vmatmul.mubr.f32.gmra.mxu1 %v6989_v59  ;;  %v7031_v56 = vld [vmem:[#allocation18_spill] sm:$0xff]  ;;  %v7032_v59 = vld [vmem:[#allocation11_spill] sm:$0xff] }
 0x115   : > { %4070 = vmatprep.mubr.f32.mxu0 %v5043_v57  ;;  %4168 = vmatprep.mubr.f32.mxu1 %v6990_v63  ;;  %v7034_v63 = vld [vmem:[#allocation60_spill] sm:$0xff] }
 0x116   : > { %4317 = vmatpush3.msra.mxu1 %v4780_v4  ;;  %v6993_v4 = vand.u32 4294901760, %v5152_v53 }
 0x117   : > { %4318 = vmatprep.subr.mxu1 %v4782_v5 }
 0x118   : > { %4071 = vmatmul.mubr.f32.vlgmr.msra.gmra.mxu0 %v5052_v6  ;;  %4169 = vmatmul.mubr.f32.gmra.mxu1 %v6991_v34  ;;  %v7006_v6 = vld [vmem:[#allocation5_spill] sm:$0xff]  ;;  %v7035_v34 = vand.u32 4294901760, %v7034_v63 }
 0x119   : > { %4223 = vmatpush3.msra.mxu0 %v4825_v24  ;;  %4073 = vmatprep.mubr.f32.mxu0 %v5067_v51  ;;  %v6994_v24 = vand.u32 4294901760, %v5170_v14  ;;  %v7007_v51 = vld [vmem:[#allocation6_spill] sm:$0xff] }
 0x11a   : > { %4171 = vmatprep.mubr.f32.mxu1 %v6992_v3  ;;  %4224 = vmatprep.subr.mxu0 %v4828_v25  ;;  %v7036_v3 = vld [vmem:[#allocation19_spill] sm:$0xff] }
 0x11b   : > { %4225 = vmatpush3.msra.mxu0 %v4828_v25  ;;  %4319 = vmatpush3.msra.mxu1 %v4782_v5  ;;  %v6995_v5 = vand.u32 4294901760, %v5186_v61  ;;  %v6996_v25 = vand.u32 4294901760, %v5204_v19 }
 0x11c   : > { %4074 = vmatmul.mubr.f32.gmra.mxu0 %v5082_v23  ;;  %4172 = vmatmul.mubr.f32.gmra.mxu1 %v6993_v4  ;;  %v7010_v23 = vld [vmem:[#allocation46_spill] sm:$0xff]  ;;  %v7037_v4 = vld [vmem:[#allocation12_spill] sm:$0xff] }
 0x11d   : > { %4076 = vmatprep.mubr.f32.mxu0 %v5100_v60  ;;  %4174 = vmatprep.mubr.f32.mxu1 %v6994_v24  ;;  %v7011_v60 = vand.u32 4294901760, %v7010_v23  ;;  %v7038_v24 = vld [vmem:[#allocation62_spill] sm:$0xff] }
 0x11e   : > { %4226 = vmatprep.subr.mxu0 %v4831_v26  ;;  %4320 = vmatprep.subr.mxu1 %v4791_v8 }
 0x11f   : > { %4227 = vmatpush3.msra.mxu0 %v4831_v26  ;;  %4321 = vmatpush3.msra.mxu1 %v4791_v8  ;;  %v6997_v8 = vand.u32 4294901760, %v5222_v30  ;;  %v6998_v26 = vand.u32 4294901760, %v5237_v13 }
 0x120   : > { %4077 = vmatmul.mubr.f32.gmra.mxu0 %v5118_v47  ;;  %4175 = vmatmul.mubr.f32.gmra.mxu1 %v6995_v5  ;;  %v7012_v47 = vld [vmem:[#allocation14_spill] sm:$0xff]  ;;  %v7041_v5 = vld [vmem:[#allocation20_spill] sm:$0xff] }
 0x121   : > { %4079 = vmatprep.mubr.f32.mxu0 %v5134_v46  ;;  %4177 = vmatprep.mubr.f32.mxu1 %v6996_v25  ;;  %v7013_v46 = vld [vmem:[#allocation7_spill] sm:$0xff]  ;;  %v7042_v25 = vld [vmem:[#allocation13_spill] sm:$0xff] }
 0x122   : > { %4228 = vmatprep.subr.mxu0 %v4838_v28  ;;  %4322 = vmatprep.subr.mxu1 %v4793_v9 }
 0x123   : > { %4229 = vmatpush3.msra.mxu0 %v4838_v28  ;;  %4323 = vmatpush3.msra.mxu1 %v4793_v9  ;;  %v6999_v9 = vand.u32 4294901760, %v5255_v10  ;;  %v7000_v28 = vand.u32 4294901760, %v5279_v31 }
 0x124   : > { %4080 = vmatmul.mubr.f32.gmra.mxu0 %v5152_v53  ;;  %4178 = vmatmul.mubr.f32.gmra.mxu1 %v6997_v8  ;;  %v7014_v53 = vld [vmem:[#allocation48_spill] sm:$0xff]  ;;  %v7045_v8 = vld [vmem:[#allocation21_spill] sm:$0xff] }
 0x125   : > { %4082 = vmatprep.mubr.f32.mxu0 %v5170_v14  ;;  %4180 = vmatprep.mubr.f32.mxu1 %v6998_v26  ;;  %v7015_v14 = vand.u32 4294901760, %v7014_v53  ;;  %v7046_v26 = vand.u32 4294901760, %v5516_v49 }
 0x126   : > { %4230 = vmatprep.subr.mxu0 %v4841_v29  ;;  %4324 = vmatprep.subr.mxu1 %v4809_v17 }
 0x127   : > { %4231 = vmatpush3.msra.mxu0 %v4841_v29  ;;  %4325 = vmatpush3.msra.mxu1 %v4809_v17  ;;  %v7001_v17 = vand.u32 4294901760, %v5304_v2  ;;  %v7002_v29 = vand.u32 4294901760, %v5273_v39 }
 0x128   : > { %4083 = vmatmul.mubr.f32.gmra.mxu0 %v5186_v61  ;;  %4181 = vmatmul.mubr.f32.gmra.mxu1 %v6999_v9  ;;  %v7016_v61 = vld [vmem:[#allocation50_spill] sm:$0xff]  ;;  %v7048_v9 = vand.u32 4294901760, %v5543_v37 }
 0x129   : > { %4085 = vmatprep.mubr.f32.mxu0 %v5204_v19  ;;  %4183 = vmatprep.mubr.f32.mxu1 %v7000_v28  ;;  %v7017_v19 = vand.u32 4294901760, %v7016_v61  ;;  %v7056_v28 = vld [vmem:[#allocation29_spill] sm:$0xff] }
 0x12a   : > { %4232 = vmatprep.subr.mxu0 %v4863_v40  ;;  %4326 = vmatprep.subr.mxu1 %v4818_v20 }
 0x12b   : > { %4233 = vmatpush3.msra.mxu0 %v4863_v40  ;;  %4327 = vmatpush3.msra.mxu1 %v4818_v20  ;;  %v7003_v20 = vand.u32 4294901760, %v5287_v32  ;;  %v7004_v40 = vld [vmem:[#allocation43_spill] sm:$0xff] }
 0x12c   : > { %4086 = vmatmul.mubr.f32.gmra.mxu0 %v5222_v30  ;;  %4184 = vmatmul.mubr.f32.gmra.mxu1 %v7001_v17  ;;  %v7005_v57 = vand.u32 4294901760, %v7004_v40  ;;  %v7019_v30 = vld [vmem:[#allocation8_spill] sm:$0xff] }
 0x12d   : > { %4088 = vmatprep.mubr.f32.mxu0 %v5237_v13  ;;  %4186 = vmatprep.mubr.f32.mxu1 %v7002_v29  ;;  %v7020_v13 = vand.u32 4294901760, %v5374_v0  ;;  %v7057_v29 = vld [vmem:[#allocation30_spill] sm:$0xff] }
 0x12e   : > { %4234 = vmatprep.subr.mxu0 %v4871_v44  ;;  %4328 = vmatprep.subr.mxu1 %v4820_v21 }
 0x12f   : > { %4235 = vmatpush3.msra.mxu0 %v4871_v44  ;;  %4329 = vmatpush3.msra.mxu1 %v4820_v21  ;;  %v7008_v21 = vld [vmem:[#allocation44_spill] sm:$0xff] }
 0x130   : > { %4089 = vmatmul.mubr.f32.gmra.mxu0 %v5255_v10  ;;  %4187 = vmatmul.mubr.f32.gmra.mxu1 %v7003_v20  ;;  %v7009_v44 = vand.u32 4294901760, %v7008_v21  ;;  %v7021_v10 = vld [vmem:[#allocation53_spill] sm:$0xff] }
 0x131   : > { %4091 = vmatprep.mubr.f32.mxu0 %v5279_v31  ;;  %4189 = vmatprep.mubr.f32.mxu1 %v7005_v57  ;;  %v7018_v31 = vld [vmem:[#allocation15_spill] sm:$0xff] }
 0x132   : > { %4236 = vmatprep.subr.mxu0 %v7006_v6  ;;  %4330 = vmatprep.subr.mxu1 %v7007_v51 }
 0x133   : > { %4237 = vmatpush3.msra.mxu0 %v7006_v6  ;;  %4331 = vmatpush3.msra.mxu1 %v7007_v51  ;;  %v7058_v51 = vld [vmem:[#allocation31_spill] sm:$0xff] }
 0x134   : > { %4092 = vmatmul.mubr.f32.gmra.mxu0 %v5304_v2  ;;  %4190 = vmatmul.mubr.f32.gmra.mxu1 %v7009_v44  ;;  %v7024_v2 = vld [vmem:[#allocation9_spill] sm:$0xff] }
 0x135   : > { %4094 = vmatprep.mubr.f32.mxu0 %v5273_v39  ;;  %4192 = vmatprep.mubr.f32.mxu1 %v7011_v60  ;;  %v7022_v39 = vand.u32 4294901760, %v7021_v10 }
 0x136   : > { %4238 = vmatprep.subr.mxu0 %v7012_v47  ;;  %4332 = vmatprep.subr.mxu1 %v7013_v46 }
 0x137   : > { %4239 = vmatpush3.msra.mxu0 %v7012_v47  ;;  %4333 = vmatpush3.msra.mxu1 %v7013_v46  ;;  %v7060_v47 = vld [vmem:[#allocation33_spill] sm:$0xff] }
 0x138   : > { %4095 = vmatmul.mubr.f32.gmra.mxu0 %v5287_v32  ;;  %4193 = vmatmul.mubr.f32.gmra.mxu1 %v7015_v14  ;;  %v7023_v32 = vld [vmem:[#allocation16_spill] sm:$0xff] }
 0x139   : > { %4097 = vmatprep.mubr.f32.mxu0 %v7004_v40  ;;  %4195 = vmatprep.mubr.f32.mxu1 %v7017_v19 }
 0x13a   : > { %4240 = vmatprep.subr.mxu0 %v7018_v31  ;;  %4334 = vmatprep.subr.mxu1 %v7019_v30 }
 0x13b   : > { %4241 = vmatpush3.msra.mxu0 %v7018_v31  ;;  %4335 = vmatpush3.msra.mxu1 %v7019_v30  ;;  %v7062_v30 = vld [vmem:[#allocation35_spill] sm:$0xff] }
 0x13c   : > { %4098 = vmatmul.mubr.f32.gmra.mxu0 %v7008_v21  ;;  %4196 = vmatmul.mubr.f32.gmra.mxu1 %v7020_v13  ;;  %v7059_v21 = vld [vmem:[#allocation32_spill] sm:$0xff]  ;;  %v7063_v13 = vld [vmem:[#allocation38_spill] sm:$0xff] }
 0x13d   : > { %4100 = vmatprep.mubr.f32.mxu0 %v7010_v23  ;;  %4198 = vmatprep.mubr.f32.mxu1 %v7022_v39 }
 0x13e   : > { %4242 = vmatprep.subr.mxu0 %v7023_v32  ;;  %4336 = vmatprep.subr.mxu1 %v7024_v2 }
 0x13f   : > { %4243 = vmatpush3.msra.mxu0 %v7023_v32  ;;  %4337 = vmatpush3.msra.mxu1 %v7024_v2  ;;  %v7064_v2 = vld [vmem:[#allocation42_spill] sm:$0xff] }
 0x140   : > { %4101 = vmatmul.mubr.f32.gmra.mxu0 %v7014_v53  ;;  %4199 = vmatmul.mubr.f32.gmra.mxu1 %v7025_v7  ;;  %v7061_v53 = vld [vmem:[#allocation34_spill] sm:$0xff] }
 0x141   : > { %4103 = vmatprep.mubr.f32.mxu0 %v7016_v61  ;;  %4201 = vmatprep.mubr.f32.mxu1 %v7026_v41  ;;  %v7065_v41 = vld [vmem:[#allocation36_spill] sm:$0xff] }
 0x142   : > { %4244 = vmatprep.subr.mxu0 %v7027_v16  ;;  %4338 = vmatprep.subr.mxu1 %v7028_v12 }
 0x143   : > { %4245 = vmatpush3.msra.mxu0 %v7027_v16  ;;  %4339 = vmatpush3.msra.mxu1 %v7028_v12 }
 0x144   : > { %4104 = vmatmul.mubr.f32.gmra.mxu0 %v5374_v0  ;;  %4202 = vmatmul.mubr.f32.gmra.mxu1 %v7029_v22  ;;  %v7033_v0 = vand.u32 4294901760, %v5442_v11 }
 0x145   : > { %4106 = vmatprep.mubr.f32.mxu0 %v7021_v10  ;;  %4204 = vmatprep.mubr.f32.mxu1 %v7030_v27 }
 0x146   : > { %4246 = vmatprep.subr.mxu0 %v7031_v56  ;;  %4340 = vmatprep.subr.mxu1 %v7032_v59 }
 0x147   : > { %4247 = vmatpush3.msra.mxu0 %v7031_v56  ;;  %4341 = vmatpush3.msra.mxu1 %v7032_v59  ;;  %v7066_v56 = vld [vmem:[#allocation37_spill] sm:$0xff]  ;;  %v7067_v59 = vld [vmem:[#allocation39_spill] sm:$0xff] }
 0x148   : > { %4107 = vmatmul.mubr.f32.gmra.mxu0 %v5399_v45  ;;  %4205 = vmatmul.mubr.f32.gmra.mxu1 %v7033_v0  ;;  %v7039_v45 = vand.u32 4294901760, %v7038_v24 }
 0x149   : > { %4109 = vmatprep.mubr.f32.mxu0 %v5407_v15  ;;  %4207 = vmatprep.mubr.f32.mxu1 %v7035_v34  ;;  %v7040_v15 = vand.u32 4294901760, %v5476_v36 }
 0x14a   : > { %4248 = vmatprep.subr.mxu0 %v7036_v3  ;;  %4342 = vmatprep.subr.mxu1 %v7037_v4 }
 0x14b   : > { %4249 = vmatpush3.msra.mxu0 %v7036_v3  ;;  %4343 = vmatpush3.msra.mxu1 %v7037_v4  ;;  %v7068_v3 = vld [vmem:[#allocation40_spill] sm:$0xff] }
 0x14c   : > { %4110 = vmatmul.mubr.f32.gmra.mxu0 %v5424_v52  ;;  %4208 = vmatmul.mubr.f32.gmra.mxu1 %v7039_v45  ;;  %v7043_v52 = vand.u32 4294901760, %v5492_v18 }
 0x14d   : > { %4112 = vmatprep.mubr.f32.mxu0 %v5434_v38  ;;  %4210 = vmatprep.mubr.f32.mxu1 %v7040_v15  ;;  %v7044_v38 = vand.u32 4294901760, %v5503_v62 }
 0x14e   : > { %4250 = vmatprep.subr.mxu0 %v7041_v5  ;;  %4344 = vmatprep.subr.mxu1 %v7042_v25 }
 0x14f   : > { %4251 = vmatpush3.msra.mxu0 %v7041_v5  ;;  %4345 = vmatpush3.msra.mxu1 %v7042_v25 }
 0x150   : > { %4113 = vmatmul.mubr.f32.gmra.mxu0 %v5442_v11  ;;  %4211 = vmatmul.mubr.f32.gmra.mxu1 %v7043_v52  ;;  %v7047_v11 = vand.u32 4294901760, %v5523_v50  ;;  %v7070_v52 = vld [vmem:[#allocation45_spill] sm:$0xff] }
 0x151   : > { %4115 = vmatprep.mubr.f32.mxu0 %v7034_v63  ;;  %4213 = vmatprep.mubr.f32.mxu1 %v7044_v38  ;;  %v7071_v38 = vld [vmem:[#allocation47_spill] sm:$0xff] }
 0x152   : > { %4252 = vmatprep.subr.mxu0 %v7045_v8 }
 0x153   : > { %4253 = vmatpush3.msra.mxu0 %v7045_v8 }
 0x154   : > { %4116 = vmatmul.mubr.f32.gmra.mxu0 %v7038_v24  ;;  %4214 = vmatmul.mubr.f32.gmra.mxu1 %v7046_v26  ;;  %v7069_v24 = vld [vmem:[#allocation41_spill] sm:$0xff] }
 0x155   : > { %4118 = vmatprep.mubr.f32.mxu0 %v5476_v36  ;;  %4216 = vmatprep.mubr.f32.mxu1 %v7047_v11  ;;  %v7049_v36 = vld [vmem:[#allocation22_spill] sm:$0xff] }
 0x158   : > { %4119 = vmatmul.mubr.f32.gmra.mxu0 %v5492_v18  ;;  %4217 = vmatmul.mubr.f32.gmra.mxu1 %v931_v55  ;;  %v7050_v18 = vld [vmem:[#allocation23_spill] sm:$0xff]  ;;  %v7051_v55 = vld [vmem:[#allocation24_spill] sm:$0xff] }
 0x159   : > { %4121 = vmatprep.mubr.f32.mxu0 %v5503_v62  ;;  %4219 = vmatprep.mubr.f32.mxu1 %v7048_v9  ;;  %v7052_v62 = vld [vmem:[#allocation25_spill] sm:$0xff] }
 0x15a   : > { %v7072_v9 = vld [vmem:[#allocation49_spill] sm:$0xff] }
 0x15c   : > { %4122 = vmatmul.mubr.f32.gmra.mxu0 %v5516_v49  ;;  %4220 = vmatmul.mubr.f32.gmra.mxu1 %v951_v43  ;;  %v7053_v49 = vld [vmem:[#allocation26_spill] sm:$0xff] }
 0x15d   : > { %4124 = vmatprep.mubr.f32.mxu0 %v5523_v50  ;;  %4346 = vmatprep.mubr.f32.mxu1 %v7049_v36  ;;  %v7055_v50 = vld [vmem:[#allocation28_spill] sm:$0xff] }
 0x160   : > { %4125 = vmatmul.mubr.f32.gmra.mxu0 %v5534_v54  ;;  %4347 = vmatmul.mubr.f32.vlgmr.msra.gmra.mxu1 %v7050_v18  ;;  %v7054_v54 = vld [vmem:[#allocation27_spill] sm:$0xff] }
 0x161   : > { %4127 = vmatprep.mubr.f32.mxu0 %v5543_v37  ;;  %4349 = vmatprep.mubr.f32.mxu1 %v7051_v55  ;;  %v5770_v37 = vld [vmem:[%s309_s16] ss:$0 sm:$0xff] }
 0x164   : > { %4128 = vmatmul.mubr.f32.gmra.mxu0 %v5552_v33  ;;  %4350 = vmatmul.mubr.f32.gmra.mxu1 %v7052_v62  ;;  %v3980_v33 = vpop.f32.mrf.mxu1 }
 0x165   : > { %4254 = vmatprep.mubr.f32.mxu0 %v7049_v36  ;;  %4352 = vmatprep.mubr.f32.mxu1 %v7053_v49 }
 0x166   : > { %v1106_v6 = vpop.f32.mrf.mxu1 }
 0x168   : > { %4255 = vmatmul.mubr.f32.vlgmr.msra.gmra.mxu0 %v7050_v18  ;;  %4353 = vmatmul.mubr.f32.gmra.mxu1 %v7054_v54  ;;  %v7073_v18 = vld [vmem:[#allocation51_spill] sm:$0xff] }
 0x169   : > { %4257 = vmatprep.mubr.f32.mxu0 %v7051_v55  ;;  %4355 = vmatprep.mubr.f32.mxu1 %v7055_v50 }
 0x16c   : > { %v3888_v43 = vpop.f32.mrf.mxu0  ;;  %4258 = vmatmul.mubr.f32.gmra.mxu0 %v7052_v62  ;;  %4356 = vmatmul.mubr.f32.gmra.mxu1 %v7056_v28  ;;  %v3983_v23 = vpop.f32.mrf.mxu1 }
 0x16d   : > { %v576_v17 = vadd.f32 %v3888_v43, %v5770_v37  ;;  %4260 = vmatprep.mubr.f32.mxu0 %v7053_v49  ;;  %4358 = vmatprep.mubr.f32.mxu1 %v7057_v29  ;;  %v7075_v43 = vld [vmem:[#allocation54_spill] sm:$0xff] }
 0x16e   : > { %v565_v20 = vpop.f32.mrf.mxu0  ;;  %v1118_v31 = vpop.f32.mrf.mxu1 }
 0x16f   : > { %v566_v40 = vadd.f32 %v5770_v37, %v565_v20  ;;  %v5778_v57 = vadd.f32 %v3980_v33, %v576_v17  ;;  %v7074_v33 = vld [vmem:[#allocation52_spill] sm:$0xff]  ;;  %v7076_v20 = vld [vmem:[#allocation55_spill] sm:$0xff] }
 0x170   : > { %4261 = vmatmul.mubr.f32.gmra.mxu0 %v7054_v54  ;;  %4359 = vmatmul.mubr.f32.gmra.mxu1 %v7058_v51 }
 0x171   : > { %4263 = vmatprep.mubr.f32.mxu0 %v7055_v50  ;;  %4361 = vmatprep.mubr.f32.mxu1 %v7059_v21  ;;  %v5784_v44 = vadd.f32 %v1106_v6, %v566_v40  ;;  %v7077_v6 = vld [vmem:[#allocation56_spill] sm:$0xff] }
 0x174   : > { %v3891_v60 = vpop.f32.mrf.mxu0  ;;  %4264 = vmatmul.mubr.f32.gmra.mxu0 %v7056_v28  ;;  %4362 = vmatmul.mubr.f32.gmra.mxu1 %v7060_v47  ;;  %v3986_v39 = vpop.f32.mrf.mxu1 }
 0x175   : > { %v596_v46 = vadd.f32 %v3891_v60, %v5770_v37  ;;  %4266 = vmatprep.mubr.f32.mxu0 %v7057_v29  ;;  %4364 = vmatprep.mubr.f32.mxu1 %v7061_v53 }
 0x176   : > { %v585_v14 = vpop.f32.mrf.mxu0  ;;  %v1130_v27 = vpop.f32.mrf.mxu1 }
 0x177   : > { %v586_v61 = vadd.f32 %v5770_v37, %v585_v14  ;;  %v5792_v19 = vadd.f32 %v3983_v23, %v596_v46  ;;  %v7079_v46 = vld [vmem:[#allocation58_spill] sm:$0xff] }
 0x178   : > { %4267 = vmatmul.mubr.f32.gmra.mxu0 %v7058_v51  ;;  %4365 = vmatmul.mubr.f32.gmra.mxu1 %v7062_v30 }
 0x179   : > { %4269 = vmatprep.mubr.f32.mxu0 %v7059_v21  ;;  %4367 = vmatprep.mubr.f32.mxu1 %v7063_v13  ;;  %v5798_v10 = vadd.f32 %v1118_v31, %v586_v61 }
 0x17c   : > { %v3894_v32 = vpop.f32.mrf.mxu0  ;;  %4270 = vmatmul.mubr.f32.gmra.mxu0 %v7060_v47  ;;  %4368 = vmatmul.mubr.f32.gmra.mxu1 %v7064_v2  ;;  %v3989_v63 = vpop.f32.mrf.mxu1  ;;  %v7078_v47 = vld [vmem:[#allocation57_spill] sm:$0xff] }
 0x17d   : > { %v616_v7 = vadd.f32 %v3894_v32, %v5770_v37  ;;  %4272 = vmatprep.mubr.f32.mxu0 %v7061_v53  ;;  %4370 = vmatprep.mubr.f32.mxu1 %v7065_v41 }
 0x17e   : > { %v605_v16 = vpop.f32.mrf.mxu0  ;;  %v1142_v25 = vpop.f32.mrf.mxu1 }
 0x17f   : > { %v606_v12 = vadd.f32 %v5770_v37, %v605_v16  ;;  %v5806_v22 = vadd.f32 %v3986_v39, %v616_v7  ;;  %v7081_v39 = vld [vmem:[#allocation61_spill] sm:$0xff] }
 0x180   : > { %4273 = vmatmul.mubr.f32.gmra.mxu0 %v7062_v30  ;;  %4371 = vmatmul.mubr.f32.gmra.mxu1 %v7066_v56  ;;  %v7080_v30 = vld [vmem:[#allocation59_spill] sm:$0xff] }
 0x181   : > { %4275 = vmatprep.mubr.f32.mxu0 %v7063_v13  ;;  %4373 = vmatprep.mubr.f32.mxu1 %v7067_v59  ;;  %v5812_v0 = vadd.f32 %v1130_v27, %v606_v12  ;;  %v7082_v12 = vld [vmem:[#allocation63_spill] sm:$0xff]  ;;  %v7083_v27 = vld [vmem:[#allocation64_spill] sm:$0xff] }
 0x184   : > { %v3897_v34 = vpop.f32.mrf.mxu0  ;;  %4276 = vmatmul.mubr.f32.gmra.mxu0 %v7064_v2  ;;  %4374 = vmatmul.mubr.f32.gmra.mxu1 %v7068_v3  ;;  %v3992_v26 = vpop.f32.mrf.mxu1 }
 0x185   : > { %v636_v4 = vadd.f32 %v3897_v34, %v5770_v37  ;;  %4278 = vmatprep.mubr.f32.mxu0 %v7065_v41  ;;  %4376 = vmatprep.mubr.f32.mxu1 %v7069_v24 }
 0x186   : > { %v625_v45 = vpop.f32.mrf.mxu0  ;;  %v1154_v55 = vpop.f32.mrf.mxu1 }
 0x187   : > { %v626_v15 = vadd.f32 %v5770_v37, %v625_v45  ;;  %v5820_v5 = vadd.f32 %v3989_v63, %v636_v4 }
 0x188   : > { %4279 = vmatmul.mubr.f32.gmra.mxu0 %v7066_v56  ;;  %4377 = vmatmul.mubr.f32.gmra.mxu1 %v7070_v52 }
 0x189   : > { %4281 = vmatprep.mubr.f32.mxu0 %v7067_v59  ;;  %4379 = vmatprep.mubr.f32.mxu1 %v7071_v38  ;;  %v5826_v8 = vadd.f32 %v1142_v25, %v626_v15 }
 0x18c   : > { %v3900_v11 = vpop.f32.mrf.mxu0  ;;  %4282 = vmatmul.mubr.f32.gmra.mxu0 %v7068_v3  ;;  %4380 = vmatmul.mubr.f32.gmra.mxu1 %v7072_v9  ;;  %v3995_v50 = vpop.f32.mrf.mxu1 }
 0x18d   : > { %v656_v36 = vadd.f32 %v3900_v11, %v5770_v37  ;;  %4284 = vmatprep.mubr.f32.mxu0 %v7069_v24  ;;  %4382 = vmatprep.mubr.f32.mxu1 %v7073_v18 }
 0x18e   : > { %v645_v62 = vpop.f32.mrf.mxu0  ;;  %v1166_v17 = vpop.f32.mrf.mxu1 }
 0x18f   : > { %v646_v49 = vadd.f32 %v5770_v37, %v645_v62  ;;  %v5834_v54 = vadd.f32 %v3992_v26, %v656_v36 }
 0x190   : > { %4285 = vmatmul.mubr.f32.gmra.mxu0 %v7070_v52  ;;  %4383 = vmatmul.mubr.f32.gmra.mxu1 %v7074_v33 }
 0x191   : > { %4287 = vmatprep.mubr.f32.mxu0 %v7071_v38  ;;  %4385 = vmatprep.mubr.f32.mxu1 %v7075_v43  ;;  %v5840_v28 = vadd.f32 %v1154_v55, %v646_v49 }
 0x194   : > { %v3903_v29 = vpop.f32.mrf.mxu0  ;;  %4288 = vmatmul.mubr.f32.gmra.mxu0 %v7072_v9  ;;  %4386 = vmatmul.mubr.f32.gmra.mxu1 %v7076_v20  ;;  %v3998_v51 = vpop.f32.mrf.mxu1 }
 0x195   : > { %v676_v40 = vadd.f32 %v3903_v29, %v5770_v37  ;;  %4290 = vmatprep.mubr.f32.mxu0 %v7073_v18  ;;  %4388 = vmatprep.mubr.f32.mxu1 %v7077_v6 }
 0x196   : > { %v665_v21 = vpop.f32.mrf.mxu0  ;;  %v1178_v14 = vpop.f32.mrf.mxu1 }
 0x197   : > { %v666_v23 = vadd.f32 %v5770_v37, %v665_v21  ;;  %v5848_v60 = vadd.f32 %v3995_v50, %v676_v40 }
 0x198   : > { %4291 = vmatmul.mubr.f32.gmra.mxu0 %v7074_v33  ;;  %4389 = vmatmul.mubr.f32.gmra.mxu1 %v7078_v47 }
 0x199   : > { %4293 = vmatprep.mubr.f32.mxu0 %v7075_v43  ;;  %4391 = vmatprep.mubr.f32.mxu1 %v7079_v46  ;;  %v5854_v53 = vadd.f32 %v1166_v17, %v666_v23 }
 0x19c   : > { %v3906_v61 = vpop.f32.mrf.mxu0  ;;  %v4001_v31 = vpop.f32.mrf.mxu1  ;;  %4294 = vmatmul.mubr.f32.gmra.mxu0 %v7076_v20  ;;  %4392 = vmatmul.mubr.f32.gmra.mxu1 %v7080_v30 }
 0x19d   : > { %v696_v13 = vadd.f32 %v3906_v61, %v5770_v37  ;;  %4296 = vmatprep.mubr.f32.mxu0 %v7077_v6  ;;  %4394 = vmatprep.mubr.f32.mxu1 %v7081_v39 }
 0x19e   : > { %v685_v32 = vpop.f32.mrf.mxu0  ;;  %v1190_v2 = vpop.f32.mrf.mxu1 }
 0x19f   : > { %v686_v7 = vadd.f32 %v5770_v37, %v685_v32  ;;  %v5862_v41 = vadd.f32 %v3998_v51, %v696_v13 }
 0x1a0   : > { %v4004_v16 = vpop.f32.mrf.mxu1  ;;  %4297 = vmatmul.mubr.f32.gmra.mxu0 %v7078_v47  ;;  %4395 = vmatmul.mubr.f32.gmra.mxu1 %v7082_v12 }
 0x1a1   : > { %4299 = vmatprep.mubr.f32.mxu0 %v7079_v46  ;;  %4397 = vmatprep.mubr.f32.mxu1 %v7083_v27  ;;  %v5868_v56 = vadd.f32 %v1178_v14, %v686_v7 }
 0x1a2   : > { %v1202_v59 = vpop.f32.mrf.mxu1 }
 0x1a4   : > { %v3909_v63 = vpop.f32.mrf.mxu0  ;;  %v4007_v34 = vpop.f32.mrf.mxu1  ;;  %4300 = vmatmul.mubr.f32.gmra.mxu0 %v7080_v30  ;;  %4398 = vmatmul.mubr.f32.gmra.mxu1 %v5495_v58 }
 0x1a5   : > { %v716_v3 = vadd.f32 %v3909_v63, %v5770_v37  ;;  %4302 = vmatprep.mubr.f32.mxu0 %v7081_v39  ;;  %4400 = vmatprep.mubr.f32.mxu1 %v5506_v42 }
 0x1a6   : > { %v705_v4 = vpop.f32.mrf.mxu0  ;;  %v1214_v24 = vpop.f32.mrf.mxu1 }
 0x1a7   : > { %v706_v45 = vadd.f32 %v5770_v37, %v705_v4  ;;  %v5876_v15 = vadd.f32 %v4001_v31, %v716_v3 }
 0x1a8   : > { %v3912_v25 = vpop.f32.mrf.mxu0  ;;  %v4010_v52 = vpop.f32.mrf.mxu1  ;;  %4303 = vmatmul.mubr.f32.gmra.mxu0 %v7082_v12  ;;  %4401 = vmatmul.mubr.f32.gmra.mxu1 %v5518_v1 }
 0x1a9   : > { %v736_v38 = vadd.f32 %v3912_v25, %v5770_v37  ;;  %4305 = vmatprep.mubr.f32.mxu0 %v7083_v27  ;;  %4403 = vmatprep.mubr.f32.mxu1 %v5525_v48  ;;  %v5883_v26 = vadd.f32 %v1190_v2, %v706_v45 }
 0x1aa   : > { %v725_v11 = vpop.f32.mrf.mxu0  ;;  %v1226_v9 = vpop.f32.mrf.mxu1 }
 0x1ab   : > { %v726_v36 = vadd.f32 %v5770_v37, %v725_v11  ;;  %v5886_v18 = vadd.f32 %v4004_v16, %v736_v38 }
 0x1ac   : > { %v3915_v55 = vpop.f32.mrf.mxu0  ;;  %v4013_v62 = vpop.f32.mrf.mxu1  ;;  %4306 = vmatmul.mubr.f32.gmra.mxu0 %v5495_v58  ;;  %4404 = vmatmul.mubr.f32.gmra.mxu1 %v5536_v35 }
 0x1ad   : > { %v756_v49 = vadd.f32 %v3915_v55, %v5770_v37  ;;  %4308 = vmatprep.mubr.f32.mxu0 %v5506_v42  ;;  %v5892_v50 = vadd.f32 %v1202_v59, %v726_v36 }
 0x1ae   : > { %v745_v33 = vpop.f32.mrf.mxu0  ;;  %v1238_v43 = vpop.f32.mrf.mxu1 }
 0x1af   : > { %v746_v17 = vadd.f32 %v5770_v37, %v745_v33  ;;  %v5895_v29 = vadd.f32 %v4007_v34, %v756_v49 }
 0x1b0   : > { %v3918_v20 = vpop.f32.mrf.mxu0  ;;  %v4016_v40 = vpop.f32.mrf.mxu1  ;;  %4309 = vmatmul.mubr.f32.gmra.mxu0 %v5518_v1 }
 0x1b1   : > { %v776_v58 = vadd.f32 %v3918_v20, %v5770_v37  ;;  %4311 = vmatprep.mubr.f32.mxu0 %v5525_v48  ;;  %v5900_v6 = vadd.f32 %v1214_v24, %v746_v17 }
 0x1b2   : > { %v765_v51 = vpop.f32.mrf.mxu0  ;;  %v1250_v42 = vpop.f32.mrf.mxu1 }
 0x1b3   : > { %v766_v21 = vadd.f32 %v5770_v37, %v765_v51  ;;  %v5903_v23 = vadd.f32 %v4010_v52, %v776_v58 }
 0x1b4   : > { %v3921_v47 = vpop.f32.mrf.mxu0  ;;  %v4019_v46 = vpop.f32.mrf.mxu1  ;;  %4312 = vmatmul.mubr.f32.gmra.mxu0 %v5536_v35 }
 0x1b5   : > { %v796_v14 = vadd.f32 %v3921_v47, %v5770_v37  ;;  %v5907_v61 = vadd.f32 %v1226_v9, %v766_v21 }
 0x1b6   : > { %v785_v1 = vpop.f32.mrf.mxu0  ;;  %v1262_v31 = vpop.f32.mrf.mxu1 }
 0x1b7   : > { %v786_v48 = vadd.f32 %v5770_v37, %v785_v1  ;;  %v5910_v30 = vadd.f32 %v4013_v62, %v796_v14 }
 0x1b8   : > { %v3924_v13 = vpop.f32.mrf.mxu0  ;;  %v4022_v39 = vpop.f32.mrf.mxu1 }
 0x1b9   : > { %v816_v32 = vadd.f32 %v3924_v13, %v5770_v37  ;;  %v5913_v2 = vadd.f32 %v1238_v43, %v786_v48 }
 0x1ba   : > { %v805_v7 = vpop.f32.mrf.mxu0  ;;  %v1274_v16 = vpop.f32.mrf.mxu1 }
 0x1bb   : > { %v806_v35 = vadd.f32 %v5770_v37, %v805_v7  ;;  %v5916_v12 = vadd.f32 %v4016_v40, %v816_v32 }
 0x1bc   : > { %v3927_v27 = vpop.f32.mrf.mxu0  ;;  %v4025_v59 = vpop.f32.mrf.mxu1 }
 0x1bd   : > { %v836_v63 = vadd.f32 %v3927_v27, %v5770_v37  ;;  %v5919_v34 = vadd.f32 %v1250_v42, %v806_v35 }
 0x1be   : > { %v825_v3 = vpop.f32.mrf.mxu0  ;;  %v1286_v4 = vpop.f32.mrf.mxu1 }
 0x1bf   : > { %v826_v24 = vadd.f32 %v5770_v37, %v825_v3  ;;  %v5922_v45 = vadd.f32 %v4019_v46, %v836_v63 }
 0x1c0   : > { %v3930_v25 = vpop.f32.mrf.mxu0  ;;  %v4028_v52 = vpop.f32.mrf.mxu1 }
 0x1c1   : > { %v856_v38 = vadd.f32 %v3930_v25, %v5770_v37  ;;  %v5925_v11 = vadd.f32 %v1262_v31, %v826_v24 }
 0x1c2   : > { %v845_v9 = vpop.f32.mrf.mxu0  ;;  %v1298_v36 = vpop.f32.mrf.mxu1 }
 0x1c3   : > { %v846_v55 = vadd.f32 %v5770_v37, %v845_v9  ;;  %v5928_v62 = vadd.f32 %v4022_v39, %v856_v38 }
 0x1c4   : > { %v3933_v49 = vpop.f32.mrf.mxu0  ;;  %v4031_v33 = vpop.f32.mrf.mxu1 }
 0x1c5   : > { %v876_v43 = vadd.f32 %v3933_v49, %v5770_v37  ;;  %v5931_v17 = vadd.f32 %v1274_v16, %v846_v55 }
 0x1c6   : > { %v865_v20 = vpop.f32.mrf.mxu0  ;;  %v1310_v40 = vpop.f32.mrf.mxu1 }
 0x1c7   : > { %v866_v58 = vadd.f32 %v5770_v37, %v865_v20  ;;  %v5934_v51 = vadd.f32 %v4025_v59, %v876_v43 }
 0x1c8   : > { %v3936_v42 = vpop.f32.mrf.mxu0  ;;  %v4034_v21 = vpop.f32.mrf.mxu1 }
 0x1c9   : > { %v896_v47 = vadd.f32 %v3936_v42, %v5770_v37  ;;  %v5937_v46 = vadd.f32 %v1286_v4, %v866_v58 }
 0x1ca   : > { %v885_v14 = vpop.f32.mrf.mxu0  ;;  %v1322_v1 = vpop.f32.mrf.mxu1 }
 0x1cb   : > { %v886_v31 = vadd.f32 %v5770_v37, %v885_v14  ;;  %v5940_v48 = vadd.f32 %v4028_v52, %v896_v47 }
 0x1cc   : > { %v3939_v13 = vpop.f32.mrf.mxu0  ;;  %v4037_v39 = vpop.f32.mrf.mxu1 }
 0x1cd   : > { %v916_v32 = vadd.f32 %v3939_v13, %v5770_v37  ;;  %v5943_v7 = vadd.f32 %v1298_v36, %v886_v31 }
 0x1ce   : > { %v905_v16 = vpop.f32.mrf.mxu0  ;;  %v1334_v35 = vpop.f32.mrf.mxu1 }
 0x1cf   : > { %v906_v27 = vadd.f32 %v5770_v37, %v905_v16  ;;  %v5946_v59 = vadd.f32 %v4031_v33, %v916_v32 }
 0x1d0   : > { %v3942_v63 = vpop.f32.mrf.mxu0  ;;  %v4164_v3 = vpop.f32.mrf.mxu1 }
 0x1d1   : > { %v936_v4 = vadd.f32 %v3942_v63, %v5770_v37  ;;  %v5949_v24 = vadd.f32 %v1310_v40, %v906_v27 }
 0x1d2   : > { %v925_v25 = vpop.f32.mrf.mxu0  ;;  %v1806_v52 = vpop.f32.mrf.mxu1 }
 0x1d3   : > { %v926_v38 = vadd.f32 %v5770_v37, %v925_v25  ;;  %v5952_v9 = vadd.f32 %v4034_v21, %v936_v4 }
 0x1d4   : > { %v3945_v36 = vpop.f32.mrf.mxu0  ;;  %v4167_v55 = vpop.f32.mrf.mxu1 }
 0x1d5   : > { %v956_v49 = vadd.f32 %v3945_v36, %v5770_v37  ;;  %v5955_v43 = vadd.f32 %v1322_v1, %v926_v38 }
 0x1d6   : > { %v945_v33 = vpop.f32.mrf.mxu0  ;;  %v1822_v20 = vpop.f32.mrf.mxu1 }
 0x1d7   : > { %v946_v58 = vadd.f32 %v5770_v37, %v945_v33  ;;  %v5958_v42 = vadd.f32 %v4037_v39, %v956_v49 }
 0x1d8   : > { %v4072_v40 = vpop.f32.mrf.mxu0  ;;  %v4170_v47 = vpop.f32.mrf.mxu1 }
 0x1d9   : > { %v1452_v14 = vadd.f32 %v4072_v40, %v5778_v57  ;;  %v5961_v31 = vadd.f32 %v1334_v35, %v946_v58 }
 0x1da   : > { %v1444_v21 = vpop.f32.mrf.mxu0  ;;  %v1838_v13 = vpop.f32.mrf.mxu1 }
 0x1db   : > { %v1445_v32 = vadd.f32 %v1444_v21, %v5784_v44  ;;  %v5964_v16 = vadd.f32 %v4164_v3, %v1452_v14 }
 0x1dc   : > { %v4075_v1 = vpop.f32.mrf.mxu0  ;;  %v4173_v27 = vpop.f32.mrf.mxu1 }
 0x1dd   : > { %v1466_v63 = vadd.f32 %v4075_v1, %v5792_v19  ;;  %v5967_v4 = vadd.f32 %v1806_v52, %v1445_v32 }
 0x1de   : > { %v1458_v37 = vpop.f32.mrf.mxu0  ;;  %v1854_v39 = vpop.f32.mrf.mxu1 }
 0x1df   : > { %v1459_v25 = vadd.f32 %v1458_v37, %v5798_v10  ;;  %v5970_v38 = vadd.f32 %v4167_v55, %v1466_v63 }
 0x1e0   : > { %v4078_v57 = vpop.f32.mrf.mxu0  ;;  %v4176_v35 = vpop.f32.mrf.mxu1 }
 0x1e1   : > { %v1480_v36 = vadd.f32 %v4078_v57, %v5806_v22  ;;  %v5973_v49 = vadd.f32 %v1822_v20, %v1459_v25 }
 0x1e2   : > { %v1472_v44 = vpop.f32.mrf.mxu0  ;;  %v1870_v3 = vpop.f32.mrf.mxu1 }
 0x1e3   : > { %v1473_v33 = vadd.f32 %v1472_v44, %v5812_v0  ;;  %v5976_v58 = vadd.f32 %v4170_v47, %v1480_v36 }
 0x1e4   : > { %v4081_v19 = vpop.f32.mrf.mxu0  ;;  %v4179_v52 = vpop.f32.mrf.mxu1 }
 0x1e5   : > { %v1494_v40 = vadd.f32 %v4081_v19, %v5820_v5  ;;  %v5979_v14 = vadd.f32 %v1838_v13, %v1473_v33 }
 0x1e6   : > { %v1486_v10 = vpop.f32.mrf.mxu0  ;;  %v1886_v55 = vpop.f32.mrf.mxu1 }
 0x1e7   : > { %v1487_v21 = vadd.f32 %v1486_v10, %v5826_v8  ;;  %v5982_v32 = vadd.f32 %v4173_v27, %v1494_v40 }
 0x1e8   : > { %v4084_v22 = vpop.f32.mrf.mxu0  ;;  %v4182_v20 = vpop.f32.mrf.mxu1 }
 0x1e9   : > { %v1508_v1 = vadd.f32 %v4084_v22, %v5834_v54  ;;  %v5985_v63 = vadd.f32 %v1854_v39, %v1487_v21 }
 0x1ea   : > { %v1500_v0 = vpop.f32.mrf.mxu0  ;;  %v1902_v47 = vpop.f32.mrf.mxu1 }
 0x1eb   : > { %v1501_v37 = vadd.f32 %v1500_v0, %v5840_v28  ;;  %v5988_v25 = vadd.f32 %v4176_v35, %v1508_v1 }
 0x1ec   : > { %v4087_v5 = vpop.f32.mrf.mxu0  ;;  %v4185_v13 = vpop.f32.mrf.mxu1 }
 0x1ed   : > { %v1522_v57 = vadd.f32 %v4087_v5, %v5848_v60  ;;  %v5991_v36 = vadd.f32 %v1870_v3, %v1501_v37 }
 0x1ee   : > { %v1514_v8 = vpop.f32.mrf.mxu0  ;;  %v1918_v27 = vpop.f32.mrf.mxu1 }
 0x1ef   : > { %v1515_v44 = vadd.f32 %v1514_v8, %v5854_v53  ;;  %v5994_v33 = vadd.f32 %v4179_v52, %v1522_v57 }
 0x1f0   : > { %v4090_v54 = vpop.f32.mrf.mxu0  ;;  %v4188_v39 = vpop.f32.mrf.mxu1 }
 0x1f1   : > { %v1536_v19 = vadd.f32 %v4090_v54, %v5862_v41  ;;  %v5997_v40 = vadd.f32 %v1886_v55, %v1515_v44 }
 0x1f2   : > { %v1528_v28 = vpop.f32.mrf.mxu0  ;;  %v1934_v35 = vpop.f32.mrf.mxu1 }
 0x1f3   : > { %v1529_v10 = vadd.f32 %v1528_v28, %v5868_v56  ;;  %v6000_v21 = vadd.f32 %v4182_v20, %v1536_v19 }
 0x1f4   : > { %v4093_v60 = vpop.f32.mrf.mxu0  ;;  %v4191_v3 = vpop.f32.mrf.mxu1 }
 0x1f5   : > { %v1550_v22 = vadd.f32 %v4093_v60, %v5876_v15  ;;  %v6003_v1 = vadd.f32 %v1902_v47, %v1529_v10 }
 0x1f6   : > { %v1542_v53 = vpop.f32.mrf.mxu0  ;;  %v1950_v52 = vpop.f32.mrf.mxu1 }
 0x1f7   : > { %v1543_v0 = vadd.f32 %v1542_v53, %v5883_v26  ;;  %v6006_v37 = vadd.f32 %v4185_v13, %v1550_v22 }
 0x1f8   : > { %v4096_v41 = vpop.f32.mrf.mxu0  ;;  %v4194_v55 = vpop.f32.mrf.mxu1 }
 0x1f9   : > { %v1564_v5 = vadd.f32 %v4096_v41, %v5886_v18  ;;  %v6009_v57 = vadd.f32 %v1918_v27, %v1543_v0 }
 0x1fa   : > { %v1556_v56 = vpop.f32.mrf.mxu0  ;;  %v1966_v20 = vpop.f32.mrf.mxu1 }
 0x1fb   : > { %v1557_v8 = vadd.f32 %v1556_v56, %v5892_v50  ;;  %v6012_v44 = vadd.f32 %v4188_v39, %v1564_v5 }
 0x1fc   : > { %v4099_v15 = vpop.f32.mrf.mxu0  ;;  %v4197_v47 = vpop.f32.mrf.mxu1 }
 0x1fd   : > { %v1578_v54 = vadd.f32 %v4099_v15, %v5895_v29  ;;  %v6015_v19 = vadd.f32 %v1934_v35, %v1557_v8 }
 0x1fe   : > { %v1570_v26 = vpop.f32.mrf.mxu0  ;;  %v1982_v13 = vpop.f32.mrf.mxu1 }
 0x1ff   : > { %v1571_v28 = vadd.f32 %v1570_v26, %v5900_v6  ;;  %v6018_v10 = vadd.f32 %v4191_v3, %v1578_v54 }
 0x200   : > { %v4102_v18 = vpop.f32.mrf.mxu0  ;;  %v4200_v27 = vpop.f32.mrf.mxu1 }
 0x201   : > { %v1592_v60 = vadd.f32 %v4102_v18, %v5903_v23  ;;  %v6021_v22 = vadd.f32 %v1950_v52, %v1571_v28 }
 0x202   : > { %v1584_v50 = vpop.f32.mrf.mxu0  ;;  %v1998_v39 = vpop.f32.mrf.mxu1 }
 0x203   : > { %v1585_v53 = vadd.f32 %v1584_v50, %v5907_v61  ;;  %v6024_v0 = vadd.f32 %v4194_v55, %v1592_v60 }
 0x204   : > { %v4105_v29 = vpop.f32.mrf.mxu0  ;;  %v4203_v35 = vpop.f32.mrf.mxu1 }
 0x205   : > { %v1606_v41 = vadd.f32 %v4105_v29, %v5910_v30  ;;  %v6027_v5 = vadd.f32 %v1966_v20, %v1585_v53 }
 0x206   : > { %v1598_v6 = vpop.f32.mrf.mxu0  ;;  %v2014_v3 = vpop.f32.mrf.mxu1 }
 0x207   : > { %v1599_v56 = vadd.f32 %v1598_v6, %v5913_v2  ;;  %v6030_v8 = vadd.f32 %v4197_v47, %v1606_v41 }
 0x208   : > { %v4108_v23 = vpop.f32.mrf.mxu0  ;;  %v4206_v52 = vpop.f32.mrf.mxu1 }
 0x209   : > { %v1620_v15 = vadd.f32 %v4108_v23, %v5916_v12  ;;  %v6033_v54 = vadd.f32 %v1982_v13, %v1599_v56 }
 0x20a   : > { %v1612_v61 = vpop.f32.mrf.mxu0  ;;  %v2030_v55 = vpop.f32.mrf.mxu1 }
 0x20b   : > { %v1613_v26 = vadd.f32 %v1612_v61, %v5919_v34  ;;  %v6036_v28 = vadd.f32 %v4200_v27, %v1620_v15 }
 0x20c   : > { %v4111_v30 = vpop.f32.mrf.mxu0  ;;  %v4209_v20 = vpop.f32.mrf.mxu1 }
 0x20d   : > { %v1634_v18 = vadd.f32 %v4111_v30, %v5922_v45  ;;  %v6039_v60 = vadd.f32 %v1998_v39, %v1613_v26 }
 0x20e   : > { %v1626_v2 = vpop.f32.mrf.mxu0  ;;  %v2046_v47 = vpop.f32.mrf.mxu1 }
 0x20f   : > { %v1627_v50 = vadd.f32 %v1626_v2, %v5925_v11  ;;  %v6042_v53 = vadd.f32 %v4203_v35, %v1634_v18 }
 0x210   : > { %v4114_v12 = vpop.f32.mrf.mxu0  ;;  %v4212_v13 = vpop.f32.mrf.mxu1 }
 0x211   : > { %v1648_v29 = vadd.f32 %v4114_v12, %v5928_v62  ;;  %v6045_v41 = vadd.f32 %v2014_v3, %v1627_v50 }
 0x212   : > { %v1640_v34 = vpop.f32.mrf.mxu0  ;;  %v2062_v27 = vpop.f32.mrf.mxu1 }
 0x213   : > { %v1641_v6 = vadd.f32 %v1640_v34, %v5931_v17  ;;  %v6048_v56 = vadd.f32 %v4206_v52, %v1648_v29 }
 0x214   : > { %v4117_v45 = vpop.f32.mrf.mxu0  ;;  %v4215_v39 = vpop.f32.mrf.mxu1 }
 0x215   : > { %v1662_v23 = vadd.f32 %v4117_v45, %v5934_v51  ;;  %v6051_v15 = vadd.f32 %v2030_v55, %v1641_v6 }
 0x216   : > { %v1654_v11 = vpop.f32.mrf.mxu0  ;;  %v2078_v35 = vpop.f32.mrf.mxu1 }
 0x217   : > { %v1655_v61 = vadd.f32 %v1654_v11, %v5937_v46  ;;  %v6054_v26 = vadd.f32 %v4209_v20, %v1662_v23 }
 0x218   : > { %v4120_v62 = vpop.f32.mrf.mxu0  ;;  %v4218_v3 = vpop.f32.mrf.mxu1 }
 0x219   : > { %v1676_v30 = vadd.f32 %v4120_v62, %v5940_v48  ;;  %v6057_v18 = vadd.f32 %v2046_v47, %v1655_v61 }
 0x21a   : > { %v1668_v17 = vpop.f32.mrf.mxu0  ;;  %v2094_v52 = vpop.f32.mrf.mxu1 }
 0x21b   : > { %v1669_v2 = vadd.f32 %v1668_v17, %v5943_v7  ;;  %v6060_v50 = vadd.f32 %v4212_v13, %v1676_v30 }
 0x21c   : > { %v4123_v51 = vpop.f32.mrf.mxu0  ;;  %v4221_v55 = vpop.f32.mrf.mxu1 }
 0x21d   : > { %v1690_v12 = vadd.f32 %v4123_v51, %v5946_v59  ;;  %v6063_v29 = vadd.f32 %v2062_v27, %v1669_v2 }
 0x21e   : > { %v1682_v46 = vpop.f32.mrf.mxu0  ;;  %v2110_v20 = vpop.f32.mrf.mxu1 }
 0x21f   : > { %v1683_v34 = vadd.f32 %v1682_v46, %v5949_v24  ;;  %v6066_v6 = vadd.f32 %v4215_v39, %v1690_v12 }
 0x220   : > { %v4126_v48 = vpop.f32.mrf.mxu0  ;;  %v4348_v47 = vpop.f32.mrf.mxu1 }
 0x221   : > { %v1704_v45 = vadd.f32 %v4126_v48, %v5952_v9  ;;  %v6069_v23 = vadd.f32 %v2078_v35, %v1683_v34 }
 0x222   : > { %v1696_v7 = vpop.f32.mrf.mxu0  ;;  %v2558_v13 = vpop.f32.mrf.mxu1 }
 0x223   : > { %v1697_v11 = vadd.f32 %v1696_v7, %v5955_v43  ;;  %v6072_v61 = vadd.f32 %v4218_v3, %v1704_v45 }
 0x224   : > { %v4129_v59 = vpop.f32.mrf.mxu0  ;;  %v4351_v27 = vpop.f32.mrf.mxu1 }
 0x225   : > { %v1718_v62 = vadd.f32 %v4129_v59, %v5958_v42  ;;  %v6075_v30 = vadd.f32 %v2094_v52, %v1697_v11 }
 0x226   : > { %v1710_v24 = vpop.f32.mrf.mxu0  ;;  %v2570_v39 = vpop.f32.mrf.mxu1 }
 0x227   : > { %v1711_v17 = vadd.f32 %v1710_v24, %v5961_v31  ;;  %v6078_v2 = vadd.f32 %v4221_v55, %v1718_v62 }
 0x228   : > { %v4256_v9 = vpop.f32.mrf.mxu0  ;;  %v4354_v35 = vpop.f32.mrf.mxu1 }
 0x229   : > { %v2244_v51 = vadd.f32 %v4256_v9, %v5964_v16  ;;  %v6081_v12 = vadd.f32 %v2110_v20, %v1711_v17 }
 0x22a   : > { %v2237_v43 = vpop.f32.mrf.mxu0  ;;  %v2582_v3 = vpop.f32.mrf.mxu1 }
 0x22b   : > { %v2238_v46 = vadd.f32 %v2237_v43, %v5967_v4  ;;  %v6084_v34 = vadd.f32 %v4348_v47, %v2244_v51 }
 0x22c   : > { %v4259_v42 = vpop.f32.mrf.mxu0  ;;  %v4357_v52 = vpop.f32.mrf.mxu1 }
 0x22d   : > { %7084 = vst [vmem:[#allocation43_spill] sm:$0xff] %v6084_v34  ;;  %2798 = vadd.xlane.f32.xlu1 %v6084_v34  ;;  %v2256_v55 = vadd.f32 %v4259_v42, %v5970_v38  ;;  %v6088_v45 = vadd.f32 %v2558_v13, %v2238_v46 }
 0x22e   : > { %v2249_v48 = vpop.f32.mrf.mxu0  ;;  %v2594_v31 = vpop.f32.mrf.mxu1 }
 0x22f   : > { %7085 = vst [vmem:[#allocation5_spill] sm:$0xff] %v6088_v45  ;;  %v2250_v4 = vadd.f32 %v2249_v48, %v5973_v49  ;;  %v6092_v47 = vadd.f32 %v4351_v27, %v2256_v55 }
 0x230   : > { %v4262_v7 = vpop.f32.mrf.mxu0  ;;  %v4360_v16 = vpop.f32.mrf.mxu1 }
 0x231   : > { %2796 = vadd.xlane.f32.xlu1 %v6088_v45  ;;  %7086 = vst [vmem:[#allocation6_spill] sm:$0xff] %v6092_v47  ;;  %v2268_v38 = vadd.f32 %v4262_v7, %v5976_v58  ;;  %v6096_v13 = vadd.f32 %v2570_v39, %v2250_v4 }
 0x232   : > { %v2261_v20 = vpop.f32.mrf.mxu0  ;;  %v2606_v11 = vpop.f32.mrf.mxu1 }
 0x233   : > { %7087 = vst [vmem:[#allocation44_spill] sm:$0xff] %v6096_v13  ;;  %v2262_v49 = vadd.f32 %v2261_v20, %v5979_v14  ;;  %v6103_v42 = vadd.f32 %v4354_v35, %v2268_v38 }
 0x234   : > { %v4265_v59 = vpop.f32.mrf.mxu0  ;;  %v4363_v62 = vpop.f32.mrf.mxu1 }
 0x235   : > { %2802 = vadd.xlane.f32.xlu1 %v6092_v47  ;;  %7088 = vst [vmem:[#allocation46_spill] sm:$0xff] %v6103_v42  ;;  %v2280_v4 = vadd.f32 %v4265_v59, %v5982_v32 }
 0x236   : > { %v2273_v24 = vpop.f32.mrf.mxu0  ;;  %v2618_v17 = vpop.f32.mrf.mxu1 }
 0x237   : > { %v6122_v38 = vadd.f32 %v4357_v52, %v2280_v4 }
 0x238   : > { %v4268_v9 = vpop.f32.mrf.mxu0  ;;  %v4366_v51 = vpop.f32.mrf.mxu1 }
 0x239   : > { %2800 = vadd.xlane.f32.xlu1 %v6096_v13  ;;  %v6114_v13 = vadd.f32 %v2582_v3, %v2262_v49  ;;  %7091 = vst [vmem:[#allocation48_spill] sm:$0xff] %v6122_v38  ;;  %v2292_v59 = vadd.f32 %v4268_v9, %v5988_v25 }
 0x23a   : > { %v2285_v43 = vpop.f32.mrf.mxu0  ;;  %v6099_v46 = vpop.f32.mrf.mxu1 }
 0x23b   : > { %v2286_v27 = vadd.f32 %v2285_v43, %v5991_v36  ;;  %7090 = vst [vmem:[#allocation7_spill] sm:$0xff] %v6114_v13  ;;  %v6138_v4 = vadd.f32 %v4360_v16, %v2292_v59 }
 0x23c   : > { %v4271_v48 = vpop.f32.mrf.mxu0  ;;  %v6105_v55 = vpop.f32.mrf.mxu1 }
 0x23d   : > { %2806 = vadd.xlane.f32.xlu1 %v6103_v42  ;;  %v6108_v58 = vadd.f32 %v2606_v11, %v2286_v27  ;;  %v2274_v11 = vadd.f32 %v2273_v24, %v5985_v63  ;;  %v2304_v24 = vadd.f32 %v4271_v48, %v5994_v33  ;;  %7093 = vst [vmem:[#allocation15_spill] sm:$0xff] %v6138_v4 }
 0x23e   : > { %v2297_v39 = vpop.f32.mrf.mxu0  ;;  %v6110_v7 = vpop.f32.mrf.mxu1 }
 0x23f   : > { %7089 = vst [vmem:[#allocation14_spill] sm:$0xff] %v6108_v58  ;;  %2812 = vadd.xlane.f32.xlu0 %v6108_v58  ;;  %v6130_v49 = vadd.f32 %v2594_v31, %v2274_v11  ;;  %v2298_v9 = vadd.f32 %v2297_v39, %v5997_v40  ;;  %v6148_v11 = vadd.f32 %v4363_v62, %v2304_v24 }
 0x240   : > { %v4274_v14 = vpop.f32.mrf.mxu0  ;;  %v6116_v36 = vpop.f32.mrf.mxu1 }
 0x241   : > { %2804 = vadd.xlane.f32.xlu1 %v6114_v13  ;;  %7092 = vst [vmem:[#allocation50_spill] sm:$0xff] %v6130_v49  ;;  %7094 = vst [vmem:[#allocation8_spill] sm:$0xff] %v6148_v11  ;;  %v2316_v48 = vadd.f32 %v4274_v14, %v6000_v21 }
 0x242   : > { %v2309_v35 = vpop.f32.mrf.mxu0  ;;  %v6119_v20 = vpop.f32.mrf.mxu1 }
 0x243   : > { %v2310_v24 = vadd.f32 %v2309_v35, %v6003_v1  ;;  %v6169_v21 = vadd.f32 %v4366_v51, %v2316_v48 }
 0x244   : > { %v4277_v43 = vpop.f32.mrf.mxu0  ;;  %v6124_v27 = vpop.f32.mrf.mxu1 }
 0x245   : > { %2810 = vadd.xlane.f32.xlu1 %v6122_v38 }
 0x246   : > { %v2321_v32 = vpop.f32.mrf.mxu0  ;;  %v6127_v3 = vpop.f32.mrf.mxu1 }
 0x248   : > { %v4280_v58 = vpop.f32.mrf.mxu0  ;;  %v6132_v13 = vpop.f32.mrf.mxu1 }
 0x249   : > { %2808 = vadd.xlane.f32.xlu1 %v6130_v49 }
 0x24a   : > { %v6135_v63 = vpop.f32.mrf.mxu0  ;;  %v2678_v52 = vpop.f32.mrf.mxu1 }
 0x24c   : > { %v6140_v38 = vpop.f32.mrf.mxu0  ;;  %v6142_v42 = vpop.f32.mrf.mxu1 }
 0x24d   : > { %2814 = vadd.xlane.f32.xlu1 %v6138_v4  ;;  %v6157_v4 = vadd.f32 %v2618_v17, %v2298_v9 }
 0x24e   : > { %v6145_v25 = vpop.f32.mrf.mxu0  ;;  %v2690_v31 = vpop.f32.mrf.mxu1 }
 0x250   : > { %v6150_v49 = vpop.f32.mrf.mxu0  ;;  %v6152_v47 = vpop.f32.mrf.mxu1 }
 0x251   : > { %2818 = vadd.xlane.f32.xlu1 %v6148_v11 }
 0x252   : > { %v2357_v33 = vpop.f32.mrf.mxu0  ;;  %v2702_v16 = vpop.f32.mrf.mxu1 }
 0x253   : > { %v2358_v59 = vadd.f32 %v2357_v33, %v6027_v5  ;;  %v2328_v33 = vadd.f32 %v4277_v43, %v6006_v37 }
 0x254   : > { %v6159_v45 = vpop.f32.mrf.mxu0  ;;  %v6161_v34 = vpop.f32.mrf.mxu1 }
 0x255   : > { %2816 = vadd.xlane.f32.xlu1 %v6157_v4  ;;  %v6164_v40 = vadd.f32 %v2678_v52, %v2358_v59  ;;  %v2322_v59 = vadd.f32 %v2321_v32, %v6009_v57 }
 0x256   : > { %v2369_v62 = vpop.f32.mrf.mxu0  ;;  %v2714_v39 = vpop.f32.mrf.mxu1 }
 0x257   : > { %v2370_v11 = vadd.f32 %v2369_v62, %v6033_v54  ;;  %2836 = vadd.xlane.f32.xlu0 %v6164_v40  ;;  %v6182_v54 = vadd.f32 %v6099_v46, %v2310_v24 }
 0x258   : > { %v6171_v5 = vpop.f32.mrf.mxu0  ;;  %v6173_v17 = vpop.f32.mrf.mxu1 }
 0x259   : > { %2822 = vadd.xlane.f32.xlu1 %v6169_v21  ;;  %v6176_v14 = vadd.f32 %v2690_v31, %v2370_v11 }
 0x25a   : > { %v2381_v52 = vpop.f32.mrf.mxu0  ;;  %v2726_v9 = vpop.f32.mrf.mxu1 }
 0x25b   : > { %v2382_v1 = vadd.f32 %v2381_v52, %v6039_v60  ;;  %2840 = vadd.xlane.f32.xlu0 %v6176_v14  ;;  %v6195_v60 = vadd.f32 %v6105_v55, %v2328_v33  ;;  %v2340_v52 = vadd.f32 %v4280_v58, %v6012_v44 }
 0x25c   : > { %v6184_v51 = vpop.f32.mrf.mxu0  ;;  %v6186_v35 = vpop.f32.mrf.mxu1 }
 0x25d   : > { %2820 = vadd.xlane.f32.xlu1 %v6182_v54  ;;  %v6189_v48 = vadd.f32 %v2702_v16, %v2382_v1  ;;  %v2334_v1 = vadd.f32 %v6135_v63, %v6015_v19 }
 0x25e   : > { %v2393_v31 = vpop.f32.mrf.mxu0  ;;  %v2738_v11 = vpop.f32.mrf.mxu1 }
 0x25f   : > { %v2394_v37 = vadd.f32 %v2393_v31, %v6045_v41  ;;  %2844 = vadd.xlane.f32.xlu0 %v6189_v48  ;;  %v6208_v41 = vadd.f32 %v6110_v7, %v2322_v59  ;;  %v6230_v19 = vadd.f32 %v6119_v20, %v2334_v1 }
 0x260   : > { %v6197_v46 = vpop.f32.mrf.mxu0  ;;  %v6199_v43 = vpop.f32.mrf.mxu1 }
 0x261   : > { %2826 = vadd.xlane.f32.xlu1 %v6195_v60  ;;  %v6202_v62 = vadd.f32 %v2714_v39, %v2394_v37 }
 0x262   : > { %v2405_v16 = vpop.f32.mrf.mxu0  ;;  %v2750_v24 = vpop.f32.mrf.mxu1 }
 0x263   : > { %v2406_v57 = vadd.f32 %v2405_v16, %v6051_v15  ;;  %2848 = vadd.xlane.f32.xlu0 %v6202_v62  ;;  %v6220_v15 = vadd.f32 %v6116_v36, %v2340_v52 }
 0x264   : > { %v4301_v55 = vpop.f32.mrf.mxu0  ;;  %v6210_v32 = vpop.f32.mrf.mxu1 }
 0x265   : > { %2824 = vadd.xlane.f32.xlu1 %v6208_v41  ;;  %v6213_v33 = vadd.f32 %v2726_v9, %v2406_v57  ;;  %v2352_v9 = vadd.f32 %v6140_v38, %v6018_v10 }
 0x266   : > { %v2417_v39 = vpop.f32.mrf.mxu0  ;;  %v2762_v58 = vpop.f32.mrf.mxu1 }
 0x267   : > { %v2418_v44 = vadd.f32 %v2417_v39, %v6057_v18  ;;  %2852 = vadd.xlane.f32.xlu0 %v6213_v33  ;;  %v6240_v10 = vadd.f32 %v6124_v27, %v2352_v9 }
 0x268   : > { %v4304_v7 = vpop.f32.mrf.mxu0  ;;  %v4402_v18 = vpop.f32.mrf.mxu1 }
 0x269   : > { %2830 = vadd.xlane.f32.xlu1 %v6220_v15  ;;  %v6223_v31 = vadd.f32 %v2738_v11, %v2418_v44  ;;  %v2346_v11 = vadd.f32 %v6145_v25, %v6021_v22  ;;  %v2376_v44 = vadd.f32 %v6159_v45, %v6030_v8  ;;  %v2400_v8 = vadd.f32 %v6184_v51, %v6042_v53 }
 0x26a   : > { %v2429_v59 = vpop.f32.mrf.mxu0  ;;  %v2412_v45 = vadd.f32 %v6197_v46, %v6048_v56  ;;  %v2436_v53 = vadd.f32 %v4304_v7, %v6060_v50  ;;  %v7095_v46 = vld [vmem:[#allocation43_spill] sm:$0xff]  ;;  %v7096_v7 = vld [vmem:[#allocation5_spill] sm:$0xff] }
 0x26b   : > { %v2430_v37 = vadd.f32 %v2429_v59, %v6063_v29  ;;  %2856 = vadd.xlane.f32.xlu0 %v6223_v31  ;;  %v2774_v29 = vpop.f32.mrf.mxu1  ;;  %v6250_v22 = vadd.f32 %v6127_v3, %v2346_v11  ;;  %v6269_v59 = vadd.f32 %v6142_v42, %v2376_v44 }
 0x26c   : > { %v4307_v36 = vpop.f32.mrf.mxu0  ;;  %v6286_v42 = vadd.f32 %v6173_v17, %v2412_v45 }
 0x26d   : > { %2828 = vadd.xlane.f32.xlu1 %v6230_v19  ;;  %v6233_v63 = vadd.f32 %v2750_v24, %v2430_v37  ;;  %v2364_v24 = vadd.f32 %v6150_v49, %v6024_v0  ;;  %v2388_v49 = vadd.f32 %v6171_v5, %v6036_v28  ;;  %v6281_v28 = vadd.f32 %v6161_v34, %v2400_v8 }
 0x26e   : > { %v2441_v16 = vpop.f32.mrf.mxu0  ;;  %v2448_v56 = vadd.f32 %v4307_v36, %v6066_v6  ;;  %v6296_v34 = vadd.f32 %v6199_v43, %v2436_v53  ;;  %v7097_v36 = vld [vmem:[#allocation6_spill] sm:$0xff] }
 0x26f   : > { %v2442_v52 = vadd.f32 %v2441_v16, %v6069_v23  ;;  %2860 = vadd.xlane.f32.xlu0 %v6233_v63  ;;  %v4405_v23 = vpop.f32.mrf.mxu1  ;;  %v6260_v0 = vadd.f32 %v6132_v13, %v2364_v24  ;;  %v2424_v13 = vadd.f32 %v4301_v55, %v6054_v26 }
 0x270   : > { %v4310_v20 = vpop.f32.mrf.mxu0  ;;  %v6301_v5 = vadd.f32 %v6210_v32, %v2448_v56 }
 0x271   : > { %2834 = vadd.xlane.f32.xlu1 %v6240_v10  ;;  %v6243_v38 = vadd.f32 %v2762_v58, %v2442_v52  ;;  %v2460_v26 = vadd.f32 %v4310_v20, %v6072_v61  ;;  %v7098_v20 = vld [vmem:[#allocation44_spill] sm:$0xff] }
 0x272   : > { %v2453_v57 = vpop.f32.mrf.mxu0 }
 0x273   : > { %v2454_v39 = vadd.f32 %v2453_v57, %v6075_v30  ;;  %2864 = vadd.xlane.f32.xlu0 %v6243_v38  ;;  %v2786_v30 = vpop.f32.mrf.mxu1  ;;  %v6305_v17 = vadd.f32 %v4402_v18, %v2460_v26  ;;  %v7101_v26 = vld [vmem:[#allocation48_spill] sm:$0xff] }
 0x274   : > { %v4313_v27 = vpop.f32.mrf.mxu0 }
 0x275   : > { %2832 = vadd.xlane.f32.xlu1 %v6250_v22  ;;  %v6253_v25 = vadd.f32 %v2774_v29, %v2454_v39  ;;  %v2472_v50 = vadd.f32 %v4313_v27, %v6078_v2  ;;  %v7099_v27 = vld [vmem:[#allocation46_spill] sm:$0xff] }
 0x276   : > { %v2465_v1 = vpop.f32.mrf.mxu0 }
 0x277   : > { %v2466_v58 = vadd.f32 %v2465_v1, %v6081_v12  ;;  %2868 = vadd.xlane.f32.xlu0 %v6253_v25  ;;  %v6275_v12 = vadd.f32 %v6152_v47, %v2388_v49  ;;  %v6291_v47 = vadd.f32 %v6186_v35, %v2424_v13  ;;  %v6308_v51 = vadd.f32 %v4405_v23, %v2472_v50  ;;  %v7100_v49 = vld [vmem:[#allocation7_spill] sm:$0xff] }
 0x279   : > { %2838 = vadd.xlane.f32.xlu1 %v6260_v0  ;;  %v6263_v3 = vadd.f32 %v2786_v30, %v2466_v58 }
 0x27b   : > { %2872 = vadd.xlane.f32.xlu0 %v6263_v3 }
 0x27d   : > { %2842 = vadd.xlane.f32.xlu1 %v6269_v59 }
 0x281   : > { %2846 = vadd.xlane.f32.xlu1 %v6275_v12 }
 0x285   : > { %2850 = vadd.xlane.f32.xlu1 %v6281_v28 }
 0x289   : > { %2854 = vadd.xlane.f32.xlu1 %v6286_v42 }
 0x28d   : > { %2858 = vadd.xlane.f32.xlu1 %v6291_v47 }
 0x291   : > { %2862 = vadd.xlane.f32.xlu1 %v6296_v34 }
 0x295   : > { %2866 = vadd.xlane.f32.xlu1 %v6301_v5 }
 0x299   : > { %2870 = vadd.xlane.f32.xlu1 %v6305_v17 }
 0x29d   : > { %2874 = vadd.xlane.f32.xlu1 %v6308_v51 }
 0x2b6   : > { %v2799_v6 = vpop.xlane.xlu1 %2798 }
 0x2b7   : > { %v2878_v35 = vmul.f32 0.0078125, %v2799_v6 }
 0x2b9   : > { %v6312_v43 = vsub.f32 %v7095_v46, %v2878_v35 }
 0x2ba   : > { %v2797_v61 = vpop.xlane.xlu1 %2796 }
 0x2bb   : > { %v2877_v55 = vmul.f32 0.0078125, %v2797_v61  ;;  %v2958_v32 = vmul.f32 %v6312_v43, %v6312_v43 }
 0x2bd   : > { %v6317_v2 = vsub.f32 %v7096_v7, %v2877_v55  ;;  %2999 = vadd.xlane.f32.xlu1 %v2958_v32  ;;  %v7102_v55 = vld [vmem:[#allocation50_spill] sm:$0xff] }
 0x2be   : > { %v2803_v9 = vpop.xlane.xlu1 %2802 }
 0x2bf   : > { %v2880_v37 = vmul.f32 0.0078125, %v2803_v9  ;;  %v2957_v18 = vmul.f32 %v6317_v2, %v6317_v2  ;;  %v7103_v9 = vld [vmem:[#allocation14_spill] sm:$0xff] }
 0x2c1   : > { %v6322_v16 = vsub.f32 %v7097_v36, %v2880_v37  ;;  %2997 = vadd.xlane.f32.xlu0 %v2957_v18 }
 0x2c2   : > { %v2801_v11 = vpop.xlane.xlu1 %2800 }
 0x2c3   : > { %v2879_v52 = vmul.f32 0.0078125, %v2801_v11  ;;  %v2960_v29 = vmul.f32 %v6322_v16, %v6322_v16  ;;  %v7104_v11 = vld [vmem:[#allocation15_spill] sm:$0xff] }
 0x2c5   : > { %v6327_v57 = vsub.f32 %v7098_v20, %v2879_v52  ;;  %3003 = vadd.xlane.f32.xlu1 %v2960_v29 }
 0x2c6   : > { %v2807_v24 = vpop.xlane.xlu1 %2806 }
 0x2c7   : > { %v2882_v39 = vmul.f32 0.0078125, %v2807_v24  ;;  %v2959_v23 = vmul.f32 %v6327_v57, %v6327_v57 }
 0x2c8   : > { %v2813_v56 = vpop.xlane.xlu0 %2812 }
 0x2c9   : > { %v6332_v1 = vsub.f32 %v7099_v27, %v2882_v39  ;;  %3001 = vadd.xlane.f32.xlu0 %v2959_v23  ;;  %v2885_v35 = vmul.f32 0.0078125, %v2813_v56  ;;  %v7105_v23 = vld [vmem:[#allocation8_spill] sm:$0xff] }
 0x2ca   : > { %v2805_v44 = vpop.xlane.xlu1 %2804 }
 0x2cb   : > { %v2881_v58 = vmul.f32 0.0078125, %v2805_v44  ;;  %v2962_v30 = vmul.f32 %v6332_v1, %v6332_v1  ;;  %v6350_v37 = vsub.f32 %v7103_v9, %v2885_v35 }
 0x2cd   : > { %v6337_v8 = vsub.f32 %v7100_v49, %v2881_v58  ;;  %3007 = vadd.xlane.f32.xlu1 %v2962_v30  ;;  %v2965_v39 = vmul.f32 %v6350_v37, %v6350_v37 }
 0x2ce   : > { %v2811_v45 = vpop.xlane.xlu1 %2810 }
 0x2cf   : > { %v2884_v13 = vmul.f32 0.0078125, %v2811_v45  ;;  %v2961_v53 = vmul.f32 %v6337_v8, %v6337_v8 }
 0x2d1   : > { %v6342_v50 = vsub.f32 %v7101_v26, %v2884_v13  ;;  %3005 = vadd.xlane.f32.xlu0 %v2961_v53 }
 0x2d2   : > { %v2809_v6 = vpop.xlane.xlu1 %2808 }
 0x2d3   : > { %v2883_v46 = vmul.f32 0.0078125, %v2809_v6  ;;  %v2964_v61 = vmul.f32 %v6342_v50, %v6342_v50 }
 0x2d5   : > { %v6347_v32 = vsub.f32 %v7102_v55, %v2883_v46  ;;  %3011 = vadd.xlane.f32.xlu1 %v2964_v61 }
 0x2d6   : > { %v2815_v7 = vpop.xlane.xlu1 %2814 }
 0x2d7   : > { %v2886_v18 = vmul.f32 0.0078125, %v2815_v7  ;;  %v2963_v36 = vmul.f32 %v6347_v32, %v6347_v32 }
 0x2d9   : > { %v6355_v52 = vsub.f32 %v7104_v11, %v2886_v18  ;;  %3009 = vadd.xlane.f32.xlu0 %v2963_v36 }
 0x2da   : > { %v2819_v29 = vpop.xlane.xlu1 %2818 }
 0x2db   : > { %v2888_v20 = vmul.f32 0.0078125, %v2819_v29  ;;  %v2966_v24 = vmul.f32 %v6355_v52, %v6355_v52 }
 0x2dd   : > { %v6362_v27 = vsub.f32 %v7105_v23, %v2888_v20  ;;  %3015 = vadd.xlane.f32.xlu1 %v2966_v24  ;;  %3013 = vadd.xlane.f32.xlu0 %v2965_v39 }
 0x2de   : > { %v2817_v44 = vpop.xlane.xlu1 %2816 }
 0x2df   : > { %v2887_v58 = vmul.f32 0.0078125, %v2817_v44  ;;  %v2968_v30 = vmul.f32 %v6362_v27, %v6362_v27 }
 0x2e1   : > { %v6367_v49 = vsub.f32 %v6157_v4, %v2887_v58  ;;  %3019 = vadd.xlane.f32.xlu1 %v2968_v30  ;;  %v2837_v4 = vpop.xlane.xlu0 %2836 }
 0x2e2   : > { %v2823_v45 = vpop.xlane.xlu1 %2822 }
 0x2e3   : > { %v2890_v13 = vmul.f32 0.0078125, %v2823_v45  ;;  %v2967_v53 = vmul.f32 %v6367_v49, %v6367_v49 }
 0x2e5   : > { %v6372_v56 = vsub.f32 %v6169_v21, %v2890_v13  ;;  %3017 = vadd.xlane.f32.xlu0 %v2967_v53  ;;  %v2841_v11 = vpop.xlane.xlu0 %2840 }
 0x2e6   : > { %v2821_v26 = vpop.xlane.xlu1 %2820 }
 0x2e7   : > { %v2889_v6 = vmul.f32 0.0078125, %v2821_v26  ;;  %v2970_v35 = vmul.f32 %v6372_v56, %v6372_v56 }
 0x2e9   : > { %v6377_v46 = vsub.f32 %v6182_v54, %v2889_v6  ;;  %3023 = vadd.xlane.f32.xlu1 %v2970_v35  ;;  %v2897_v6 = vmul.f32 0.0078125, %v2837_v4 }
 0x2ea   : > { %v2827_v61 = vpop.xlane.xlu1 %2826 }
 0x2eb   : > { %v2892_v55 = vmul.f32 0.0078125, %v2827_v61  ;;  %v2969_v7 = vmul.f32 %v6377_v46, %v6377_v46 }
 0x2ed   : > { %v6382_v9 = vsub.f32 %v6195_v60, %v2892_v55  ;;  %3021 = vadd.xlane.f32.xlu0 %v2969_v7  ;;  %v2845_v60 = vpop.xlane.xlu0 %2844  ;;  %v2899_v55 = vmul.f32 0.0078125, %v2841_v11 }
 0x2ee   : > { %v2825_v21 = vpop.xlane.xlu1 %2824 }
 0x2ef   : > { %v2891_v18 = vmul.f32 0.0078125, %v2825_v21  ;;  %v2972_v36 = vmul.f32 %v6382_v9, %v6382_v9 }
 0x2f1   : > { %v6387_v54 = vsub.f32 %v6208_v41, %v2891_v18  ;;  %3027 = vadd.xlane.f32.xlu1 %v2972_v36  ;;  %v2849_v53 = vpop.xlane.xlu0 %2848  ;;  %v6410_v18 = vsub.f32 %v6164_v40, %v2897_v6 }
 0x2f2   : > { %v2831_v29 = vpop.xlane.xlu1 %2830 }
 0x2f3   : > { %v2894_v20 = vmul.f32 0.0078125, %v2831_v29  ;;  %v2971_v24 = vmul.f32 %v6387_v54, %v6387_v54  ;;  %v6418_v29 = vsub.f32 %v6176_v14, %v2899_v55  ;;  %v2977_v40 = vmul.f32 %v6410_v18, %v6410_v18 }
 0x2f5   : > { %v6392_v39 = vsub.f32 %v6220_v15, %v2894_v20  ;;  %3025 = vadd.xlane.f32.xlu0 %v2971_v24  ;;  %v2853_v7 = vpop.xlane.xlu0 %2852  ;;  %v2901_v20 = vmul.f32 0.0078125, %v2845_v60  ;;  %v2979_v14 = vmul.f32 %v6418_v29, %v6418_v29  ;;  %v2903_v60 = vmul.f32 0.0078125, %v2849_v53 }
 0x2f6   : > { %v2829_v23 = vpop.xlane.xlu1 %2828 }
 0x2f7   : > { %v2893_v44 = vmul.f32 0.0078125, %v2829_v23  ;;  %v2974_v58 = vmul.f32 %v6392_v39, %v6392_v39 }
 0x2f9   : > { %v6397_v30 = vsub.f32 %v6230_v19, %v2893_v44  ;;  %3031 = vadd.xlane.f32.xlu1 %v2974_v58  ;;  %v2857_v23 = vpop.xlane.xlu0 %2856  ;;  %v6430_v58 = vsub.f32 %v6189_v48, %v2901_v20 }
 0x2fa   : > { %v2835_v41 = vpop.xlane.xlu1 %2834 }
 0x2fb   : > { %v2896_v45 = vmul.f32 0.0078125, %v2835_v41  ;;  %v2973_v13 = vmul.f32 %v6397_v30, %v6397_v30  ;;  %v2981_v53 = vmul.f32 %v6430_v58, %v6430_v58 }
 0x2fd   : > { %v6402_v15 = vsub.f32 %v6240_v10, %v2896_v45  ;;  %3029 = vadd.xlane.f32.xlu0 %v2973_v13 }
 0x2fe   : > { %v2833_v26 = vpop.xlane.xlu1 %2832 }
 0x2ff   : > { %v2895_v35 = vmul.f32 0.0078125, %v2833_v26  ;;  %v2976_v61 = vmul.f32 %v6402_v15, %v6402_v15  ;;  %v2861_v26 = vpop.xlane.xlu0 %2860 }
 0x301   : > { %v6407_v19 = vsub.f32 %v6250_v22, %v2895_v35  ;;  %3035 = vadd.xlane.f32.xlu1 %v2976_v61  ;;  %v6438_v35 = vsub.f32 %v6202_v62, %v2903_v60 }
 0x302   : > { %v2839_v21 = vpop.xlane.xlu1 %2838 }
 0x303   : > { %v2898_v36 = vmul.f32 0.0078125, %v2839_v21  ;;  %v2975_v10 = vmul.f32 %v6407_v19, %v6407_v19  ;;  %v2907_v21 = vmul.f32 0.0078125, %v2857_v23 }
 0x305   : > { %v6415_v4 = vsub.f32 %v6260_v0, %v2898_v36  ;;  %3033 = vadd.xlane.f32.xlu0 %v2975_v10  ;;  %v2983_v10 = vmul.f32 %v6438_v35, %v6438_v35 }
 0x306   : > { %v2843_v22 = vpop.xlane.xlu1 %2842 }
 0x307   : > { %v2900_v24 = vmul.f32 0.0078125, %v2843_v22  ;;  %v2978_v11 = vmul.f32 %v6415_v4, %v6415_v4  ;;  %v2865_v22 = vpop.xlane.xlu0 %2864 }
 0x309   : > { %v6425_v44 = vsub.f32 %v6269_v59, %v2900_v24  ;;  %3039 = vadd.xlane.f32.xlu1 %v2978_v11  ;;  %3037 = vadd.xlane.f32.xlu0 %v2977_v40  ;;  %v2905_v59 = vmul.f32 0.0078125, %v2853_v7  ;;  %v6460_v24 = vsub.f32 %v6223_v31, %v2907_v21  ;;  %v2909_v11 = vmul.f32 0.0078125, %v2861_v26 }
 0x30a   : > { %v2847_v0 = vpop.xlane.xlu1 %2846 }
 0x30b   : > { %v2902_v41 = vmul.f32 0.0078125, %v2847_v0  ;;  %v2980_v45 = vmul.f32 %v6425_v44, %v6425_v44 }
 0x30d   : > { %v6435_v13 = vsub.f32 %v6275_v12, %v2902_v41  ;;  %3043 = vadd.xlane.f32.xlu1 %v2980_v45  ;;  %3041 = vadd.xlane.f32.xlu0 %v2979_v14  ;;  %v6448_v12 = vsub.f32 %v6213_v33, %v2905_v59  ;;  %v2869_v14 = vpop.xlane.xlu0 %2868  ;;  %v6468_v41 = vsub.f32 %v6233_v63, %v2909_v11 }
 0x30e   : > { %v2851_v6 = vpop.xlane.xlu1 %2850  ;;  %v2987_v59 = vmul.f32 %v6460_v24, %v6460_v24 }
 0x30f   : > { %v2904_v61 = vmul.f32 0.0078125, %v2851_v6  ;;  %v2982_v48 = vmul.f32 %v6435_v13, %v6435_v13  ;;  %v2985_v33 = vmul.f32 %v6448_v12, %v6448_v12 }
 0x311   : > { %v6445_v55 = vsub.f32 %v6281_v28, %v2904_v61  ;;  %3047 = vadd.xlane.f32.xlu1 %v2982_v48  ;;  %3045 = vadd.xlane.f32.xlu0 %v2981_v53  ;;  %v2913_v61 = vmul.f32 0.0078125, %v2869_v14  ;;  %v2989_v53 = vmul.f32 %v6468_v41, %v6468_v41 }
 0x312   : > { %v2855_v7 = vpop.xlane.xlu1 %2854 }
 0x313   : > { %v2906_v36 = vmul.f32 0.0078125, %v2855_v7  ;;  %v2984_v62 = vmul.f32 %v6445_v55, %v6445_v55  ;;  %v2873_v7 = vpop.xlane.xlu0 %2872 }
 0x315   : > { %v6455_v20 = vsub.f32 %v6286_v42, %v2906_v36  ;;  %3051 = vadd.xlane.f32.xlu1 %v2984_v62  ;;  %3049 = vadd.xlane.f32.xlu0 %v2983_v10  ;;  %v2911_v42 = vmul.f32 0.0078125, %v2865_v22  ;;  %v6490_v36 = vsub.f32 %v6253_v25, %v2913_v61  ;;  %v2915_v62 = vmul.f32 0.0078125, %v2873_v7 }
 0x316   : > { %v2859_v28 = vpop.xlane.xlu1 %2858 }
 0x317   : > { %v2908_v40 = vmul.f32 0.0078125, %v2859_v28  ;;  %v2986_v23 = vmul.f32 %v6455_v20, %v6455_v20  ;;  %v2993_v25 = vmul.f32 %v6490_v36, %v6490_v36 }
 0x319   : > { %v6465_v0 = vsub.f32 %v6291_v47, %v2908_v40  ;;  %3055 = vadd.xlane.f32.xlu1 %v2986_v23  ;;  %3053 = vadd.xlane.f32.xlu0 %v2985_v33  ;;  %v6478_v47 = vsub.f32 %v6243_v38, %v2911_v42  ;;  %v6498_v33 = vsub.f32 %v6263_v3, %v2915_v62  ;;  %v6515_v62 = vld [vmem:[%s6752_s3] ss:$0 sm:$0xff] }
 0x31a   : > { %v2863_v60 = vpop.xlane.xlu1 %2862 }
 0x31b   : > { %v2910_v45 = vmul.f32 0.0078125, %v2863_v60  ;;  %v2988_v31 = vmul.f32 %v6465_v0, %v6465_v0  ;;  %v2991_v38 = vmul.f32 %v6478_v47, %v6478_v47  ;;  %v2995_v42 = vmul.f32 %v6498_v33, %v6498_v33 }
 0x31d   : > { %v6475_v26 = vsub.f32 %v6296_v34, %v2910_v45  ;;  %3059 = vadd.xlane.f32.xlu1 %v2988_v31  ;;  %3057 = vadd.xlane.f32.xlu0 %v2987_v59 }
 0x31e   : > { %v2867_v6 = vpop.xlane.xlu1 %2866 }
 0x31f   : > { %v2912_v48 = vmul.f32 0.0078125, %v2867_v6  ;;  %v2990_v63 = vmul.f32 %v6475_v26, %v6475_v26 }
 0x321   : > { %v6485_v21 = vsub.f32 %v6301_v5, %v2912_v48  ;;  %3063 = vadd.xlane.f32.xlu1 %v2990_v63  ;;  %3061 = vadd.xlane.f32.xlu0 %v2989_v53 }
 0x322   : > { %v2871_v34 = vpop.xlane.xlu1 %2870 }
 0x323   : > { %v2914_v10 = vmul.f32 0.0078125, %v2871_v34  ;;  %v2992_v22 = vmul.f32 %v6485_v21, %v6485_v21 }
 0x325   : > { %v6495_v28 = vsub.f32 %v6305_v17, %v2914_v10  ;;  %3067 = vadd.xlane.f32.xlu1 %v2992_v22  ;;  %3065 = vadd.xlane.f32.xlu0 %v2991_v38 }
 0x326   : > { %v2875_v5 = vpop.xlane.xlu1 %2874 }
 0x327   : > { %v2916_v11 = vmul.f32 0.0078125, %v2875_v5  ;;  %v2994_v40 = vmul.f32 %v6495_v28, %v6495_v28  ;;  %v6523_v5 = vld [vmem:[%s6753_s4] ss:$0 sm:$0xff] }
 0x329   : > { %v6505_v23 = vsub.f32 %v6308_v51, %v2916_v11  ;;  %3071 = vadd.xlane.f32.xlu1 %v2994_v40  ;;  %3069 = vadd.xlane.f32.xlu0 %v2993_v25 }
 0x32b   : > { %v2996_v17 = vmul.f32 %v6505_v23, %v6505_v23 }
 0x32d   : > { %3075 = vadd.xlane.f32.xlu1 %v2996_v17  ;;  %3073 = vadd.xlane.f32.xlu0 %v2995_v42 }
 0x346   : > { %v3000_v3 = vpop.xlane.xlu1 %2999 }
 0x347   : > { %v3078_v14 = vmul.f32 0.0078125, %v3000_v3 }
 0x349   : > { %v3118_v60 = vadd.f32 1e-12, %v3078_v14 }
 0x34a   : > { %v2998_v45 = vpop.xlane.xlu0 %2997 }
 0x34b   : > { %4484 = vrsqrt.f32 %v3118_v60  ;;  %v3077_v31 = vmul.f32 0.0078125, %v2998_v45 }
 0x34d   : > { %v3117_v51 = vadd.f32 1e-12, %v3077_v31 }
 0x34e   : > { %v3004_v59 = vpop.xlane.xlu1 %3003 }
 0x34f   : > { %4486 = vrsqrt.f32 %v3117_v51  ;;  %v3080_v6 = vmul.f32 0.0078125, %v3004_v59 }
 0x351   : > { %v3120_v61 = vadd.f32 1e-12, %v3080_v6 }
 0x352   : > { %v3002_v48 = vpop.xlane.xlu0 %3001 }
 0x353   : > { %4488 = vrsqrt.f32 %v3120_v61  ;;  %v3079_v63 = vmul.f32 0.0078125, %v3002_v48 }
 0x355   : > { %v3119_v53 = vadd.f32 1e-12, %v3079_v63 }
 0x356   : > { %v3008_v7 = vpop.xlane.xlu1 %3007 }
 0x357   : > { %4490 = vrsqrt.f32 %v3119_v53  ;;  %v3082_v34 = vmul.f32 0.0078125, %v3008_v7 }
 0x358   : > { %v4485_v38 = vpop.eup %4484 }
 0x359   : > { %v3198_v10 = vmul.f32 %v4485_v38, %v6312_v43  ;;  %v3122_v22 = vadd.f32 1e-12, %v3082_v34 }
 0x35a   : > { %v3006_v11 = vpop.xlane.xlu0 %3005 }
 0x35b   : > { %v3245_v40 = vmul.f32 %v6515_v62, %v3198_v10  ;;  %4492 = vrsqrt.f32 %v3122_v22  ;;  %v3081_v25 = vmul.f32 0.0078125, %v3006_v11 }
 0x35c   : > { %v4487_v17 = vpop.eup %4486 }
 0x35d   : > { %v3292_v42 = vadd.f32 %v6523_v5, %v3245_v40  ;;  %v3197_v3 = vmul.f32 %v4487_v17, %v6317_v2  ;;  %v3121_v14 = vadd.f32 1e-12, %v3081_v25 }
 0x35e   : > { %v3012_v60 = vpop.xlane.xlu1 %3011 }
 0x35f   : > { %3332 = vst [vmem:[%s6528_s9 + $0x8] sm:$0xff] %v3292_v42  ;;  %v3244_v43 = vmul.f32 %v6515_v62, %v3197_v3  ;;  %4494 = vrsqrt.f32 %v3121_v14  ;;  %v3084_v45 = vmul.f32 0.0078125, %v3012_v60 }
 0x360   : > { %v4489_v31 = vpop.eup %4488 }
 0x361   : > { %v3291_v51 = vadd.f32 %v6523_v5, %v3244_v43  ;;  %v3200_v59 = vmul.f32 %v4489_v31, %v6322_v16  ;;  %v3124_v6 = vadd.f32 1e-12, %v3084_v45 }
 0x362   : > { %v3010_v61 = vpop.xlane.xlu0 %3009 }
 0x363   : > { %3331 = vst [vmem:[%s6528_s9] sm:$0xff] %v3291_v51  ;;  %v3247_v2 = vmul.f32 %v6515_v62, %v3200_v59  ;;  %4496 = vrsqrt.f32 %v3124_v6  ;;  %v3083_v48 = vmul.f32 0.0078125, %v3010_v61 }
 0x364   : > { %v4491_v63 = vpop.eup %4490 }
 0x365   : > { %v3294_v53 = vadd.f32 %v6523_v5, %v3247_v2  ;;  %v3199_v7 = vmul.f32 %v4491_v63, %v6327_v57  ;;  %v3123_v34 = vadd.f32 1e-12, %v3083_v48 }
 0x366   : > { %v3016_v38 = vpop.xlane.xlu1 %3015  ;;  %v3014_v10 = vpop.xlane.xlu0 %3013 }
 0x367   : > { %3334 = vst [vmem:[%s6528_s9 + $0x18] sm:$0xff] %v3294_v53  ;;  %v3246_v22 = vmul.f32 %v6515_v62, %v3199_v7  ;;  %4498 = vrsqrt.f32 %v3123_v34  ;;  %v3086_v16 = vmul.f32 0.0078125, %v3016_v38  ;;  %v3085_v11 = vmul.f32 0.0078125, %v3014_v10 }
 0x368   : > { %v4493_v40 = vpop.eup %4492 }
 0x369   : > { %v3293_v25 = vadd.f32 %v6523_v5, %v3246_v22  ;;  %v3202_v17 = vmul.f32 %v4493_v40, %v6332_v1  ;;  %v3126_v42 = vadd.f32 1e-12, %v3086_v16  ;;  %v3125_v3 = vadd.f32 1e-12, %v3085_v11 }
 0x36a   : > { %v3020_v14 = vpop.xlane.xlu1 %3019 }
 0x36b   : > { %3333 = vst [vmem:[%s6528_s9 + $0x10] sm:$0xff] %v3293_v25  ;;  %v3249_v57 = vmul.f32 %v6515_v62, %v3202_v17  ;;  %4500 = vrsqrt.f32 %v3126_v42  ;;  %v3088_v60 = vmul.f32 0.0078125, %v3020_v14 }
 0x36c   : > { %v4495_v43 = vpop.eup %4494  ;;  %4502 = vrsqrt.f32 %v3125_v3 }
 0x36d   : > { %v3296_v45 = vadd.f32 %v6523_v5, %v3249_v57  ;;  %v3201_v31 = vmul.f32 %v4495_v43, %v6337_v8  ;;  %v3128_v51 = vadd.f32 1e-12, %v3088_v60 }
 0x36e   : > { %v3018_v59 = vpop.xlane.xlu0 %3017 }
 0x36f   : > { %3336 = vst [vmem:[%s6528_s9 + $0x28] sm:$0xff] %v3296_v45  ;;  %v3248_v1 = vmul.f32 %v6515_v62, %v3201_v31  ;;  %4504 = vrsqrt.f32 %v3128_v51  ;;  %v3087_v6 = vmul.f32 0.0078125, %v3018_v59 }
 0x370   : > { %v4497_v61 = vpop.eup %4496 }
 0x371   : > { %v3295_v2 = vadd.f32 %v6523_v5, %v3248_v1  ;;  %v3204_v48 = vmul.f32 %v4497_v61, %v6342_v50  ;;  %v3127_v63 = vadd.f32 1e-12, %v3087_v6 }
 0x372   : > { %v3024_v53 = vpop.xlane.xlu1 %3023 }
 0x373   : > { %3335 = vst [vmem:[%s6528_s9 + $0x20] sm:$0xff] %v3295_v2  ;;  %v3251_v7 = vmul.f32 %v6515_v62, %v3204_v48  ;;  %4506 = vrsqrt.f32 %v3127_v63  ;;  %v3090_v8 = vmul.f32 0.0078125, %v3024_v53 }
 0x374   : > { %v4499_v34 = vpop.eup %4498 }
 0x375   : > { %v3298_v38 = vadd.f32 %v6523_v5, %v3251_v7  ;;  %v3203_v10 = vmul.f32 %v4499_v34, %v6347_v32  ;;  %v3130_v22 = vadd.f32 1e-12, %v3090_v8 }
 0x376   : > { %v3022_v16 = vpop.xlane.xlu0 %3021 }
 0x377   : > { %3338 = vst [vmem:[%s6528_s9 + $0x38] sm:$0xff] %v3298_v38  ;;  %v3250_v11 = vmul.f32 %v6515_v62, %v3203_v10  ;;  %4508 = vrsqrt.f32 %v3130_v22  ;;  %v3089_v50 = vmul.f32 0.0078125, %v3022_v16 }
 0x378   : > { %v4501_v40 = vpop.eup %4500 }
 0x379   : > { %v4503_v25 = vpop.eup %4502  ;;  %v3297_v17 = vadd.f32 %v6523_v5, %v3250_v11  ;;  %v3206_v42 = vmul.f32 %v4501_v40, %v6355_v52  ;;  %v3129_v3 = vadd.f32 1e-12, %v3089_v50 }
 0x37a   : > { %v3205_v14 = vmul.f32 %v4503_v25, %v6350_v37  ;;  %v3028_v57 = vpop.xlane.xlu1 %3027 }
 0x37b   : > { %3337 = vst [vmem:[%s6528_s9 + $0x30] sm:$0xff] %v3297_v17  ;;  %v3253_v32 = vmul.f32 %v6515_v62, %v3206_v42  ;;  %4510 = vrsqrt.f32 %v3129_v3  ;;  %v3092_v60 = vmul.f32 0.0078125, %v3028_v57 }
 0x37c   : > { %v4505_v43 = vpop.eup %4504  ;;  %v3252_v45 = vmul.f32 %v6515_v62, %v3205_v14 }
 0x37d   : > { %v3300_v31 = vadd.f32 %v6523_v5, %v3253_v32  ;;  %v3208_v51 = vmul.f32 %v4505_v43, %v6362_v27  ;;  %v3132_v59 = vadd.f32 1e-12, %v3092_v60 }
 0x37e   : > { %v3299_v52 = vadd.f32 %v6523_v5, %v3252_v45  ;;  %v3026_v1 = vpop.xlane.xlu0 %3025 }
 0x37f   : > { %3340 = vst [vmem:[%s6528_s9 + $0x48] sm:$0xff] %v3300_v31  ;;  %v3255_v37 = vmul.f32 %v6515_v62, %v3208_v51  ;;  %4512 = vrsqrt.f32 %v3132_v59  ;;  %v3091_v6 = vmul.f32 0.0078125, %v3026_v1 }
 0x380   : > { %v4507_v61 = vpop.eup %4506  ;;  %3339 = vst [vmem:[%s6528_s9 + $0x40] sm:$0xff] %v3299_v52 }
 0x381   : > { %v3302_v2 = vadd.f32 %v6523_v5, %v3255_v37  ;;  %v3207_v48 = vmul.f32 %v4507_v61, %v6367_v49  ;;  %v3131_v63 = vadd.f32 1e-12, %v3091_v6 }
 0x382   : > { %v3032_v53 = vpop.xlane.xlu1 %3031 }
 0x383   : > { %3342 = vst [vmem:[%s6528_s9 + $0x58] sm:$0xff] %v3302_v2  ;;  %v3254_v27 = vmul.f32 %v6515_v62, %v3207_v48  ;;  %4514 = vrsqrt.f32 %v3131_v63  ;;  %v3094_v7 = vmul.f32 0.0078125, %v3032_v53 }
 0x384   : > { %v4509_v8 = vpop.eup %4508 }
 0x385   : > { %v3301_v34 = vadd.f32 %v6523_v5, %v3254_v27  ;;  %v3210_v38 = vmul.f32 %v4509_v8, %v6372_v56  ;;  %v3134_v10 = vadd.f32 1e-12, %v3094_v7 }
 0x386   : > { %v3030_v22 = vpop.xlane.xlu0 %3029 }
 0x387   : > { %3341 = vst [vmem:[%s6528_s9 + $0x50] sm:$0xff] %v3301_v34  ;;  %v3257_v16 = vmul.f32 %v6515_v62, %v3210_v38  ;;  %4516 = vrsqrt.f32 %v3134_v10  ;;  %v3093_v49 = vmul.f32 0.0078125, %v3030_v22 }
 0x388   : > { %v4511_v11 = vpop.eup %4510 }
 0x389   : > { %v3304_v50 = vadd.f32 %v6523_v5, %v3257_v16  ;;  %v3209_v40 = vmul.f32 %v4511_v11, %v6377_v46  ;;  %v3133_v25 = vadd.f32 1e-12, %v3093_v49 }
 0x38a   : > { %v3036_v17 = vpop.xlane.xlu1 %3035 }
 0x38b   : > { %3344 = vst [vmem:[%s6528_s9 + $0x68] sm:$0xff] %v3304_v50  ;;  %v3256_v42 = vmul.f32 %v6515_v62, %v3209_v40  ;;  %4518 = vrsqrt.f32 %v3133_v25  ;;  %v3096_v56 = vmul.f32 0.0078125, %v3036_v17 }
 0x38c   : > { %v4513_v3 = vpop.eup %4512 }
 0x38d   : > { %v3303_v14 = vadd.f32 %v6523_v5, %v3256_v42  ;;  %v3212_v57 = vmul.f32 %v4513_v3, %v6382_v9  ;;  %v3136_v32 = vadd.f32 1e-12, %v3096_v56 }
 0x38e   : > { %v3034_v60 = vpop.xlane.xlu0 %3033 }
 0x38f   : > { %3343 = vst [vmem:[%s6528_s9 + $0x60] sm:$0xff] %v3303_v14  ;;  %v3259_v43 = vmul.f32 %v6515_v62, %v3212_v57  ;;  %4520 = vrsqrt.f32 %v3136_v32  ;;  %v3095_v46 = vmul.f32 0.0078125, %v3034_v60 }
 0x390   : > { %v4515_v45 = vpop.eup %4514 }
 0x391   : > { %v3306_v31 = vadd.f32 %v6523_v5, %v3259_v43  ;;  %v3211_v51 = vmul.f32 %v4515_v45, %v6387_v54  ;;  %v3135_v59 = vadd.f32 1e-12, %v3095_v46 }
 0x392   : > { %v3040_v52 = vpop.xlane.xlu1 %3039  ;;  %v3038_v1 = vpop.xlane.xlu0 %3037 }
 0x393   : > { %3346 = vst [vmem:[%s6528_s9 + $0x78] sm:$0xff] %v3306_v31  ;;  %v3258_v37 = vmul.f32 %v6515_v62, %v3211_v51  ;;  %4522 = vrsqrt.f32 %v3135_v59  ;;  %v3098_v9 = vmul.f32 0.0078125, %v3040_v52  ;;  %v3097_v6 = vmul.f32 0.0078125, %v3038_v1 }
 0x394   : > { %v4517_v61 = vpop.eup %4516 }
 0x395   : > { %v3305_v2 = vadd.f32 %v6523_v5, %v3258_v37  ;;  %v3214_v48 = vmul.f32 %v4517_v61, %v6392_v39  ;;  %v3138_v63 = vadd.f32 1e-12, %v3098_v9  ;;  %v3137_v53 = vadd.f32 1e-12, %v3097_v6 }
 0x396   : > { %v3044_v27 = vpop.xlane.xlu1 %3043  ;;  %v3042_v54 = vpop.xlane.xlu0 %3041 }
 0x397   : > { %3345 = vst [vmem:[%s6528_s9 + $0x70] sm:$0xff] %v3305_v2  ;;  %v3261_v7 = vmul.f32 %v6515_v62, %v3214_v48  ;;  %4524 = vrsqrt.f32 %v3138_v63  ;;  %v3100_v8 = vmul.f32 0.0078125, %v3044_v27  ;;  %v3099_v34 = vmul.f32 0.0078125, %v3042_v54 }
 0x398   : > { %v4519_v38 = vpop.eup %4518  ;;  %4526 = vrsqrt.f32 %v3137_v53 }
 0x399   : > { %v3308_v10 = vadd.f32 %v6523_v5, %v3261_v7  ;;  %v3213_v22 = vmul.f32 %v4519_v38, %v6397_v30  ;;  %v3140_v16 = vadd.f32 1e-12, %v3100_v8  ;;  %v3139_v49 = vadd.f32 1e-12, %v3099_v34 }
 0x39a   : > { %v3048_v39 = vpop.xlane.xlu1 %3047  ;;  %v3046_v11 = vpop.xlane.xlu0 %3045 }
 0x39b   : > { %3348 = vst [vmem:[%s6528_s9 + $0x88] sm:$0xff] %v3308_v10  ;;  %v3260_v50 = vmul.f32 %v6515_v62, %v3213_v22  ;;  %4528 = vrsqrt.f32 %v3140_v16  ;;  %v3102_v40 = vmul.f32 0.0078125, %v3048_v39  ;;  %v3101_v25 = vmul.f32 0.0078125, %v3046_v11 }
 0x39c   : > { %v4521_v17 = vpop.eup %4520  ;;  %4530 = vrsqrt.f32 %v3139_v49 }
 0x39d   : > { %v3307_v42 = vadd.f32 %v6523_v5, %v3260_v50  ;;  %v3216_v56 = vmul.f32 %v4521_v17, %v6402_v15  ;;  %v3142_v3 = vadd.f32 1e-12, %v3102_v40  ;;  %v3141_v14 = vadd.f32 1e-12, %v3101_v25 }
 0x39e   : > { %v3052_v30 = vpop.xlane.xlu1 %3051  ;;  %v3050_v57 = vpop.xlane.xlu0 %3049 }
 0x39f   : > { %3347 = vst [vmem:[%s6528_s9 + $0x80] sm:$0xff] %v3307_v42  ;;  %v3263_v32 = vmul.f32 %v6515_v62, %v3216_v56  ;;  %4532 = vrsqrt.f32 %v3142_v3  ;;  %v3104_v60 = vmul.f32 0.0078125, %v3052_v30  ;;  %v3103_v43 = vmul.f32 0.0078125, %v3050_v57 }
 0x3a0   : > { %v4523_v46 = vpop.eup %4522  ;;  %4534 = vrsqrt.f32 %v3141_v14 }
 0x3a1   : > { %v3310_v45 = vadd.f32 %v6523_v5, %v3263_v32  ;;  %v3215_v31 = vmul.f32 %v4523_v46, %v6407_v19  ;;  %v3144_v51 = vadd.f32 1e-12, %v3104_v60  ;;  %v3143_v59 = vadd.f32 1e-12, %v3103_v43 }
 0x3a2   : > { %v3056_v15 = vpop.xlane.xlu1 %3055  ;;  %v3054_v52 = vpop.xlane.xlu0 %3053 }
 0x3a3   : > { %3350 = vst [vmem:[%s6528_s9 + $0x98] sm:$0xff] %v3310_v45  ;;  %v3262_v1 = vmul.f32 %v6515_v62, %v3215_v31  ;;  %4536 = vrsqrt.f32 %v3144_v51  ;;  %v3106_v37 = vmul.f32 0.0078125, %v3056_v15  ;;  %v3105_v9 = vmul.f32 0.0078125, %v3054_v52 }
 0x3a4   : > { %v4525_v6 = vpop.eup %4524  ;;  %4538 = vrsqrt.f32 %v3143_v59 }
 0x3a5   : > { %v4527_v61 = vpop.eup %4526  ;;  %v3309_v2 = vadd.f32 %v6523_v5, %v3262_v1  ;;  %v3218_v48 = vmul.f32 %v4525_v6, %v6415_v4  ;;  %v3146_v63 = vadd.f32 1e-12, %v3106_v37  ;;  %v3145_v19 = vadd.f32 1e-12, %v3105_v9 }
 0x3a6   : > { %v3217_v53 = vmul.f32 %v4527_v61, %v6410_v18  ;;  %v3060_v27 = vpop.xlane.xlu1 %3059  ;;  %v3058_v54 = vpop.xlane.xlu0 %3057 }
 0x3a7   : > { %3349 = vst [vmem:[%s6528_s9 + $0x90] sm:$0xff] %v3309_v2  ;;  %v3265_v7 = vmul.f32 %v6515_v62, %v3218_v48  ;;  %4540 = vrsqrt.f32 %v3146_v63  ;;  %v3108_v8 = vmul.f32 0.0078125, %v3060_v27  ;;  %v3107_v34 = vmul.f32 0.0078125, %v3058_v54 }
 0x3a8   : > { %v4529_v38 = vpop.eup %4528  ;;  %v3264_v10 = vmul.f32 %v6515_v62, %v3217_v53  ;;  %4542 = vrsqrt.f32 %v3145_v19 }
 0x3a9   : > { %v4531_v22 = vpop.eup %4530  ;;  %v3312_v4 = vadd.f32 %v6523_v5, %v3265_v7  ;;  %v3220_v16 = vmul.f32 %v4529_v38, %v6425_v44  ;;  %v3148_v18 = vadd.f32 1e-12, %v3108_v8  ;;  %v3147_v49 = vadd.f32 1e-12, %v3107_v34 }
 0x3aa   : > { %v3311_v39 = vadd.f32 %v6523_v5, %v3264_v10  ;;  %v3219_v11 = vmul.f32 %v4531_v22, %v6418_v29  ;;  %v3064_v50 = vpop.xlane.xlu1 %3063  ;;  %v3062_v40 = vpop.xlane.xlu0 %3061 }
 0x3ab   : > { %3352 = vst [vmem:[%s6528_s9 + $0xa8] sm:$0xff] %v3312_v4  ;;  %v3267_v25 = vmul.f32 %v6515_v62, %v3220_v16  ;;  %4544 = vrsqrt.f32 %v3148_v18  ;;  %v3110_v17 = vmul.f32 0.0078125, %v3064_v50  ;;  %v3109_v42 = vmul.f32 0.0078125, %v3062_v40 }
 0x3ac   : > { %v4533_v56 = vpop.eup %4532  ;;  %3351 = vst [vmem:[%s6528_s9 + $0xa0] sm:$0xff] %v3311_v39  ;;  %v3266_v3 = vmul.f32 %v6515_v62, %v3219_v11  ;;  %4546 = vrsqrt.f32 %v3147_v49 }
 0x3ad   : > { %v4535_v44 = vpop.eup %4534  ;;  %v3314_v14 = vadd.f32 %v6523_v5, %v3267_v25  ;;  %v3222_v29 = vmul.f32 %v4533_v56, %v6435_v13  ;;  %v3150_v30 = vadd.f32 1e-12, %v3110_v17  ;;  %v3149_v57 = vadd.f32 1e-12, %v3109_v42 }
 0x3ae   : > { %v3313_v32 = vadd.f32 %v6523_v5, %v3266_v3  ;;  %v3221_v60 = vmul.f32 %v4535_v44, %v6430_v58  ;;  %v3068_v43 = vpop.xlane.xlu1 %3067  ;;  %v3066_v46 = vpop.xlane.xlu0 %3065 }
 0x3af   : > { %3354 = vst [vmem:[%s6528_s9 + $0xb8] sm:$0xff] %v3314_v14  ;;  %v3269_v45 = vmul.f32 %v6515_v62, %v3222_v29  ;;  %4548 = vrsqrt.f32 %v3150_v30  ;;  %v3112_v31 = vmul.f32 0.0078125, %v3068_v43  ;;  %v3111_v51 = vmul.f32 0.0078125, %v3066_v46 }
 0x3b0   : > { %v4537_v59 = vpop.eup %4536  ;;  %3353 = vst [vmem:[%s6528_s9 + $0xb0] sm:$0xff] %v3313_v32  ;;  %v3268_v15 = vmul.f32 %v6515_v62, %v3221_v60  ;;  %4550 = vrsqrt.f32 %v3149_v57 }
 0x3b1   : > { %v4539_v13 = vpop.eup %4538  ;;  %v3316_v52 = vadd.f32 %v6523_v5, %v3269_v45  ;;  %v3224_v58 = vmul.f32 %v4537_v59, %v6445_v55  ;;  %v3152_v1 = vadd.f32 1e-12, %v3112_v31  ;;  %v3151_v37 = vadd.f32 1e-12, %v3111_v51 }
 0x3b2   : > { %v3315_v9 = vadd.f32 %v6523_v5, %v3268_v15  ;;  %v3223_v6 = vmul.f32 %v4539_v13, %v6438_v35  ;;  %v3072_v61 = vpop.xlane.xlu1 %3071  ;;  %v3070_v2 = vpop.xlane.xlu0 %3069 }
 0x3b3   : > { %3356 = vst [vmem:[%s6528_s9 + $0xc8] sm:$0xff] %v3316_v52  ;;  %v3271_v48 = vmul.f32 %v6515_v62, %v3224_v58  ;;  %4552 = vrsqrt.f32 %v3152_v1  ;;  %v3114_v63 = vmul.f32 0.0078125, %v3072_v61  ;;  %v3113_v19 = vmul.f32 0.0078125, %v3070_v2 }
 0x3b4   : > { %v4541_v53 = vpop.eup %4540  ;;  %3355 = vst [vmem:[%s6528_s9 + $0xc0] sm:$0xff] %v3315_v9  ;;  %v3270_v27 = vmul.f32 %v6515_v62, %v3223_v6  ;;  %4554 = vrsqrt.f32 %v3151_v37 }
 0x3b5   : > { %v4543_v55 = vpop.eup %4542  ;;  %v3318_v54 = vadd.f32 %v6523_v5, %v3271_v48  ;;  %v3226_v35 = vmul.f32 %v4541_v53, %v6455_v20  ;;  %v3154_v7 = vadd.f32 1e-12, %v3114_v63  ;;  %v3153_v8 = vadd.f32 1e-12, %v3113_v19 }
 0x3b6   : > { %v3317_v34 = vadd.f32 %v6523_v5, %v3270_v27  ;;  %v3225_v38 = vmul.f32 %v4543_v55, %v6448_v12  ;;  %v3076_v10 = vpop.xlane.xlu1 %3075  ;;  %v3074_v22 = vpop.xlane.xlu0 %3073 }
 0x3b7   : > { %3358 = vst [vmem:[%s6528_s9 + $0xd8] sm:$0xff] %v3318_v54  ;;  %v3273_v4 = vmul.f32 %v6515_v62, %v3226_v35  ;;  %4556 = vrsqrt.f32 %v3154_v7  ;;  %v3116_v16 = vmul.f32 0.0078125, %v3076_v10  ;;  %v3115_v18 = vmul.f32 0.0078125, %v3074_v22 }
 0x3b8   : > { %v4545_v49 = vpop.eup %4544  ;;  %3357 = vst [vmem:[%s6528_s9 + $0xd0] sm:$0xff] %v3317_v34  ;;  %v3272_v20 = vmul.f32 %v6515_v62, %v3225_v38  ;;  %4558 = vrsqrt.f32 %v3153_v8 }
 0x3b9   : > { %v4547_v39 = vpop.eup %4546  ;;  %v3320_v11 = vadd.f32 %v6523_v5, %v3273_v4  ;;  %v3228_v12 = vmul.f32 %v4545_v49, %v6465_v0  ;;  %v3156_v50 = vadd.f32 1e-12, %v3116_v16  ;;  %v3155_v40 = vadd.f32 1e-12, %v3115_v18 }
 0x3ba   : > { %v3319_v25 = vadd.f32 %v6523_v5, %v3272_v20  ;;  %v3227_v17 = vmul.f32 %v4547_v39, %v6460_v24 }
 0x3bb   : > { %3360 = vst [vmem:[%s6528_s9 + $0xe8] sm:$0xff] %v3320_v11  ;;  %v3275_v42 = vmul.f32 %v6515_v62, %v3228_v12  ;;  %4560 = vrsqrt.f32 %v3156_v50 }
 0x3bc   : > { %v4549_v56 = vpop.eup %4548  ;;  %3359 = vst [vmem:[%s6528_s9 + $0xe0] sm:$0xff] %v3319_v25  ;;  %v3274_v3 = vmul.f32 %v6515_v62, %v3227_v17  ;;  %4562 = vrsqrt.f32 %v3155_v40 }
 0x3bd   : > { %v4551_v44 = vpop.eup %4550  ;;  %v3322_v0 = vadd.f32 %v6523_v5, %v3275_v42  ;;  %v3230_v14 = vmul.f32 %v4549_v56, %v6475_v26 }
 0x3be   : > { %v3321_v24 = vadd.f32 %v6523_v5, %v3274_v3  ;;  %v3229_v29 = vmul.f32 %v4551_v44, %v6468_v41 }
 0x3bf   : > { %3362 = vst [vmem:[%s6528_s9 + $0xf8] sm:$0xff] %v3322_v0  ;;  %v3277_v30 = vmul.f32 %v6515_v62, %v3230_v14 }
 0x3c0   : > { %v4553_v57 = vpop.eup %4552  ;;  %3361 = vst [vmem:[%s6528_s9 + $0xf0] sm:$0xff] %v3321_v24  ;;  %v3276_v32 = vmul.f32 %v6515_v62, %v3229_v29 }
 0x3c1   : > { %v4555_v60 = vpop.eup %4554  ;;  %v3324_v43 = vadd.f32 %v6523_v5, %v3277_v30  ;;  %v3232_v46 = vmul.f32 %v4553_v57, %v6485_v21 }
 0x3c2   : > { %v3323_v26 = vadd.f32 %v6523_v5, %v3276_v32  ;;  %v3231_v45 = vmul.f32 %v4555_v60, %v6478_v47 }
 0x3c3   : > { %3364 = vst [vmem:[%s6528_s9 + $0x108] sm:$0xff] %v3324_v43  ;;  %v3279_v41 = vmul.f32 %v6515_v62, %v3232_v46 }
 0x3c4   : > { %v4557_v31 = vpop.eup %4556  ;;  %3363 = vst [vmem:[%s6528_s9 + $0x100] sm:$0xff] %v3323_v26  ;;  %v3278_v51 = vmul.f32 %v6515_v62, %v3231_v45 }
 0x3c5   : > { %v4559_v59 = vpop.eup %4558  ;;  %v3326_v15 = vadd.f32 %v6523_v5, %v3279_v41  ;;  %v3234_v21 = vmul.f32 %v4557_v31, %v6495_v28 }
 0x3c6   : > { %v3325_v13 = vadd.f32 %v6523_v5, %v3278_v51  ;;  %v3233_v47 = vmul.f32 %v4559_v59, %v6490_v36 }
 0x3c7   : > { %3366 = vst [vmem:[%s6528_s9 + $0x118] sm:$0xff] %v3326_v15  ;;  %v3281_v52 = vmul.f32 %v6515_v62, %v3234_v21 }
 0x3c8   : > { %v4561_v58 = vpop.eup %4560  ;;  %3365 = vst [vmem:[%s6528_s9 + $0x110] sm:$0xff] %v3325_v13  ;;  %v3280_v1 = vmul.f32 %v6515_v62, %v3233_v47 }
 0x3c9   : > { %v4563_v37 = vpop.eup %4562  ;;  %v3328_v9 = vadd.f32 %v6523_v5, %v3281_v52  ;;  %v3236_v28 = vmul.f32 %v4561_v58, %v6505_v23 }
 0x3ca   : > { %v3327_v6 = vadd.f32 %v6523_v5, %v3280_v1  ;;  %v3235_v36 = vmul.f32 %v4563_v37, %v6498_v33 }
 0x3cb   : > { %3368 = vst [vmem:[%s6528_s9 + $0x128] sm:$0xff] %v3328_v9  ;;  %v3283_v61 = vmul.f32 %v6515_v62, %v3236_v28 }
 0x3cc   : > { %3367 = vst [vmem:[%s6528_s9 + $0x120] sm:$0xff] %v3327_v6  ;;  %v3282_v2 = vmul.f32 %v6515_v62, %v3235_v36 }
 0x3cd   : > { %v3330_v48 = vadd.f32 %v6523_v5, %v3283_v61 }
 0x3ce   : > { %v3329_v33 = vadd.f32 %v6523_v5, %v3282_v2 }
 0x3cf   : > { %3370 = vst [vmem:[%s6528_s9 + $0x138] sm:$0xff] %v3330_v48 }
 0x3d0   : > { %3369 = vst [vmem:[%s6528_s9 + $0x130] sm:$0xff] %v3329_v33 }
 0x3d1   : > { %4577 = shalt.err (!%p4574_p7)
}
 0x3d2   : > { %s4578_s13 = scalar_lea.hbm %s6689_s17, 5120  ;;  %s4582_s21 = scalar_lea.hbm %s6754_s5, 20480 }
 0x3d3   : > { %p4579_p9 = scmp.ne.s32.totalorder %s6689_s17, %s4578_s13  ;;  %p4583_p12 = scmp.lt.s32.totalorder %s6689_s17, %s6754_s5 }
 0x3d4   : > { %p4584_p13 = scmp.lt.s32.totalorder %s4582_s21, %s4578_s13 }
 0x3d5   : > { %p4580_p10 = pnand %p4579_p9, %p4742_p3 }
 0x3d6   : > { %p4585_p0 = por %p4584_p13, %p4583_p12 }
 0x3d7   : > { %p4581_p11 = pneg %p4580_p10 }
 0x3d9   : > { %p4586_p1 = pnand %p4585_p0, %p4581_p11 }
 0x3db   : > { %4589 = shalt.err (!%p4586_p1)
}
 0x3dc   : > { %s4659_s16 = smov 128   ;;  %s4660_s27 = smov 8  }
 0x3dd   : > { %4411 = dma.vmem_to_hbm [thread:$0]  (%p4742_p3), %s6691_s14, 5120, %s6689_s17, %s6698_s26, %s4659_s16, %s4659_s16, %s4660_s27  }
 0x3de PF: > { %p4417_p2 = scmp.ge.s32.totalorder %s4656_s25, 2  ;;  %s3404_s30 = sand.u32 1, %s4628_s18  }
 0x3df   : > { %s3405_s8 = scalar_lea.sflag [#allocation3], %s3404_s30 }
 0x3e0   : > { %p4414_p4 = pnand %p4417_p2, %p4751_p8 }
 0x3e2   : > { %p4415_p5 = pneg %p4414_p4 }
 0x3e4   : > { %4623 = dma.done.wait (%p4415_p5), %s3405_s8, 5120  }
 0x3e5   : > { %4625 = vsyncadd (%p4415_p5), %s3405_s8, 4294962176  ;;  %s18_s25 = sadd.s32 1, %s4656_s25   ;;  %s7106_s18 = smov %s4632_s19 }
 0x3e6   : > { %p15_p6 = scmp.ge.s32.totalorder %s18_s25, 6   ;;  %s7107_s19 = smov %s4636_s20 }
 0x3e7   : > { %s7108_s20 = smov %s4760_s11  ;;  %s7109_s21 = smov %s4648_s23 }
 0x3e8   : > { %s7110_s22 = smov %s4652_s24  ;;  %s7111_s23 = smov %s7114_s28 }
 0x3e9   : > { %s7112_s24 = smov %s7118_s29  ;;  %17 = sbr.rel (!%p15_p6) target bundleno = 5 (0x5), region = 81 }
 0x3ee   :  { %3410 = vsyncpa [#allocation3], 1 }
 0x3ef   :  { %3412 = vsyncpa [#allocation3 + $0x1], 1 }

</bundles_post_ra>
